<compile_context>
chip_gen: v5e
topology: v5e:2x2
jax: 0.10.0
libtpu: 0.0.40
codegen_flags: <defaults>
</compile_context>

<pallas_src>
import functools
import math

import jax
import jax.numpy as jnp
from jax.experimental import pallas as pl
from jax.experimental.pallas import tpu as pltpu


def autopad(k, p=None):
    if p is None:
        p = k // 2 if isinstance(k, int) else [x // 2 for x in k]
    return p


def _round_up(x, m):
    return (x + m - 1) // m * m


def _conv_bn_silu_kernel(x_ref, w_ref, scale_ref, bias_ref, o_ref, *, k, s, TH, Wo):
    """One grid step = one (batch, C2-tile, output-row-tile) output tile.

    x_ref:     (1, Hin, Wp, C1)  bf16 padded NHWC image (resident for the batch)
    w_ref:     (k*k, C1, TC2)    bf16 conv weights, tap-major
    scale_ref: (1, TC2)          f32 BN scale  = gamma / sqrt(var + eps)
    bias_ref:  (1, TC2)          f32 BN bias   = beta - mean * scale
    o_ref:     (1, TH*Wo, TC2)   output tile (lane-dense: TC2 % 128 == 0)
    """
    i = pl.program_id(2)                              # output-row tile index
    row0 = pl.multiple_of(i * (TH * s), TH * s)       # first input row of tile
    TM = TH * Wo
    C1 = x_ref.shape[-1]
    TC2 = o_ref.shape[-1]

    acc = jnp.zeros((TM, TC2), jnp.float32)
    # k*k accumulating MXU matmuls; taps are VMEM slices of the resident image.
    for kh in range(k):
        for kw in range(k):
            if s == 1:
                rows = pl.ds(row0 + kh, TH)
                cols = pl.ds(kw, Wo)
            else:
                rows = pl.ds(row0 + kh, TH, s)
                cols = pl.ds(kw, Wo, s)
            lhs = x_ref[0, rows, cols, :].reshape(TM, C1)
            acc = acc + jnp.dot(lhs, w_ref[kh * k + kw],
                                preferred_element_type=jnp.float32)

    # BN (eval) in f32 on the accumulator, then SiLU.
    z = acc * scale_ref[...] + bias_ref[...]
    # Clamp so exp never overflows to inf; both exp and reciprocal use the EUP.
    e = jnp.exp(jnp.minimum(-z, 30.0))
    y = z * pl.reciprocal(1.0 + e, approx=True)
    o_ref[0] = y.astype(o_ref.dtype)


def conv_bn_silu(x_nchw, w_oihw, gamma, beta, running_mean, running_var,
                 stride=1, padding=None, eps=1e-5,
                 compute_dtype=jnp.bfloat16, out_dtype=None, out_layout="NCHW"):
    """Forward pass of Conv: SiLU(BN(Conv2d(x))), groups=1, bias=False.

    x_nchw: (N, C1, H, W)   w_oihw: (C2, C1, k, k)
    Returns (N, C2, Ho, Wo) for out_layout="NCHW" (PyTorch parity) or
    (N, Ho, Wo, C2) for out_layout="NHWC" (avoids the extra transpose pass
    when chaining TPU-side layers).
    """
    N, C1, H, W = x_nchw.shape
    C2, C1w, k, k2 = w_oihw.shape
    assert C1 == C1w, "groups != 1 not supported"  # TODO(synk): grouped conv (g > 1)
    assert k == k2, "only square kernels supported"
    p = autopad(k, padding)
    s = stride
    if out_dtype is None:
        out_dtype = x_nchw.dtype

    Ho = (H + 2 * p - k) // s + 1
    Wo = (W + 2 * p - k) // s + 1

    # ---- tiling ---------------------------------------------------------------
    # C2: pad to lane-dense multiple of 128.  (On v5e prefer TC2=128: 4x128^2 MXU.)
    C2p = _round_up(C2, 128)
    TC2 = 256 if C2p % 256 == 0 else 128
    c2_tiles = C2p // TC2

    # Output-row tiles: target ~512 output pixels per tile, minimize H padding,
    # keep TH*Wo sublane-aligned when there is more than one row tile.
    TM_TARGET = 512
    th0 = max(1, -(-TM_TARGET // Wo))
    n_row_tiles = max(1, -(-Ho // th0))
    TH = -(-Ho // n_row_tiles)
    TH = _round_up(TH, 8 // math.gcd(Wo, 8))
    if TH >= Ho:
        TH, Hop = Ho, Ho
    else:
        Hop = _round_up(Ho, TH)
    h_tiles = Hop // TH
    TM = TH * Wo

    # ---- glue (plain JAX): layout + zero pad only (no im2col) -----------------
    Wp = W + 2 * p
    Hin = max(H + 2 * p, (Hop - 1) * s + k)            # rows needed incl. H padding
    x_nhwc = jnp.transpose(x_nchw, (0, 2, 3, 1))        # (N, H, W, C1)
    x_pad = jnp.pad(x_nhwc, ((0, 0), (p, Hin - H - p), (p, p), (0, 0)))
    x_pad = x_pad.astype(compute_dtype)                 # (N, Hin, Wp, C1)

    # Weights: OIHW -> (k*k, C1, C2p), bf16, unscaled (BN scale applied in f32).
    w_taps = jnp.transpose(w_oihw, (2, 3, 1, 0)).reshape(k * k, C1, C2)
    w_taps = jnp.pad(w_taps, ((0, 0), (0, 0), (0, C2p - C2))).astype(compute_dtype)

    scale = (gamma / jnp.sqrt(running_var + eps)).astype(jnp.float32)
    bias = (beta - running_mean * scale).astype(jnp.float32)
    scale_p = jnp.pad(scale, (0, C2p - C2)).reshape(1, C2p)
    bias_p = jnp.pad(bias, (0, C2p - C2)).reshape(1, C2p)

    # ---- VMEM budget / scheduler hints -----------------------------------------
    dsize = jnp.dtype(compute_dtype).itemsize
    osize = jnp.dtype(out_dtype).itemsize
    x_blk = Hin * Wp * C1 * dsize
    w_blk = k * k * C1 * TC2 * dsize
    o_blk = TM * TC2 * osize
    sb_blk = 2 * TC2 * 4
    est = 2 * (x_blk + w_blk + o_blk + sb_blk) + 6 * TM * TC2 * 4 + (8 << 20)
    try:
        phys_vmem = int(pltpu.get_tpu_info().vmem_capacity_bytes)
    except Exception:
        phys_vmem = 64 << 20                           # conservative (v7x per-TC)
    vmem_limit = int(min(max(est, 32 << 20), int(phys_vmem * 0.85)))

    cost = pl.CostEstimate(
        flops=int(2 * N * Hop * Wo * k * k * C1 * C2p),
        transcendentals=int(N * Hop * Wo * C2p),
        bytes_accessed=int(x_pad.size * dsize
                           + w_taps.size * dsize * max(1, N)   # refetch per batch
                           + N * Hop * Wo * C2p * osize),
    )

    kernel = functools.partial(_conv_bn_silu_kernel, k=k, s=s, TH=TH, Wo=Wo)

    # Grid: rows innermost -> the weight tile (index depends only on j) and the
    # image (index depends only on n) keep a constant block index across the
    # inner axis, so they are not re-DMA'd per row tile.
    out_flat = pl.pallas_call(
        kernel,
        out_shape=jax.ShapeDtypeStruct((N, Hop * Wo, C2p), out_dtype),
        grid_spec=pltpu.PrefetchScalarGridSpec(
            num_scalar_prefetch=0,
            grid=(N, c2_tiles, h_tiles),
            in_specs=[
                pl.BlockSpec((1, Hin, Wp, C1), lambda n, j, i: (n, 0, 0, 0)),   # image
                pl.BlockSpec((k * k, C1, TC2), lambda n, j, i: (0, 0, j)),      # weights
                pl.BlockSpec((1, TC2), lambda n, j, i: (0, j)),                 # BN scale
                pl.BlockSpec((1, TC2), lambda n, j, i: (0, j)),                 # BN bias
            ],
            out_specs=pl.BlockSpec((1, TM, TC2), lambda n, j, i: (n, i, j)),
        ),
        compiler_params=pltpu.CompilerParams(
            dimension_semantics=("parallel", "parallel", "parallel"),
            vmem_limit_bytes=vmem_limit,
        ),
        cost_estimate=cost,
    )(x_pad, w_taps, scale_p, bias_p)

    out = out_flat[:, :Ho * Wo, :C2].reshape(N, Ho, Wo, C2)
    if out_layout == "NCHW":
        out = jnp.transpose(out, (0, 3, 1, 2))          # PyTorch parity
    return out


if __name__ == "__main__":
    # Small shapes consistent with Conv(c1=4, c2=8, k=3, s=1).
    N, C1, H, W = 2, 4, 16, 16
    C2, k, s = 8, 3, 1

    key = jax.random.PRNGKey(0)
    kx, kw, kg, kb, km, kv = jax.random.split(key, 6)

    x = jax.random.normal(kx, (N, C1, H, W), jnp.float32)
    w = jax.random.normal(kw, (C2, C1, k, k), jnp.float32) * 0.1
    gamma = jax.random.normal(kg, (C2,), jnp.float32) * 0.1 + 1.0
    beta = jax.random.normal(kb, (C2,), jnp.float32) * 0.1
    running_mean = jax.random.normal(km, (C2,), jnp.float32) * 0.1
    running_var = jnp.abs(jax.random.normal(kv, (C2,), jnp.float32)) * 0.1 + 1.0

    out = conv_bn_silu(x, w, gamma, beta, running_mean, running_var, stride=s)
    out = jax.block_until_ready(out)
    assert out.shape == (N, C2, H, W), out.shape

    # Pure-JAX f32 reference (kernel uses bf16 matmul operands + approx
    # reciprocal sigmoid -> looser tolerance).
    ref = jax.lax.conv_general_dilated(
        x, w, window_strides=(s, s), padding=[(k // 2, k // 2)] * 2,
        dimension_numbers=("NCHW", "OIHW", "NCHW"))
    sc = (gamma / jnp.sqrt(running_var + 1e-5)).reshape(1, C2, 1, 1)
    bi = (beta - running_mean * gamma / jnp.sqrt(running_var + 1e-5)).reshape(1, C2, 1, 1)
    ref = ref * sc + bi
    ref = ref * jax.nn.sigmoid(ref)
    assert jnp.allclose(out, ref, atol=5e-2, rtol=5e-2), (
        float(jnp.max(jnp.abs(out - ref))))

    print("KERNEL_OK")
</pallas_src>

<mosaic_0001>
module attributes {stable_mosaic.version = 11 : i64} {
  func.func @_conv_bn_silu_kernel(%arg0: i32, %arg1: i32, %arg2: i32, %arg3: memref<1x18x18x4xbf16, #tpu.memory_space<vmem>>, %arg4: memref<9x4x128xbf16, #tpu.memory_space<vmem>>, %arg5: memref<1x128xf32, #tpu.memory_space<vmem>>, %arg6: memref<1x128xf32, #tpu.memory_space<vmem>>, %arg7: memref<1x256x128xf32, #tpu.memory_space<vmem>>) attributes {dimension_semantics = [#tpu.dimension_semantics<parallel>, #tpu.dimension_semantics<parallel>, #tpu.dimension_semantics<parallel>], iteration_bounds = array<i64: 2, 1, 1>, scalar_prefetch = 0 : i64, scratch_operands = 0 : i64, tpu.core_type = #tpu.core_type<tc>, window_params = [{transform_indices = @transform_0, window_bounds = array<i64: 1, 18, 18, 4>}, {transform_indices = @transform_1, window_bounds = array<i64: 9, 4, 128>}, {transform_indices = @transform_2, window_bounds = array<i64: 1, 128>}, {transform_indices = @transform_3, window_bounds = array<i64: 1, 128>}, {transform_indices = @transform_4, window_bounds = array<i64: 1, 256, 128>}]} {
    %c16_i32 = arith.constant 16 : i32
    %0 = arith.muli %arg2, %c16_i32 : i32
    %1 = tpu.assume_multiple %0, 16 : i32
    %cst = arith.constant 0.000000e+00 : f32
    %2 = vector.broadcast %cst : f32 to vector<256x128xf32>
    %c0_i32 = arith.constant 0 : i32
    %3 = arith.addi %1, %c0_i32 : i32
    %c0 = arith.constant 0 : index
    %4 = arith.index_cast %3 : i32 to index
    %c0_0 = arith.constant 0 : index
    %c0_1 = arith.constant 0 : index
    %5 = vector.load %arg3[%c0, %4, %c0_0, %c0_1] : memref<1x18x18x4xbf16, #tpu.memory_space<vmem>>, vector<1x16x16x4xbf16>
    %6 = vector.shape_cast %5 : vector<1x16x16x4xbf16> to vector<16x16x4xbf16>
    %7 = vector.shape_cast %6 : vector<16x16x4xbf16> to vector<256x4xbf16>
    %c0_2 = arith.constant 0 : index
    %c0_3 = arith.constant 0 : index
    %c0_4 = arith.constant 0 : index
    %8 = vector.load %arg4[%c0_2, %c0_3, %c0_4] : memref<9x4x128xbf16, #tpu.memory_space<vmem>>, vector<1x4x128xbf16>
    %9 = vector.shape_cast %8 : vector<1x4x128xbf16> to vector<4x128xbf16>
    %cst_5 = arith.constant dense<0.000000e+00> : vector<256x128xf32>
    %10 = tpu.matmul %7, %9, %cst_5 {dimension_numbers = #tpu.dot_dimension_numbers<[1], [0], [0], [1], [0, 0, 1, 1], [], []>} : vector<256x4xbf16>, vector<4x128xbf16>, vector<256x128xf32> -> vector<256x128xf32>
    %11 = arith.addf %2, %10 : vector<256x128xf32>
    %c0_i32_6 = arith.constant 0 : i32
    %12 = arith.addi %1, %c0_i32_6 : i32
    %c0_7 = arith.constant 0 : index
    %13 = arith.index_cast %12 : i32 to index
    %c1 = arith.constant 1 : index
    %c0_8 = arith.constant 0 : index
    %14 = vector.load %arg3[%c0_7, %13, %c1, %c0_8] : memref<1x18x18x4xbf16, #tpu.memory_space<vmem>>, vector<1x16x16x4xbf16>
    %15 = vector.shape_cast %14 : vector<1x16x16x4xbf16> to vector<16x16x4xbf16>
    %16 = vector.shape_cast %15 : vector<16x16x4xbf16> to vector<256x4xbf16>
    %c1_9 = arith.constant 1 : index
    %c0_10 = arith.constant 0 : index
    %c0_11 = arith.constant 0 : index
    %17 = vector.load %arg4[%c1_9, %c0_10, %c0_11] : memref<9x4x128xbf16, #tpu.memory_space<vmem>>, vector<1x4x128xbf16>
    %18 = vector.shape_cast %17 : vector<1x4x128xbf16> to vector<4x128xbf16>
    %cst_12 = arith.constant dense<0.000000e+00> : vector<256x128xf32>
    %19 = tpu.matmul %16, %18, %cst_12 {dimension_numbers = #tpu.dot_dimension_numbers<[1], [0], [0], [1], [0, 0, 1, 1], [], []>} : vector<256x4xbf16>, vector<4x128xbf16>, vector<256x128xf32> -> vector<256x128xf32>
    %20 = arith.addf %11, %19 : vector<256x128xf32>
    %c0_i32_13 = arith.constant 0 : i32
    %21 = arith.addi %1, %c0_i32_13 : i32
    %c0_14 = arith.constant 0 : index
    %22 = arith.index_cast %21 : i32 to index
    %c2 = arith.constant 2 : index
    %c0_15 = arith.constant 0 : index
    %23 = vector.load %arg3[%c0_14, %22, %c2, %c0_15] : memref<1x18x18x4xbf16, #tpu.memory_space<vmem>>, vector<1x16x16x4xbf16>
    %24 = vector.shape_cast %23 : vector<1x16x16x4xbf16> to vector<16x16x4xbf16>
    %25 = vector.shape_cast %24 : vector<16x16x4xbf16> to vector<256x4xbf16>
    %c2_16 = arith.constant 2 : index
    %c0_17 = arith.constant 0 : index
    %c0_18 = arith.constant 0 : index
    %26 = vector.load %arg4[%c2_16, %c0_17, %c0_18] : memref<9x4x128xbf16, #tpu.memory_space<vmem>>, vector<1x4x128xbf16>
    %27 = vector.shape_cast %26 : vector<1x4x128xbf16> to vector<4x128xbf16>
    %cst_19 = arith.constant dense<0.000000e+00> : vector<256x128xf32>
    %28 = tpu.matmul %25, %27, %cst_19 {dimension_numbers = #tpu.dot_dimension_numbers<[1], [0], [0], [1], [0, 0, 1, 1], [], []>} : vector<256x4xbf16>, vector<4x128xbf16>, vector<256x128xf32> -> vector<256x128xf32>
    %29 = arith.addf %20, %28 : vector<256x128xf32>
    %c1_i32 = arith.constant 1 : i32
    %30 = arith.addi %1, %c1_i32 : i32
    %c0_20 = arith.constant 0 : index
    %31 = arith.index_cast %30 : i32 to index
    %c0_21 = arith.constant 0 : index
    %c0_22 = arith.constant 0 : index
    %32 = vector.load %arg3[%c0_20, %31, %c0_21, %c0_22] : memref<1x18x18x4xbf16, #tpu.memory_space<vmem>>, vector<1x16x16x4xbf16>
    %33 = vector.shape_cast %32 : vector<1x16x16x4xbf16> to vector<16x16x4xbf16>
    %34 = vector.shape_cast %33 : vector<16x16x4xbf16> to vector<256x4xbf16>
    %c3 = arith.constant 3 : index
    %c0_23 = arith.constant 0 : index
    %c0_24 = arith.constant 0 : index
    %35 = vector.load %arg4[%c3, %c0_23, %c0_24] : memref<9x4x128xbf16, #tpu.memory_space<vmem>>, vector<1x4x128xbf16>
    %36 = vector.shape_cast %35 : vector<1x4x128xbf16> to vector<4x128xbf16>
    %cst_25 = arith.constant dense<0.000000e+00> : vector<256x128xf32>
    %37 = tpu.matmul %34, %36, %cst_25 {dimension_numbers = #tpu.dot_dimension_numbers<[1], [0], [0], [1], [0, 0, 1, 1], [], []>} : vector<256x4xbf16>, vector<4x128xbf16>, vector<256x128xf32> -> vector<256x128xf32>
    %38 = arith.addf %29, %37 : vector<256x128xf32>
    %c1_i32_26 = arith.constant 1 : i32
    %39 = arith.addi %1, %c1_i32_26 : i32
    %c0_27 = arith.constant 0 : index
    %40 = arith.index_cast %39 : i32 to index
    %c1_28 = arith.constant 1 : index
    %c0_29 = arith.constant 0 : index
    %41 = vector.load %arg3[%c0_27, %40, %c1_28, %c0_29] : memref<1x18x18x4xbf16, #tpu.memory_space<vmem>>, vector<1x16x16x4xbf16>
    %42 = vector.shape_cast %41 : vector<1x16x16x4xbf16> to vector<16x16x4xbf16>
    %43 = vector.shape_cast %42 : vector<16x16x4xbf16> to vector<256x4xbf16>
    %c4 = arith.constant 4 : index
    %c0_30 = arith.constant 0 : index
    %c0_31 = arith.constant 0 : index
    %44 = vector.load %arg4[%c4, %c0_30, %c0_31] : memref<9x4x128xbf16, #tpu.memory_space<vmem>>, vector<1x4x128xbf16>
    %45 = vector.shape_cast %44 : vector<1x4x128xbf16> to vector<4x128xbf16>
    %cst_32 = arith.constant dense<0.000000e+00> : vector<256x128xf32>
    %46 = tpu.matmul %43, %45, %cst_32 {dimension_numbers = #tpu.dot_dimension_numbers<[1], [0], [0], [1], [0, 0, 1, 1], [], []>} : vector<256x4xbf16>, vector<4x128xbf16>, vector<256x128xf32> -> vector<256x128xf32>
    %47 = arith.addf %38, %46 : vector<256x128xf32>
    %c1_i32_33 = arith.constant 1 : i32
    %48 = arith.addi %1, %c1_i32_33 : i32
    %c0_34 = arith.constant 0 : index
    %49 = arith.index_cast %48 : i32 to index
    %c2_35 = arith.constant 2 : index
    %c0_36 = arith.constant 0 : index
    %50 = vector.load %arg3[%c0_34, %49, %c2_35, %c0_36] : memref<1x18x18x4xbf16, #tpu.memory_space<vmem>>, vector<1x16x16x4xbf16>
    %51 = vector.shape_cast %50 : vector<1x16x16x4xbf16> to vector<16x16x4xbf16>
    %52 = vector.shape_cast %51 : vector<16x16x4xbf16> to vector<256x4xbf16>
    %c5 = arith.constant 5 : index
    %c0_37 = arith.constant 0 : index
    %c0_38 = arith.constant 0 : index
    %53 = vector.load %arg4[%c5, %c0_37, %c0_38] : memref<9x4x128xbf16, #tpu.memory_space<vmem>>, vector<1x4x128xbf16>
    %54 = vector.shape_cast %53 : vector<1x4x128xbf16> to vector<4x128xbf16>
    %cst_39 = arith.constant dense<0.000000e+00> : vector<256x128xf32>
    %55 = tpu.matmul %52, %54, %cst_39 {dimension_numbers = #tpu.dot_dimension_numbers<[1], [0], [0], [1], [0, 0, 1, 1], [], []>} : vector<256x4xbf16>, vector<4x128xbf16>, vector<256x128xf32> -> vector<256x128xf32>
    %56 = arith.addf %47, %55 : vector<256x128xf32>
    %c2_i32 = arith.constant 2 : i32
    %57 = arith.addi %1, %c2_i32 : i32
    %c0_40 = arith.constant 0 : index
    %58 = arith.index_cast %57 : i32 to index
    %c0_41 = arith.constant 0 : index
    %c0_42 = arith.constant 0 : index
    %59 = vector.load %arg3[%c0_40, %58, %c0_41, %c0_42] : memref<1x18x18x4xbf16, #tpu.memory_space<vmem>>, vector<1x16x16x4xbf16>
    %60 = vector.shape_cast %59 : vector<1x16x16x4xbf16> to vector<16x16x4xbf16>
    %61 = vector.shape_cast %60 : vector<16x16x4xbf16> to vector<256x4xbf16>
    %c6 = arith.constant 6 : index
    %c0_43 = arith.constant 0 : index
    %c0_44 = arith.constant 0 : index
    %62 = vector.load %arg4[%c6, %c0_43, %c0_44] : memref<9x4x128xbf16, #tpu.memory_space<vmem>>, vector<1x4x128xbf16>
    %63 = vector.shape_cast %62 : vector<1x4x128xbf16> to vector<4x128xbf16>
    %cst_45 = arith.constant dense<0.000000e+00> : vector<256x128xf32>
    %64 = tpu.matmul %61, %63, %cst_45 {dimension_numbers = #tpu.dot_dimension_numbers<[1], [0], [0], [1], [0, 0, 1, 1], [], []>} : vector<256x4xbf16>, vector<4x128xbf16>, vector<256x128xf32> -> vector<256x128xf32>
    %65 = arith.addf %56, %64 : vector<256x128xf32>
    %c2_i32_46 = arith.constant 2 : i32
    %66 = arith.addi %1, %c2_i32_46 : i32
    %c0_47 = arith.constant 0 : index
    %67 = arith.index_cast %66 : i32 to index
    %c1_48 = arith.constant 1 : index
    %c0_49 = arith.constant 0 : index
    %68 = vector.load %arg3[%c0_47, %67, %c1_48, %c0_49] : memref<1x18x18x4xbf16, #tpu.memory_space<vmem>>, vector<1x16x16x4xbf16>
    %69 = vector.shape_cast %68 : vector<1x16x16x4xbf16> to vector<16x16x4xbf16>
    %70 = vector.shape_cast %69 : vector<16x16x4xbf16> to vector<256x4xbf16>
    %c7 = arith.constant 7 : index
    %c0_50 = arith.constant 0 : index
    %c0_51 = arith.constant 0 : index
    %71 = vector.load %arg4[%c7, %c0_50, %c0_51] : memref<9x4x128xbf16, #tpu.memory_space<vmem>>, vector<1x4x128xbf16>
    %72 = vector.shape_cast %71 : vector<1x4x128xbf16> to vector<4x128xbf16>
    %cst_52 = arith.constant dense<0.000000e+00> : vector<256x128xf32>
    %73 = tpu.matmul %70, %72, %cst_52 {dimension_numbers = #tpu.dot_dimension_numbers<[1], [0], [0], [1], [0, 0, 1, 1], [], []>} : vector<256x4xbf16>, vector<4x128xbf16>, vector<256x128xf32> -> vector<256x128xf32>
    %74 = arith.addf %65, %73 : vector<256x128xf32>
    %c2_i32_53 = arith.constant 2 : i32
    %75 = arith.addi %1, %c2_i32_53 : i32
    %c0_54 = arith.constant 0 : index
    %76 = arith.index_cast %75 : i32 to index
    %c2_55 = arith.constant 2 : index
    %c0_56 = arith.constant 0 : index
    %77 = vector.load %arg3[%c0_54, %76, %c2_55, %c0_56] : memref<1x18x18x4xbf16, #tpu.memory_space<vmem>>, vector<1x16x16x4xbf16>
    %78 = vector.shape_cast %77 : vector<1x16x16x4xbf16> to vector<16x16x4xbf16>
    %79 = vector.shape_cast %78 : vector<16x16x4xbf16> to vector<256x4xbf16>
    %c8 = arith.constant 8 : index
    %c0_57 = arith.constant 0 : index
    %c0_58 = arith.constant 0 : index
    %80 = vector.load %arg4[%c8, %c0_57, %c0_58] : memref<9x4x128xbf16, #tpu.memory_space<vmem>>, vector<1x4x128xbf16>
    %81 = vector.shape_cast %80 : vector<1x4x128xbf16> to vector<4x128xbf16>
    %cst_59 = arith.constant dense<0.000000e+00> : vector<256x128xf32>
    %82 = tpu.matmul %79, %81, %cst_59 {dimension_numbers = #tpu.dot_dimension_numbers<[1], [0], [0], [1], [0, 0, 1, 1], [], []>} : vector<256x4xbf16>, vector<4x128xbf16>, vector<256x128xf32> -> vector<256x128xf32>
    %83 = arith.addf %74, %82 : vector<256x128xf32>
    %c0_60 = arith.constant 0 : index
    %c0_61 = arith.constant 0 : index
    %84 = vector.load %arg5[%c0_60, %c0_61] : memref<1x128xf32, #tpu.memory_space<vmem>>, vector<1x128xf32>
    %85 = vector.broadcast %84 : vector<1x128xf32> to vector<256x128xf32>
    %86 = arith.mulf %83, %85 : vector<256x128xf32>
    %c0_62 = arith.constant 0 : index
    %c0_63 = arith.constant 0 : index
    %87 = vector.load %arg6[%c0_62, %c0_63] : memref<1x128xf32, #tpu.memory_space<vmem>>, vector<1x128xf32>
    %88 = vector.broadcast %87 : vector<1x128xf32> to vector<256x128xf32>
    %89 = arith.addf %86, %88 : vector<256x128xf32>
    %cst_64 = arith.constant 0.000000e+00 : f32
    %90 = vector.broadcast %cst_64 : f32 to vector<256x128xf32>
    %91 = arith.subf %90, %89 : vector<256x128xf32>
    %cst_65 = arith.constant 3.000000e+01 : f32
    %92 = vector.broadcast %cst_65 : f32 to vector<256x128xf32>
    %93 = arith.minimumf %91, %92 : vector<256x128xf32>
    %94 = math.exp %93 : vector<256x128xf32>
    %cst_66 = arith.constant 1.000000e+00 : f32
    %95 = vector.broadcast %cst_66 : f32 to vector<256x128xf32>
    %96 = arith.addf %95, %94 : vector<256x128xf32>
    %97 = tpu.reciprocal %96 {approx = true} : vector<256x128xf32> -> vector<256x128xf32>
    %98 = arith.mulf %89, %97 : vector<256x128xf32>
    %c0_67 = arith.constant 0 : index
    %c0_68 = arith.constant 0 : index
    %c0_69 = arith.constant 0 : index
    %99 = vector.load %arg7[%c0_67, %c0_68, %c0_69] : memref<1x256x128xf32, #tpu.memory_space<vmem>>, vector<1x256x128xf32>
    %100 = vector.shape_cast %99 : vector<1x256x128xf32> to vector<256x128xf32>
    %101 = vector.shape_cast %98 : vector<256x128xf32> to vector<1x256x128xf32>
    tpu.vector_store %arg7[%c0_67, %c0_68, %c0_69], %101 {strides = array<i32>} : memref<1x256x128xf32, #tpu.memory_space<vmem>>, vector<1x256x128xf32>,
    return
  }
  func.func @transform_0(%arg0: i32, %arg1: i32, %arg2: i32) -> (i32, i32, i32, i32) {
    %c0_i32 = arith.constant 0 : i32
    %c0_i32_0 = arith.constant 0 : i32
    %c0_i32_1 = arith.constant 0 : i32
    %c0_i32_2 = arith.constant 0 : i32
    return %arg0, %c0_i32, %c0_i32_0, %c0_i32_1 : i32, i32, i32, i32
  }
  func.func @transform_1(%arg0: i32, %arg1: i32, %arg2: i32) -> (i32, i32, i32) {
    %c0_i32 = arith.constant 0 : i32
    %c0_i32_0 = arith.constant 0 : i32
    %c0_i32_1 = arith.constant 0 : i32
    return %c0_i32, %c0_i32_0, %arg1 : i32, i32, i32
  }
  func.func @transform_2(%arg0: i32, %arg1: i32, %arg2: i32) -> (i32, i32) {
    %c0_i32 = arith.constant 0 : i32
    %c0_i32_0 = arith.constant 0 : i32
    return %c0_i32, %arg1 : i32, i32
  }
  func.func @transform_3(%arg0: i32, %arg1: i32, %arg2: i32) -> (i32, i32) {
    %c0_i32 = arith.constant 0 : i32
    %c0_i32_0 = arith.constant 0 : i32
    return %c0_i32, %arg1 : i32, i32
  }
  func.func @transform_4(%arg0: i32, %arg1: i32, %arg2: i32) -> (i32, i32, i32) {
    %c0_i32 = arith.constant 0 : i32
    return %arg0, %arg2, %arg1 : i32, i32, i32
  }
}

</mosaic_0001>

<bundles_post_ra>
// kernel: tpu_custom_call.1
= control target key start
LH: loop header
LB: loop body
LE: loop exit
PB: predicated region body
PF: predicated region fallthrough
CT: control target
= control target key end

     0   :  { %9 = vsyncpa [#allocation3], 0  ;;  %s7251_s0 = inlined_call_operand.vmem [shape: bf16[2,18,18,4], index: 0, kind: input, shape index: {}]   ;;  %s7252_s1 = inlined_call_operand.vmem [shape: bf16[9,4,128], index: 1, kind: input, shape index: {}]   ;;  %s7253_s2 = inlined_call_operand.vmem [shape: f32[1,128], index: 2, kind: input, shape index: {}]   ;;  %s7254_s3 = inlined_call_operand.vmem [shape: f32[1,128], index: 3, kind: input, shape index: {}]   ;;  %s7255_s4 = inlined_call_operand.hbm [shape: f32[2,256,128], index: 4, kind: output, shape index: {}]  }
   0x1   :  { %11 = vsyncpa [#allocation3 + $0x1], 0  ;;  %s5658_s15 = smov 0   ;;  %s5660_s16 = smov 0  }
   0x2   :  { %s5662_s17 = smov 0   ;;  %s5664_s18 = smov 0  }
   0x3   :  { %s5666_s19 = smov 0   ;;  %s5668_s20 = smov 0  }
   0x4 LB: > { %s4660_s21 = sadd.s32 4294967295, %s5629_s20   ;;  %s4661_s22 = sadd.s32 4294967294, %s5629_s20   ;;  %s5629_s20 = sphi %s5668_s20, %s17_s20   ;;  %s5625_s19 = sphi %s5666_s19, %s7278_s19   ;;  %s5621_s18 = sphi %s5664_s18, %s7277_s18   ;;  %s5617_s17 = sphi %s5662_s17, %s7276_s17   ;;  %s5613_s16 = sphi %s5660_s16, %s7275_s16   ;;  %s5609_s15 = sphi %s5658_s15, %s7274_s15  }
   0x5   : > { %s36_s23 = sadd.s32 1, %s5625_s19  ;;  %s151_s24 = sadd.s32 1, %s5617_s17 }
   0x6   : > { %p38_p0 = scmp.ge.s32.totalorder %s36_s23, 2  ;;  %p161_p1 = scmp.ne.s32.totalorder %s5617_s17, %s5613_s16 }
   0x7   : > { %p162_p2 = scmp.eq.s32.totalorder %s4660_s21, 1  ;;  %p167_p3 = scmp.ne.s32.totalorder %s5613_s16, %s5609_s15 }
   0x8   : > { %s7280_s23 = smov (%p38_p0, %s36_s23), 0  ;;  %p168_p5 = scmp.eq.s32.totalorder %s4661_s22, 1 }
   0x9   : > { %p5698_p4 = por %p162_p2, %p161_p1  ;;  %s144_s26 = ssub.s32 %s5625_s19, %s7280_s23 }
   0xa   : > { %p4667_p6 = scmp.ge.s32.totalorder %s5629_s20, 1  ;;  %p149_p7 = scmp.eq.s32.totalorder %s144_s26, 0 }
   0xb   : > { %p5705_p8 = por %p168_p5, %p167_p3  ;;  %p213_p9 = scmp.lt.s32.totalorder %s5629_s20, 3 }
   0xc   : > { %s5711_s28 = scalar_select %p149_p7, %s5617_s17, %s151_s24  }
   0xd   : > { %p214_p10 = pnand %p4667_p6, %p213_p9 }
   0xf   : > { %217 = sbr.rel (%p214_p10) target bundleno = 795 (0x31b), region = 36 }
  0x14   : > { %v4670_v0 = vld [vmem:[%s7252_s1 + $0x2] sm:$0x3]  ;;  %vm805_vm0 = vcmask 1041408   ;;  %p249_p11 = scmp.lt.s32.totalorder %s5621_s18, 1  ;;  %v4783_v2 = vld [vmem:[%s7252_s1 + $0x4] sm:$0x3] }
  0x15   : > { %v807_v1 = vsel %vm805_vm0, %v4670_v0, 0  ;;  %v1380_v3 = vsel %vm805_vm0, %v4783_v2, 0  ;;  %v4832_v4 = vld [vmem:[%s7252_s1 + $0x6] sm:$0x3]  ;;  %v302_v5 = vld [vmem:[%s7252_s1] sm:$0x3] }
  0x16   : > { %5308 = vmatpush.bf16.msra.mxu1 %v807_v1  ;;  %5309 = vmatpush.bf16.msra.mxu2 %v807_v1  ;;  %s250_s7 = scalar_select %p249_p11, %s5621_s18, 1  ;;  %v4961_v6 = vld [vmem:[%s7252_s1 + $0x8] sm:$0x3]  ;;  %v1670_v7 = vsel %vm805_vm0, %v4832_v4, 0  ;;  %v1027_v8 = vsel %vm805_vm0, %v302_v5, 0  ;;  %vm756_vm4 = vcmask 31744  }
  0x17   : > { %5310 = vmatpush.bf16.msra.mxu3 %v807_v1  ;;  %816 = vmatpush.bf16.msra.mxu0 %v807_v1  ;;  %v2324_v9 = vsel %vm805_vm0, %v4961_v6, 0  ;;  %vm319_vm1 = vsmask.f32 3328  ;;  %vm320_vm2 = vsmask.f32 7440  ;;  %vm1166_vm5 = vcmask 1042432  }
  0x18   : > { %s5311_s14 = smul.u32 216, %s250_s7  ;;  %vm5750_vm3 = vmor %vm319_vm1, %vm320_vm2  ;;  %vm1167_vm6 = vcmask 1046532   ;;  %v7110_v36 = vld [vmem:[%s7253_s2] ss:$0 sm:$0xff]  ;;  %s5307_s5 = sshll.u32 %s5621_s18, 8 }
  0x19   : > { %vm5924_vm7 = vmor %vm1166_vm5, %vm1167_vm6  ;;  %s4530_s8 = scalar_lea.hbm %s7255_s4, %s5307_s5  ;;  %s5571_s26 = scalar_lea.hbm %s7255_s4, 512 }
  0x1a   : > { %1389 = vmatpush.bf16.msrb.mxu2 %v1380_v3  ;;  %1036 = vmatpush.bf16.msrb.mxu1 %v1027_v8  ;;  %s5738_s24 = scalar_lea.vmem %s7251_s0, %s5311_s14  ;;  %s246_s14 = sand.u32 1, %s5613_s16  }
  0x1b   : > { %1679 = vmatpush.bf16.msrb.mxu3 %v1670_v7  ;;  %2333 = vmatpush.bf16.msrb.mxu0 %v2324_v9  ;;  %v278_v10 = vld [vmem:[%s5738_s24 + $0x30] sm:$0xf]  ;;  %v279_v11 = vld [vmem:[%s5738_s24 + $0x34] sm:$0xf]  ;;  %v307_v12 = vld [vmem:[%s5738_s24 + $0x38] sm:$0x1] }
  0x1c   : > { %v419_v13 = vshrl.u32 %v278_v10, 16  ;;  %v422_v14 = vshll.u32 %v278_v10, 16  ;;  %v428_v15 = vshll.u32 %v279_v11, 16  ;;  %v432_v16 = vshrl.u32 %v279_v11, 16  ;;  %v286_v17 = vld [vmem:[%s5738_s24 + $0x60] sm:$0xf] }
  0x1d   : > { %v438_v18 = vshll.u32 %v307_v12, 16  ;;  %v287_v19 = vld [vmem:[%s5738_s24 + $0x64] sm:$0xf]  ;;  %v311_v20 = vld [vmem:[%s5738_s24 + $0x68] sm:$0x1]  ;;  %v515_v21 = vshrl.u32 %v286_v17, 16 }
  0x1e   : > { %v421_v22 = vrot.slane %v419_v13, 4  ;;  %v424_v23 = vrot.slane %v422_v14, 5  ;;  %v430_v24 = vrot.slane %v428_v15, 5  ;;  %v434_v25 = vrot.slane %v432_v16, 4  ;;  %v294_v26 = vld [vmem:[%s5738_s24 + $0x90] sm:$0xf] }
  0x1f   : > { %v440_v27 = vrot.slane %v438_v18, 5  ;;  %v517_v28 = vrot.slane %v515_v21, 4  ;;  %v518_v29 = vshll.u32 %v286_v17, 16  ;;  %v524_v30 = vshll.u32 %v287_v19, 16  ;;  %v295_v35 = vld [vmem:[%s5738_s24 + $0x94] sm:$0xf] }
  0x20   : > { %v425_v31 = vor.u32 %v424_v23, %v421_v22  ;;  %v435_v32 = vor.u32 %v434_v25, %v430_v24  ;;  %v528_v33 = vshrl.u32 %v287_v19, 16  ;;  %v534_v34 = vshll.u32 %v311_v20, 16  ;;  %v315_v45 = vld [vmem:[%s5738_s24 + $0x98] sm:$0x1]  ;;  %v270_v61 = vld [vmem:[%s5738_s24] sm:$0xf] }
  0x21   : > { %v520_v37 = vrot.slane %v518_v29, 5  ;;  %v526_v38 = vrot.slane %v524_v30, 5  ;;  %v611_v39 = vshrl.u32 %v294_v26, 16  ;;  %v614_v47 = vshll.u32 %v294_v26, 16  ;;  %v5763_v1 = vld [vmem:[%s5738_s24 + $0x4] sm:$0xf] }
  0x22   : > { %v426_v40 = vrot.slane %v425_v31, 4  ;;  %v436_v41 = vrot.slane %v435_v32, 4  ;;  %v530_v42 = vrot.slane %v528_v33, 4  ;;  %v536_v43 = vrot.slane %v534_v34, 5  ;;  %v5766_v2 = vld [vmem:[%s5738_s24 + $0x8] sm:$0x1] }
  0x23   : > { %v521_v44 = vor.u32 %v520_v37, %v517_v28  ;;  %v613_v46 = vrot.slane %v611_v39, 4  ;;  %v620_v48 = vshll.u32 %v295_v35, 16  ;;  %v624_v52 = vshrl.u32 %v295_v35, 16  ;;  %v280_v19 = vld [vmem:[%s5738_s24 + $0x3c] sm:$0xf]  ;;  %s6872_s21 = sshll.u32 %s246_s14, 8 }
  0x24   : > { %v431_v49 = vsel %vm5750_vm3, %v426_v40, %v430_v24  ;;  %v441_v50 = vsel %vm5750_vm3, %v436_v41, %v440_v27  ;;  %v531_v51 = vor.u32 %v530_v42, %v526_v38  ;;  %v616_v56 = vrot.slane %v614_v47, 5  ;;  %v5778_v20 = vld [vmem:[%s5738_s24 + $0x40] sm:$0xf]  ;;  %v5783_v25 = vld [vmem:[%s5738_s24 + $0x44] sm:$0x1]  ;;  %s6900_s22 = scalar_lea.vmem [#allocation2], %s6872_s21 }
  0x25   : > { %v716_v53 = vunpack.c.l.b16 %v431_v49  ;;  %v717_v54 = vunpack.c.l.b16 %v441_v50  ;;  %v522_v55 = vrot.slane %v521_v44, 4  ;;  %v622_v58 = vrot.slane %v620_v48, 5  ;;  %v288_v33 = vld [vmem:[%s5738_s24 + $0x6c] sm:$0xf]  ;;  %v312_v47 = vld [vmem:[%s5738_s24 + $0x74] sm:$0x1] }
  0x26   : > { %v532_v57 = vrot.slane %v531_v51, 4  ;;  %v626_v59 = vrot.slane %v624_v52, 4  ;;  %v630_v60 = vshll.u32 %v315_v45, 16  ;;  %v617_v0 = vor.u32 %v616_v56, %v613_v46  ;;  %s4531_s9 = sshll.u32 %s6900_s22, 4  ;;  %s4533_s10 = sshll.u32 %s4530_s8, 4  ;;  %s4532_s9 = int_to_ptr.vmem [resolvable:$true] %s4531_s9  ;;  %s4534_s10 = int_to_ptr.hbm [resolvable:$true] %s4533_s10 }
  0x27   : > { %v744_v62 = vpack.c.b16 %v717_v54, %v716_v53  ;;  %v527_v63 = vsel %vm5750_vm3, %v522_v55, %v526_v38  ;;  %v323_v9 = vshrl.u32 %v270_v61, 16  ;;  %v326_v10 = vshll.u32 %v270_v61, 16  ;;  %v296_v61 = vld [vmem:[%s5738_s24 + $0x9c] sm:$0xf]  ;;  %s4516_s11 = scalar_lea.sflag [#allocation3], %s246_s14  ;;  %s5565_s18 = sshra.s32 %s4534_s10, 4  ;;  %s5566_s18 = int_to_ptr.hbm [resolvable:$true] %s5565_s18 }
  0x28   : > { %v537_v3 = vsel %vm5750_vm3, %v532_v57, %v536_v43  ;;  %v724_v4 = vunpack.c.l.b16 %v527_v63  ;;  %v627_v5 = vor.u32 %v626_v59, %v622_v58  ;;  %v632_v6 = vrot.slane %v630_v60, 5  ;;  %v289_v43 = vld [vmem:[%s5738_s24 + $0x70] sm:$0xf]  ;;  %s5567_s12 = scalar_lea.hbm %s5566_s18, 256  ;;  %p5572_p1 = scmp.lt.s32.totalorder %s5566_s18, %s7255_s4 }
  0x29   : > { %4675 = vmatmul.msk.bf16.vlgmr.msra.gmra.mxu1 %vm756_vm4, %v744_v62  ;;  %v725_v7 = vunpack.c.l.b16 %v537_v3  ;;  %v618_v8 = vrot.slane %v617_v0, 4  ;;  %v332_v12 = vshll.u32 %v5763_v1, 16  ;;  %v336_v13 = vshrl.u32 %v5763_v1, 16  ;;  %v297_v3 = vld [vmem:[%s5738_s24 + $0xa0] sm:$0xf]  ;;  %p5568_p12 = scmp.ne.s32.totalorder %s5566_s18, %s5567_s12  ;;  %p5573_p2 = scmp.lt.s32.totalorder %s5571_s26, %s5567_s12 }
  0x2a   : > { %v628_v11 = vrot.slane %v627_v5, 4  ;;  %v342_v14 = vshll.u32 %v5766_v2, 16  ;;  %v325_v17 = vrot.slane %v323_v9, 4  ;;  %v328_v18 = vrot.slane %v326_v10, 5 }
  0x2b   : > { %v748_v15 = vpack.c.b16 %v725_v7, %v724_v4  ;;  %v623_v16 = vsel %vm5750_vm3, %v618_v8, %v622_v58  ;;  %v334_v23 = vrot.slane %v332_v12, 5  ;;  %v338_v24 = vrot.slane %v336_v13, 4  ;;  %v316_v8 = vld [vmem:[%s5738_s24 + $0xa4] sm:$0x1]  ;;  %p5569_p13 = pnand %p5568_p12, %p5698_p4  ;;  %p5574_p3 = por %p5573_p2, %p5572_p1 }
  0x2c   : > { %v633_v21 = vsel %vm5750_vm3, %v628_v11, %v632_v6  ;;  %v732_v22 = vunpack.c.l.b16 %v623_v16  ;;  %v329_v27 = vor.u32 %v328_v18, %v325_v17  ;;  %v344_v28 = vrot.slane %v342_v14, 5 }
  0x2d   : > { %4679 = vmatmul.msk.bf16.vlgmr.msra.gmra.mxu2 %vm756_vm4, %v748_v15  ;;  %v733_v26 = vunpack.c.l.b16 %v633_v21  ;;  %v339_v29 = vor.u32 %v338_v24, %v334_v23  ;;  %v443_v30 = vshrl.u32 %v280_v19, 16  ;;  %v446_v31 = vshll.u32 %v280_v19, 16  ;;  %p5570_p0 = pneg %p5569_p13 }
  0x2e   : > { %v452_v32 = vshll.u32 %v5778_v20, 16  ;;  %v330_v35 = vrot.slane %v329_v27, 4  ;;  %v456_v37 = vshrl.u32 %v5778_v20, 16  ;;  %v462_v38 = vshll.u32 %v5783_v25, 16 }
  0x2f   : > { %v752_v34 = vpack.c.b16 %v733_v26, %v732_v22  ;;  %v340_v39 = vrot.slane %v339_v29, 4  ;;  %v445_v40 = vrot.slane %v443_v30, 4  ;;  %v448_v41 = vrot.slane %v446_v31, 5  ;;  %v272_v22 = vld [vmem:[%s5738_s24 + $0xc] sm:$0xf]  ;;  %p5575_p5 = pnand %p5574_p3, %p5570_p0 }
  0x30   : > { %v454_v42 = vrot.slane %v452_v32, 5  ;;  %v335_v44 = vsel %vm5750_vm3, %v330_v35, %v334_v23  ;;  %v458_v45 = vrot.slane %v456_v37, 4  ;;  %v464_v46 = vrot.slane %v462_v38, 5  ;;  %v5812_v32 = vld [vmem:[%s5738_s24 + $0x14] sm:$0x1] }
  0x31   : > { %4683 = vmatmul.msk.bf16.vlgmr.msra.gmra.mxu3 %vm756_vm4, %v752_v34  ;;  %v539_v48 = vshrl.u32 %v288_v33, 16  ;;  %v345_v49 = vsel %vm5750_vm3, %v340_v39, %v344_v28  ;;  %v708_v50 = vunpack.c.l.b16 %v335_v44  ;;  %v449_v51 = vor.u32 %v448_v41, %v445_v40  ;;  %v5809_v28 = vld [vmem:[%s5738_s24 + $0x10] sm:$0xf] }
  0x32   : > { %v542_v52 = vshll.u32 %v288_v33, 16  ;;  %v709_v53 = vunpack.c.l.b16 %v345_v49  ;;  %v459_v54 = vor.u32 %v458_v45, %v454_v42  ;;  %v548_v56 = vshll.u32 %v289_v43, 16 }
  0x33   : > { %v541_v55 = vrot.slane %v539_v48, 4  ;;  %v450_v57 = vrot.slane %v449_v51, 4  ;;  %v552_v59 = vshrl.u32 %v289_v43, 16  ;;  %v558_v60 = vshll.u32 %v312_v47, 16  ;;  %v5822_v47 = vld [vmem:[%s5738_s24 + $0x4c] sm:$0xf] }
  0x34   : > { %v544_v58 = vrot.slane %v542_v52, 5  ;;  %v740_v62 = vpack.c.b16 %v709_v53, %v708_v50  ;;  %v460_v63 = vrot.slane %v459_v54, 4  ;;  %v550_v0 = vrot.slane %v548_v56, 5  ;;  %v5827_v56 = vld [vmem:[%s5738_s24 + $0x50] sm:$0x1] }
  0x35   : > { %v455_v4 = vsel %vm5750_vm3, %v450_v57, %v454_v42  ;;  %v554_v6 = vrot.slane %v552_v59, 4  ;;  %v560_v7 = vrot.slane %v558_v60, 5  ;;  %v635_v11 = vshrl.u32 %v296_v61, 16  ;;  %v282_v42 = vld [vmem:[%s5738_s24 + $0x48] sm:$0xf] }
  0x36   : > { %v545_v5 = vor.u32 %v544_v58, %v541_v55  ;;  %4671 = vmatmul.msk.bf16.vlgmr.msra.gmra.mxu0 %vm756_vm4, %v740_v62  ;;  %v465_v9 = vsel %vm5750_vm3, %v460_v63, %v464_v46  ;;  %v718_v10 = vunpack.c.l.b16 %v455_v4  ;;  %v638_v12 = vshll.u32 %v296_v61, 16 }
  0x37   : > { %v719_v13 = vunpack.c.l.b16 %v465_v9  ;;  %v555_v15 = vor.u32 %v554_v6, %v550_v0  ;;  %v644_v16 = vshll.u32 %v297_v3, 16  ;;  %v637_v17 = vrot.slane %v635_v11, 4 }
  0x38   : > { %v546_v14 = vrot.slane %v545_v5, 4  ;;  %v640_v18 = vrot.slane %v638_v12, 5  ;;  %v648_v19 = vshrl.u32 %v297_v3, 16  ;;  %v654_v21 = vshll.u32 %v316_v8, 16  ;;  %v290_v3 = vld [vmem:[%s5738_s24 + $0x78] sm:$0xf] }
  0x39   : > { %v745_v23 = vpack.c.b16 %v719_v13, %v718_v10  ;;  %v556_v26 = vrot.slane %v555_v15, 4  ;;  %v646_v27 = vrot.slane %v644_v16, 5  ;;  %v347_v35 = vshrl.u32 %v272_v22, 16  ;;  %v291_v8 = vld [vmem:[%s5738_s24 + $0x7c] sm:$0xf] }
  0x3a   : > { %v551_v24 = vsel %vm5750_vm3, %v546_v14, %v550_v0  ;;  %v641_v30 = vor.u32 %v640_v18, %v637_v17  ;;  %v650_v31 = vrot.slane %v648_v19, 4  ;;  %v656_v34 = vrot.slane %v654_v21, 5  ;;  %v313_v16 = vld [vmem:[%s5738_s24 + $0x80] sm:$0x1] }
  0x3b   : > { %v726_v29 = vunpack.c.l.b16 %v551_v24  ;;  %4676 = vmatmul.msk.bf16.gmra.mxu1 %vm756_vm4, %v745_v23  ;;  %v561_v33 = vsel %vm5750_vm3, %v556_v26, %v560_v7  ;;  %v350_v37 = vshll.u32 %v272_v22, 16  ;;  %v356_v41 = vshll.u32 %v5809_v28, 16 }
  0x3c   : > { %v727_v38 = vunpack.c.l.b16 %v561_v33  ;;  %v642_v39 = vrot.slane %v641_v30, 4  ;;  %v651_v40 = vor.u32 %v650_v31, %v646_v27  ;;  %v349_v43 = vrot.slane %v347_v35, 4 }
  0x3d   : > { %v352_v44 = vrot.slane %v350_v37, 5  ;;  %v360_v45 = vshrl.u32 %v5809_v28, 16  ;;  %v366_v46 = vshll.u32 %v5812_v32, 16  ;;  %v358_v51 = vrot.slane %v356_v41, 5 }
  0x3e   : > { %v749_v48 = vpack.c.b16 %v727_v38, %v726_v29  ;;  %v647_v49 = vsel %vm5750_vm3, %v642_v39, %v646_v27  ;;  %v652_v50 = vrot.slane %v651_v40, 4  ;;  %v467_v58 = vshrl.u32 %v282_v42, 16  ;;  %v299_v39 = vld [vmem:[%s5738_s24 + $0xac] sm:$0xf]  ;;  %v317_v40 = vld [vmem:[%s5738_s24 + $0xb0] sm:$0x1] }
  0x3f   : > { %v734_v52 = vunpack.c.l.b16 %v647_v49  ;;  %v353_v53 = vor.u32 %v352_v44, %v349_v43  ;;  %v362_v54 = vrot.slane %v360_v45, 4  ;;  %v368_v55 = vrot.slane %v366_v46, 5 }
  0x40   : > { %4680 = vmatmul.msk.bf16.gmra.mxu2 %vm756_vm4, %v749_v48  ;;  %v657_v57 = vsel %vm5750_vm3, %v652_v50, %v656_v34  ;;  %v470_v59 = vshll.u32 %v282_v42, 16  ;;  %v476_v60 = vshll.u32 %v5822_v47, 16  ;;  %v480_v0 = vshrl.u32 %v5822_v47, 16  ;;  %v298_v34 = vld [vmem:[%s5738_s24 + $0xa8] sm:$0xf] }
  0x41   : > { %v735_v61 = vunpack.c.l.b16 %v657_v57  ;;  %v354_v62 = vrot.slane %v353_v53, 4  ;;  %v363_v63 = vor.u32 %v362_v54, %v358_v51  ;;  %v469_v4 = vrot.slane %v467_v58, 4 }
  0x42   : > { %v472_v5 = vrot.slane %v470_v59, 5  ;;  %v478_v6 = vrot.slane %v476_v60, 5  ;;  %v486_v7 = vshll.u32 %v5827_v56, 16  ;;  %v482_v12 = vrot.slane %v480_v0, 4  ;;  %v274_v59 = vld [vmem:[%s5738_s24 + $0x18] sm:$0xf] }
  0x43   : > { %v753_v9 = vpack.c.b16 %v735_v61, %v734_v52  ;;  %v359_v10 = vsel %vm5750_vm3, %v354_v62, %v358_v51  ;;  %v364_v11 = vrot.slane %v363_v63, 4  ;;  %v563_v17 = vshrl.u32 %v290_v3, 16  ;;  %v5855_v63 = vld [vmem:[%s5738_s24 + $0x1c] sm:$0xf]  ;;  %v5858_v0 = vld [vmem:[%s5738_s24 + $0x20] sm:$0x1] }
  0x44   : > { %v710_v13 = vunpack.c.l.b16 %v359_v10  ;;  %v473_v14 = vor.u32 %v472_v5, %v469_v4  ;;  %v488_v15 = vrot.slane %v486_v7, 5  ;;  %v483_v19 = vor.u32 %v482_v12, %v478_v6 }
  0x45   : > { %4684 = vmatmul.msk.bf16.gmra.mxu3 %vm756_vm4, %v753_v9  ;;  %v369_v18 = vsel %vm5750_vm3, %v364_v11, %v368_v55  ;;  %v566_v21 = vshll.u32 %v290_v3, 16  ;;  %v572_v22 = vshll.u32 %v291_v8, 16  ;;  %v565_v26 = vrot.slane %v563_v17, 4 }
  0x46   : > { %v711_v23 = vunpack.c.l.b16 %v369_v18  ;;  %v474_v24 = vrot.slane %v473_v14, 4  ;;  %v576_v27 = vshrl.u32 %v291_v8, 16  ;;  %v484_v29 = vrot.slane %v483_v19, 4 }
  0x47   : > { %v568_v30 = vrot.slane %v566_v21, 5  ;;  %v574_v31 = vrot.slane %v572_v22, 5  ;;  %v582_v33 = vshll.u32 %v313_v16, 16  ;;  %v659_v48 = vshrl.u32 %v298_v34, 16  ;;  %v5868_v21 = vld [vmem:[%s5738_s24 + $0x58] sm:$0xf] }
  0x48   : > { %v741_v35 = vpack.c.b16 %v711_v23, %v710_v13  ;;  %v479_v37 = vsel %vm5750_vm3, %v474_v24, %v478_v6  ;;  %v578_v38 = vrot.slane %v576_v27, 4  ;;  %v489_v41 = vsel %vm5750_vm3, %v484_v29, %v488_v15  ;;  %v284_v15 = vld [vmem:[%s5738_s24 + $0x54] sm:$0xf]  ;;  %v5873_v27 = vld [vmem:[%s5738_s24 + $0x5c] sm:$0x1] }
  0x49   : > { %v720_v42 = vunpack.c.l.b16 %v479_v37  ;;  %v569_v43 = vor.u32 %v568_v30, %v565_v26  ;;  %v584_v44 = vrot.slane %v582_v33, 5  ;;  %v721_v45 = vunpack.c.l.b16 %v489_v41 }
  0x4a   : > { %4672 = vmatmul.msk.bf16.gmra.mxu0 %vm756_vm4, %v741_v35  ;;  %v579_v46 = vor.u32 %v578_v38, %v574_v31  ;;  %v662_v49 = vshll.u32 %v298_v34, 16  ;;  %v668_v51 = vshll.u32 %v299_v39, 16  ;;  %v672_v52 = vshrl.u32 %v299_v39, 16  ;;  %v292_v39 = vld [vmem:[%s5738_s24 + $0x84] sm:$0xf] }
  0x4b   : > { %v570_v50 = vrot.slane %v569_v43, 4  ;;  %v678_v53 = vshll.u32 %v317_v40, 16  ;;  %v746_v54 = vpack.c.b16 %v721_v45, %v720_v42  ;;  %v661_v57 = vrot.slane %v659_v48, 4 }
  0x4c   : > { %v580_v55 = vrot.slane %v579_v46, 4  ;;  %v664_v58 = vrot.slane %v662_v49, 5  ;;  %v670_v61 = vrot.slane %v668_v51, 5  ;;  %v674_v62 = vrot.slane %v672_v52, 4  ;;  %v293_v49 = vld [vmem:[%s5738_s24 + $0x88] sm:$0xf] }
  0x4d   : > { %v575_v60 = vsel %vm5750_vm3, %v570_v50, %v574_v31  ;;  %4677 = vmatmul.msk.bf16.gmra.mxu1 %vm756_vm4, %v746_v54  ;;  %v680_v6 = vrot.slane %v678_v53, 5  ;;  %v371_v9 = vshrl.u32 %v274_v59, 16  ;;  %v374_v10 = vshll.u32 %v274_v59, 16  ;;  %v314_v53 = vld [vmem:[%s5738_s24 + $0x8c] sm:$0x1] }
  0x4e   : > { %v585_v3 = vsel %vm5750_vm3, %v580_v55, %v584_v44  ;;  %v728_v4 = vunpack.c.l.b16 %v575_v60  ;;  %v665_v5 = vor.u32 %v664_v58, %v661_v57  ;;  %v675_v8 = vor.u32 %v674_v62, %v670_v61 }
  0x4f   : > { %v729_v7 = vunpack.c.l.b16 %v585_v3  ;;  %v380_v12 = vshll.u32 %v5855_v63, 16  ;;  %v384_v13 = vshrl.u32 %v5855_v63, 16  ;;  %v390_v14 = vshll.u32 %v5858_v0, 16 }
  0x50   : > { %v666_v11 = vrot.slane %v665_v5, 4  ;;  %v676_v17 = vrot.slane %v675_v8, 4  ;;  %v373_v18 = vrot.slane %v371_v9, 4  ;;  %v376_v19 = vrot.slane %v374_v10, 5  ;;  %v300_v8 = vld [vmem:[%s5738_s24 + $0xb4] sm:$0xf] }
  0x51   : > { %v750_v16 = vpack.c.b16 %v729_v7, %v728_v4  ;;  %v382_v23 = vrot.slane %v380_v12, 5  ;;  %v386_v24 = vrot.slane %v384_v13, 4  ;;  %v392_v26 = vrot.slane %v390_v14, 5  ;;  %v301_v12 = vld [vmem:[%s5738_s24 + $0xb8] sm:$0xf] }
  0x52   : > { %v671_v22 = vsel %vm5750_vm3, %v666_v11, %v670_v61  ;;  %v681_v29 = vsel %vm5750_vm3, %v676_v17, %v680_v6  ;;  %v377_v31 = vor.u32 %v376_v19, %v373_v18  ;;  %v491_v33 = vshrl.u32 %v284_v15, 16  ;;  %v318_v17 = vld [vmem:[%s5738_s24 + $0xbc] sm:$0x1] }
  0x53   : > { %4681 = vmatmul.msk.bf16.gmra.mxu2 %vm756_vm4, %v750_v16  ;;  %v736_v30 = vunpack.c.l.b16 %v671_v22  ;;  %v737_v34 = vunpack.c.l.b16 %v681_v29  ;;  %v387_v35 = vor.u32 %v386_v24, %v382_v23  ;;  %v494_v37 = vshll.u32 %v284_v15, 16 }
  0x54   : > { %v500_v38 = vshll.u32 %v5868_v21, 16  ;;  %v378_v40 = vrot.slane %v377_v31, 4  ;;  %v493_v41 = vrot.slane %v491_v33, 4  ;;  %v504_v42 = vshrl.u32 %v5868_v21, 16 }
  0x55   : > { %v510_v43 = vshll.u32 %v5873_v27, 16  ;;  %v754_v44 = vpack.c.b16 %v737_v34, %v736_v30  ;;  %v388_v45 = vrot.slane %v387_v35, 4  ;;  %v496_v46 = vrot.slane %v494_v37, 5  ;;  %v276_v37 = vld [vmem:[%s5738_s24 + $0x24] sm:$0xf] }
  0x56   : > { %v502_v48 = vrot.slane %v500_v38, 5  ;;  %v383_v50 = vsel %vm5750_vm3, %v378_v40, %v382_v23  ;;  %v506_v51 = vrot.slane %v504_v42, 4  ;;  %v587_v54 = vshrl.u32 %v292_v39, 16  ;;  %v5901_v42 = vld [vmem:[%s5738_s24 + $0x28] sm:$0xf] }
  0x57   : > { %v512_v52 = vrot.slane %v510_v43, 5  ;;  %4685 = vmatmul.msk.bf16.gmra.mxu3 %vm756_vm4, %v754_v44  ;;  %v393_v55 = vsel %vm5750_vm3, %v388_v45, %v392_v26  ;;  %v712_v57 = vunpack.c.l.b16 %v383_v50  ;;  %v497_v58 = vor.u32 %v496_v46, %v493_v41 }
  0x58   : > { %v590_v59 = vshll.u32 %v292_v39, 16  ;;  %v713_v60 = vunpack.c.l.b16 %v393_v55  ;;  %v507_v61 = vor.u32 %v506_v51, %v502_v48  ;;  %v589_v62 = vrot.slane %v587_v54, 4 }
  0x59   : > { %v596_v3 = vshll.u32 %v293_v49, 16  ;;  %v498_v4 = vrot.slane %v497_v58, 4  ;;  %v600_v6 = vshrl.u32 %v293_v49, 16  ;;  %v606_v7 = vshll.u32 %v314_v53, 16 }
  0x5a   : > { %v592_v5 = vrot.slane %v590_v59, 5  ;;  %v742_v9 = vpack.c.b16 %v713_v60, %v712_v57  ;;  %v508_v10 = vrot.slane %v507_v61, 4  ;;  %v683_v22 = vshrl.u32 %v300_v8, 16  ;;  %v1118_v61 = vld [vmem:[%s5738_s24] sm:$0xe] }
  0x5b   : > { %v598_v11 = vrot.slane %v596_v3, 5  ;;  %v503_v13 = vsel %vm5750_vm3, %v498_v4, %v502_v48  ;;  %v602_v15 = vrot.slane %v600_v6, 4  ;;  %v608_v16 = vrot.slane %v606_v7, 5  ;;  %v5905_v48 = vld [vmem:[%s5738_s24 + $0x2c] sm:$0x1] }
  0x5c   : > { %v593_v14 = vor.u32 %v592_v5, %v589_v62  ;;  %4673 = vmatmul.msk.bf16.gmra.mxu0 %vm756_vm4, %v742_v9  ;;  %v513_v18 = vsel %vm5750_vm3, %v508_v10, %v512_v52  ;;  %v722_v19 = vunpack.c.l.b16 %v503_v13  ;;  %v686_v23 = vshll.u32 %v300_v8, 16  ;;  %v4913_v6 = vld [vmem:[%s5738_s24 + $0xc] sm:$0xf] }
  0x5d   : > { %v723_v24 = vunpack.c.l.b16 %v513_v18  ;;  %v603_v29 = vor.u32 %v602_v15, %v598_v11  ;;  %v692_v30 = vshll.u32 %v301_v12, 16  ;;  %v685_v31 = vrot.slane %v683_v22, 4 }
  0x5e   : > { %v594_v26 = vrot.slane %v593_v14, 4  ;;  %v688_v33 = vrot.slane %v686_v23, 5  ;;  %v696_v34 = vshrl.u32 %v301_v12, 16  ;;  %v702_v35 = vshll.u32 %v318_v17, 16  ;;  %v4914_v12 = vld [vmem:[%s5738_s24 + $0x10] sm:$0xf] }
  0x5f   : > { %v747_v38 = vpack.c.b16 %v723_v24, %v722_v19  ;;  %v604_v40 = vrot.slane %v603_v29, 4  ;;  %v694_v41 = vrot.slane %v692_v30, 5  ;;  %v1174_v43 = vrot.slane %v5766_v2, 5 }
  0x60   : > { %v599_v39 = vsel %vm5750_vm3, %v594_v26, %v598_v11  ;;  %v689_v45 = vor.u32 %v688_v33, %v685_v31  ;;  %v698_v46 = vrot.slane %v696_v34, 4  ;;  %v704_v50 = vrot.slane %v702_v35, 5  ;;  %v5059_v11 = vld [vmem:[%s7252_s1 + $0xc] sm:$0x3] }
  0x61   : > { %v730_v44 = vunpack.c.l.b16 %v599_v39  ;;  %4678 = vmatmul.msk.bf16.gmra.mxu1 %vm756_vm4, %v747_v38  ;;  %v609_v49 = vsel %vm5750_vm3, %v604_v40, %v608_v16  ;;  %v395_v51 = vshrl.u32 %v276_v37, 16  ;;  %v398_v52 = vshll.u32 %v276_v37, 16  ;;  %v4915_v38 = vld [vmem:[%s5738_s24 + $0x14] sm:$0x1] }
  0x62   : > { %v731_v53 = vunpack.c.l.b16 %v609_v49  ;;  %v690_v54 = vrot.slane %v689_v45, 4  ;;  %v699_v55 = vor.u32 %v698_v46, %v694_v41  ;;  %v404_v2 = vshll.u32 %v5901_v42, 16  ;;  %v5188_v45 = vld [vmem:[%s7252_s1 + $0xe] sm:$0x3] }
  0x63   : > { %v397_v57 = vrot.slane %v395_v51, 4  ;;  %v400_v58 = vrot.slane %v398_v52, 5  ;;  %v408_v59 = vshrl.u32 %v5901_v42, 16  ;;  %v414_v60 = vshll.u32 %v5905_v48, 16  ;;  %v5259_v51 = vld [vmem:[%s5738_s24] sm:$0xff] }
  0x64   : > { %v751_v62 = vpack.c.b16 %v731_v53, %v730_v44  ;;  %v695_v3 = vsel %vm5750_vm3, %v690_v54, %v694_v41  ;;  %v700_v4 = vrot.slane %v699_v55, 4  ;;  %v406_v5 = vrot.slane %v404_v2, 5  ;;  %v5237_v2 = vld [vmem:[%s7252_s1 + $0x10] sm:$0x3] }
  0x65   : > { %v738_v7 = vunpack.c.l.b16 %v695_v3  ;;  %v401_v8 = vor.u32 %v400_v58, %v397_v57  ;;  %v410_v9 = vrot.slane %v408_v59, 4  ;;  %v416_v10 = vrot.slane %v414_v60, 5 }
  0x66   : > { %4682 = vmatmul.msk.bf16.gmra.mxu2 %vm756_vm4, %v751_v62  ;;  %v705_v13 = vsel %vm5750_vm3, %v700_v4, %v704_v50  ;;  %v4767_v14 = vrot.slane %v1118_v61, 9  ;;  %v1171_v19 = vrot.slane %v5763_v1, 5  ;;  %v3012_v22 = vsel %vm805_vm0, %v5059_v11, 0  ;;  %v5010_v50 = vld [vmem:[%s7252_s1 + $0xa] sm:$0x3] }
  0x67   : > { %v739_v15 = vunpack.c.l.b16 %v705_v13  ;;  %v402_v16 = vrot.slane %v401_v8, 4  ;;  %v411_v17 = vor.u32 %v410_v9, %v406_v5  ;;  %v1842_v23 = vshrl.u32 %v4913_v6, 16  ;;  %3021 = vmatpush.bf16.msra.mxu2 %v3012_v22  ;;  %v1119_v8 = vld [vmem:[%s5738_s24 + $0xc] sm:$0xe] }
  0x68   : > { %v1845_v24 = vshll.u32 %v4913_v6, 16  ;;  %v1851_v26 = vshll.u32 %v4914_v12, 16  ;;  %v1172_v33 = vsel %vm5924_vm7, %v4767_v14, %v1171_v19  ;;  %v1173_v35 = vrot.slane %v1171_v19, 4  ;;  %v4917_v6 = vld [vmem:[%s5738_s24 + $0x1c] sm:$0xf] }
  0x69   : > { %v755_v29 = vpack.c.b16 %v739_v15, %v738_v7  ;;  %v407_v30 = vsel %vm5750_vm3, %v402_v16, %v406_v5  ;;  %v412_v31 = vrot.slane %v411_v17, 4  ;;  %v1283_v37 = vunpack.c.l.b16 %v1172_v33  ;;  %v4916_v5 = vld [vmem:[%s5738_s24 + $0x18] sm:$0xf]  ;;  %v5275_v15 = vld [vmem:[%s5738_s24 + $0xc] sm:$0xff] }
  0x6a   : > { %v714_v34 = vunpack.c.l.b16 %v407_v30  ;;  %v1844_v1 = vrot.slane %v1842_v23, 4  ;;  %v1847_v40 = vrot.slane %v1845_v24, 5  ;;  %v1853_v41 = vrot.slane %v1851_v26, 5  ;;  %v4918_v30 = vld [vmem:[%s5738_s24 + $0x20] sm:$0x1] }
  0x6b   : > { %4686 = vmatmul.msk.bf16.gmra.mxu3 %vm756_vm4, %v755_v29  ;;  %v417_v39 = vsel %vm5750_vm3, %v412_v31, %v416_v10  ;;  %v1855_v44 = vshrl.u32 %v4914_v12, 16  ;;  %v1175_v49 = vsel %vm5924_vm7, %v1173_v35, %v1174_v43  ;;  %v1861_v55 = vshll.u32 %v4915_v38, 16  ;;  %v5260_v35 = vld [vmem:[%s5738_s24 + $0xc] sm:$0xff] }
  0x6c   : > { %v715_v46 = vunpack.c.l.b16 %v417_v39  ;;  %v1284_v52 = vunpack.c.l.b16 %v1175_v49  ;;  %v1848_v53 = vor.u32 %v1847_v40, %v1844_v1  ;;  %v3666_v58 = vsel %vm805_vm0, %v5188_v45, 0 }
  0x6d   : > { %v1857_v54 = vrot.slane %v1855_v44, 4  ;;  %3675 = vmatpush.bf16.msra.mxu3 %v3666_v58  ;;  %v2722_v60 = vsel %vm805_vm0, %v5010_v50, 0  ;;  %v4064_v61 = vsel %vm805_vm0, %v5237_v2, 0  ;;  %v1863_v4 = vrot.slane %v1861_v55, 5  ;;  %v1120_v50 = vld [vmem:[%s5738_s24 + $0x18] sm:$0xe] }
  0x6e   : > { %v743_v57 = vpack.c.b16 %v715_v46, %v714_v34  ;;  %v1315_v43 = vpack.c.b16 %v1284_v52, %v1283_v37  ;;  %2731 = vmatpush.bf16.msra.mxu1 %v2722_v60  ;;  %v1849_v62 = vrot.slane %v1848_v53, 4  ;;  %4073 = vmatpush.bf16.msra.mxu0 %v4064_v61  ;;  %v1178_v7 = vrot.slane %v5809_v28, 5  ;;  %v4920_v46 = vld [vmem:[%s5738_s24 + $0x28] sm:$0xf] }
  0x6f   : > { %v1858_v59 = vor.u32 %v1857_v54, %v1853_v41  ;;  %v1866_v9 = vshrl.u32 %v4916_v5, 16  ;;  %v1869_v10 = vshll.u32 %v4916_v5, 16  ;;  %v1875_v13 = vshll.u32 %v4917_v6, 16 }
  0x70   : > { %4674 = vmatmul.msk.bf16.gmra.mxu0 %vm756_vm4, %v743_v57  ;;  %v1854_v11 = vsel %vm5750_vm3, %v1849_v62, %v1853_v41  ;;  %v1879_v14 = vshrl.u32 %v4917_v6, 16  ;;  %v4768_v16 = vrot.slane %v1119_v8, 9  ;;  %v1180_v17 = vrot.slane %v1178_v7, 4  ;;  %v4919_v41 = vld [vmem:[%s5738_s24 + $0x24] sm:$0xf] }
  0x71   : > { %4751 = vmatmul.msk.bf16.vlgmr.msrb.gmra.mxu1 %vm756_vm4, %v5259_v51  ;;  %v1859_v3 = vrot.slane %v1858_v59, 4  ;;  %v1181_v28 = vrot.slane %v5812_v32, 5  ;;  %v2227_v19 = vunpack.c.l.b16 %v1854_v11  ;;  %v1868_v23 = vrot.slane %v1866_v9, 4  ;;  %v4921_v6 = vld [vmem:[%s5738_s24 + $0x2c] sm:$0x1] }
  0x72   : > { %v1871_v24 = vrot.slane %v1869_v10, 5  ;;  %v1877_v26 = vrot.slane %v1875_v13, 5  ;;  %v1881_v29 = vrot.slane %v1879_v14, 4  ;;  %v1179_v31 = vsel %vm5924_vm7, %v4768_v16, %v1178_v7 }
  0x73   : > { %v1864_v12 = vsel %vm5750_vm3, %v1859_v3, %v1863_v4  ;;  %v1182_v33 = vsel %vm5924_vm7, %v1180_v17, %v1181_v28  ;;  %v1885_v38 = vshll.u32 %v4918_v30, 16  ;;  %v1285_v1 = vunpack.c.l.b16 %v1179_v31 }
  0x74   : > { %v2228_v22 = vunpack.c.l.b16 %v1864_v12  ;;  %v1872_v32 = vor.u32 %v1871_v24, %v1868_v23  ;;  %v1882_v37 = vor.u32 %v1881_v29, %v1877_v26  ;;  %v1286_v39 = vunpack.c.l.b16 %v1182_v33  ;;  %v5261_v12 = vld [vmem:[%s5738_s24 + $0x18] sm:$0xff]  ;;  %v1121_v29 = vld [vmem:[%s5738_s24 + $0x24] sm:$0xe] }
  0x75   : > { %v1887_v45 = vrot.slane %v1885_v38, 5  ;;  %v1185_v51 = vrot.slane %v5855_v63, 5  ;;  %v1890_v52 = vshrl.u32 %v4919_v41, 16  ;;  %v1893_v54 = vshll.u32 %v4919_v41, 16 }
  0x76   : > { %4784 = vmatmul.msk.bf16.vlgmr.msrb.gmra.mxu2 %vm756_vm4, %v1315_v43  ;;  %v2259_v34 = vpack.c.b16 %v2228_v22, %v2227_v19  ;;  %v1873_v40 = vrot.slane %v1872_v32, 4  ;;  %v1883_v44 = vrot.slane %v1882_v37, 4  ;;  %v1316_v49 = vpack.c.b16 %v1286_v39, %v1285_v1  ;;  %v5276_v43 = vld [vmem:[%s5738_s24 + $0x18] sm:$0xff]  ;;  %v4922_v19 = vld [vmem:[%s5738_s24 + $0x30] sm:$0xf]  ;;  %v5277_v32 = vld [vmem:[%s5738_s24 + $0x24] sm:$0xff] }
  0x77   : > { %v1899_v55 = vshll.u32 %v4920_v46, 16  ;;  %v1903_v2 = vshrl.u32 %v4920_v46, 16  ;;  %v4769_v58 = vrot.slane %v1120_v50, 9  ;;  %v1187_v60 = vrot.slane %v1185_v51, 4  ;;  %v4923_v22 = vld [vmem:[%s5738_s24 + $0x34] sm:$0xf] }
  0x78   : > { %v1878_v53 = vsel %vm5750_vm3, %v1873_v40, %v1877_v26  ;;  %v1888_v57 = vsel %vm5750_vm3, %v1883_v44, %v1887_v45  ;;  %v1188_v63 = vrot.slane %v5858_v0, 5  ;;  %v1892_v61 = vrot.slane %v1890_v52, 4  ;;  %v4924_v45 = vld [vmem:[%s5738_s24 + $0x38] sm:$0x1] }
  0x79   : > { %v2229_v59 = vunpack.c.l.b16 %v1878_v53  ;;  %v2230_v62 = vunpack.c.l.b16 %v1888_v57  ;;  %v1895_v3 = vrot.slane %v1893_v54, 5  ;;  %v1901_v4 = vrot.slane %v1899_v55, 5  ;;  %v4926_v57 = vld [vmem:[%s5738_s24 + $0x40] sm:$0xf] }
  0x7a   : > { %v1905_v5 = vrot.slane %v1903_v2, 4  ;;  %v1186_v7 = vsel %vm5924_vm7, %v4769_v58, %v1185_v51  ;;  %v1189_v8 = vsel %vm5924_vm7, %v1187_v60, %v1188_v63  ;;  %v1909_v0 = vshll.u32 %v4921_v6, 16  ;;  %v4925_v2 = vld [vmem:[%s5738_s24 + $0x3c] sm:$0xf]  ;;  %v5499_v63 = vld [vmem:[%s5738_s24 + $0x34] sm:$0xf] }
  0x7b   : > { %4897 = vmatmul.msk.bf16.vlgmr.msrb.gmra.mxu3 %vm756_vm4, %v5275_v15  ;;  %v2260_v9 = vpack.c.b16 %v2230_v62, %v2229_v59  ;;  %v1896_v10 = vor.u32 %v1895_v3, %v1892_v61  ;;  %v1287_v13 = vunpack.c.l.b16 %v1186_v7  ;;  %v1288_v14 = vunpack.c.l.b16 %v1189_v8  ;;  %v1122_v62 = vld [vmem:[%s5738_s24 + $0x30] sm:$0xe] }
  0x7c   : > { %v1906_v11 = vor.u32 %v1905_v5, %v1901_v4  ;;  %v1911_v17 = vrot.slane %v1909_v0, 5  ;;  %v1192_v23 = vrot.slane %v5901_v42, 5  ;;  %v1914_v30 = vshrl.u32 %v4922_v19, 16  ;;  %v5500_v0 = vld [vmem:[%s5738_s24 + $0x38] sm:$0x1] }
  0x7d   : > { %v1897_v15 = vrot.slane %v1896_v10, 4  ;;  %v1317_v28 = vpack.c.b16 %v1288_v14, %v1287_v13  ;;  %v1917_v31 = vshll.u32 %v4922_v19, 16  ;;  %v1923_v33 = vshll.u32 %v4923_v22, 16  ;;  %v5278_v13 = vld [vmem:[%s5738_s24 + $0x30] sm:$0xff] }
  0x7e   : > { %v1907_v16 = vrot.slane %v1906_v11, 4  ;;  %v1194_v37 = vrot.slane %v1192_v23, 4  ;;  %v1195_v42 = vrot.slane %v5905_v48, 5  ;;  %v1916_v39 = vrot.slane %v1914_v30, 4  ;;  %v5262_v48 = vld [vmem:[%s5738_s24 + $0x24] sm:$0xff] }
  0x7f   : > { %v1902_v24 = vsel %vm5750_vm3, %v1897_v15, %v1901_v4  ;;  %v1919_v40 = vrot.slane %v1917_v31, 5  ;;  %v1925_v41 = vrot.slane %v1923_v33, 5  ;;  %v1933_v53 = vshll.u32 %v4924_v45, 16  ;;  %v5263_v33 = vld [vmem:[%s5738_s24 + $0x30] sm:$0xff] }
  0x80   : > { %4962 = vmatmul.msk.bf16.vlgmr.msrb.gmra.mxu0 %vm756_vm4, %v2259_v34  ;;  %v1912_v26 = vsel %vm5750_vm3, %v1907_v16, %v1911_v17  ;;  %v1927_v34 = vshrl.u32 %v4923_v22, 16  ;;  %v2231_v38 = vunpack.c.l.b16 %v1902_v24  ;;  %v1199_v61 = vrot.slane %v5499_v63, 5  ;;  %v4927_v22 = vld [vmem:[%s5738_s24 + $0x44] sm:$0x1] }
  0x81   : > { %4752 = vmatmul.msk.bf16.gmra.mxu1 %vm756_vm4, %v5260_v35  ;;  %v4770_v35 = vrot.slane %v1121_v29, 9  ;;  %v2232_v1 = vunpack.c.l.b16 %v1912_v26  ;;  %v1920_v51 = vor.u32 %v1919_v40, %v1916_v39  ;;  %v1935_v59 = vrot.slane %v1933_v53, 5  ;;  %v4928_v39 = vld [vmem:[%s5738_s24 + $0x48] sm:$0xf]  ;;  %v4929_v40 = vld [vmem:[%s5738_s24 + $0x4c] sm:$0xf] }
  0x82   : > { %v1929_v44 = vrot.slane %v1927_v34, 4  ;;  %v1938_v3 = vshrl.u32 %v4925_v2, 16  ;;  %v1941_v4 = vshll.u32 %v4925_v2, 16  ;;  %v1947_v5 = vshll.u32 %v4926_v57, 16  ;;  %v5279_v2 = vld [vmem:[%s5738_s24 + $0x3c] sm:$0xff] }
  0x83   : > { %v1193_v46 = vsel %vm5924_vm7, %v4770_v35, %v1192_v23  ;;  %v2261_v50 = vpack.c.b16 %v2232_v1, %v2231_v38  ;;  %v1921_v58 = vrot.slane %v1920_v51, 4  ;;  %v1951_v6 = vshrl.u32 %v4926_v57, 16 }
  0x84   : > { %v1930_v52 = vor.u32 %v1929_v44, %v1925_v41  ;;  %v1289_v54 = vunpack.c.l.b16 %v1193_v46  ;;  %v4771_v10 = vrot.slane %v1122_v62, 9  ;;  %v1201_v11 = vrot.slane %v1199_v61, 4 }
  0x85   : > { %v1926_v8 = vsel %vm5750_vm3, %v1921_v58, %v1925_v41  ;;  %v1940_v14 = vrot.slane %v1938_v3, 4  ;;  %v1943_v15 = vrot.slane %v1941_v4, 5  ;;  %v1949_v16 = vrot.slane %v1947_v5, 5  ;;  %v4930_v4 = vld [vmem:[%s5738_s24 + $0x50] sm:$0x1] }
  0x86   : > { %4785 = vmatmul.msk.bf16.gmra.mxu2 %vm756_vm4, %v1316_v49  ;;  %v1196_v49 = vsel %vm5924_vm7, %v1194_v37, %v1195_v42  ;;  %v1953_v17 = vrot.slane %v1951_v6, 4  ;;  %v1200_v23 = vsel %vm5924_vm7, %v4771_v10, %v1199_v61  ;;  %v1957_v30 = vshll.u32 %v4927_v22, 16 }
  0x87   : > { %v1290_v55 = vunpack.c.l.b16 %v1196_v49  ;;  %v1944_v26 = vor.u32 %v1943_v15, %v1940_v14  ;;  %v1962_v51 = vshrl.u32 %v4928_v39, 16  ;;  %v1971_v53 = vshll.u32 %v4929_v40, 16 }
  0x88   : > { %v1954_v29 = vor.u32 %v1953_v17, %v1949_v16  ;;  %v1959_v1 = vrot.slane %v1957_v30, 5 }
  0x89   : > { %v1318_v60 = vpack.c.b16 %v1290_v55, %v1289_v54  ;;  %v1945_v42 = vrot.slane %v1944_v26, 4  ;;  %v1975_v54 = vshrl.u32 %v4929_v40, 16  ;;  %v1973_v62 = vrot.slane %v1971_v53, 5 }
  0x8a   : > { %v1955_v38 = vrot.slane %v1954_v29, 4  ;;  %v1213_v26 = vrot.slane %v5822_v47, 5 }
  0x8b   : > { %4898 = vmatmul.msk.bf16.gmra.mxu3 %vm756_vm4, %v5276_v43  ;;  %v1931_v43 = vrot.slane %v1930_v52, 4  ;;  %v1950_v45 = vsel %vm5750_vm3, %v1945_v42, %v1949_v16  ;;  %v1965_v52 = vshll.u32 %v4928_v39, 16  ;;  %v1977_v3 = vrot.slane %v1975_v54, 4  ;;  %v4933_v54 = vld [vmem:[%s5738_s24 + $0x5c] sm:$0x1] }
  0x8c   : > { %v1960_v46 = vsel %vm5750_vm3, %v1955_v38, %v1959_v1  ;;  %v2235_v55 = vunpack.c.l.b16 %v1950_v45  ;;  %v5280_v1 = vld [vmem:[%s5738_s24 + $0x48] sm:$0xff]  ;;  %v1215_v40 = vrot.slane %v1213_v26, 4 }
  0x8d   : > { %v2236_v57 = vunpack.c.l.b16 %v1960_v46  ;;  %v1967_v61 = vrot.slane %v1965_v52, 5  ;;  %v1978_v10 = vor.u32 %v1977_v3, %v1973_v62 }
  0x8f   : > { %v1979_v16 = vrot.slane %v1978_v10, 4 }
  0x90   : > { %4963 = vmatmul.msk.bf16.gmra.mxu0 %vm756_vm4, %v2260_v9  ;;  %v1936_v9 = vsel %vm5750_vm3, %v1931_v43, %v1935_v59 }
  0x91   : > { %4753 = vmatmul.msk.bf16.gmra.mxu1 %vm756_vm4, %v5261_v12  ;;  %v1202_v12 = vrot.slane %v5500_v0, 5  ;;  %v2234_v19 = vunpack.c.l.b16 %v1936_v9 }
  0x93   : > { %v1203_v24 = vsel %vm5924_vm7, %v1201_v11, %v1202_v12  ;;  %v1981_v11 = vshll.u32 %v4930_v4, 16  ;;  %v5264_v12 = vld [vmem:[%s5738_s24 + $0x3c] sm:$0xff] }
  0x94   : > { %v1292_v35 = vunpack.c.l.b16 %v1203_v24  ;;  %v4932_v24 = vld [vmem:[%s5738_s24 + $0x58] sm:$0xf]  ;;  %v4934_v4 = vld [vmem:[%s5738_s24 + $0x60] sm:$0xf] }
  0x95   : > { %v1983_v17 = vrot.slane %v1981_v11, 5  ;;  %v1999_v42 = vshrl.u32 %v4932_v24, 16 }
  0x96   : > { %4786 = vmatmul.msk.bf16.gmra.mxu2 %vm756_vm4, %v1317_v28  ;;  %v2233_v28 = vunpack.c.l.b16 %v1926_v8  ;;  %v2263_v8 = vpack.c.b16 %v2236_v57, %v2235_v55 }
  0x97   : > { %v1984_v30 = vsel %vm5750_vm3, %v1979_v16, %v1983_v17  ;;  %v2001_v52 = vrot.slane %v1999_v42, 4 }
  0x98   : > { %v2262_v31 = vpack.c.b16 %v2234_v19, %v2233_v28  ;;  %v2238_v46 = vunpack.c.l.b16 %v1984_v30 }
  0x9b   : > { %4899 = vmatmul.msk.bf16.gmra.mxu3 %vm756_vm4, %v5277_v32  ;;  %v1291_v32 = vunpack.c.l.b16 %v1200_v23  ;;  %v4931_v23 = vld [vmem:[%s5738_s24 + $0x54] sm:$0xf] }
  0x9d   : > { %v1319_v44 = vpack.c.b16 %v1292_v35, %v1291_v32  ;;  %v1989_v32 = vshll.u32 %v4931_v23, 16  ;;  %v1995_v35 = vshll.u32 %v4932_v24, 16 }
  0xa0   : > { %4964 = vmatmul.msk.bf16.gmra.mxu0 %vm756_vm4, %v2261_v50  ;;  %v1206_v50 = vrot.slane %v5778_v20, 5  ;;  %v1964_v20 = vrot.slane %v1962_v51, 4  ;;  %v1997_v51 = vrot.slane %v1995_v35, 5  ;;  %v1223_v35 = vrot.slane %v5873_v27, 5 }
  0xa1   : > { %4754 = vmatmul.msk.bf16.gmra.mxu1 %vm756_vm4, %v5262_v48  ;;  %v1123_v48 = vld [vmem:[%s5738_s24 + $0x3c] sm:$0xe] }
  0xa2   : > { %v4772_v43 = vrot.slane %v1123_v48, 9  ;;  %v1208_v59 = vrot.slane %v1206_v50, 4  ;;  %v1991_v48 = vrot.slane %v1989_v32, 5 }
  0xa4   : > { %v1207_v5 = vsel %vm5924_vm7, %v4772_v43, %v1206_v50  ;;  %v5265_v43 = vld [vmem:[%s5738_s24 + $0x48] sm:$0xff] }
  0xa6   : > { %v6019_v7 = vpop.f32.mrf.mxu1  ;;  %4787 = vmatmul.msk.bf16.gmra.mxu2 %vm756_vm4, %v1318_v60  ;;  %v1209_v60 = vrot.slane %v5783_v25, 5  ;;  %v1968_v25 = vor.u32 %v1967_v61, %v1964_v20  ;;  %v2005_v20 = vshll.u32 %v4933_v54, 16  ;;  %v5266_v54 = vld [vmem:[%s5738_s24 + $0x54] sm:$0xff] }
  0xa8   : > { %v1210_v6 = vsel %vm5924_vm7, %v1208_v59, %v1209_v60  ;;  %v1969_v15 = vrot.slane %v1968_v25, 4  ;;  %v2002_v60 = vor.u32 %v2001_v52, %v1997_v51  ;;  %v2007_v10 = vrot.slane %v2005_v20, 5 }
  0xa9   : > { %v1294_v14 = vunpack.c.l.b16 %v1210_v6 }
  0xaa   : > { %v1974_v29 = vsel %vm5750_vm3, %v1969_v15, %v1973_v62  ;;  %v2003_v25 = vrot.slane %v2002_v60, 4  ;;  %v1220_v15 = vrot.slane %v5868_v21, 5 }
  0xab   : > { %4900 = vmatmul.msk.bf16.gmra.mxu3 %vm756_vm4, %v5278_v13  ;;  %v1293_v13 = vunpack.c.l.b16 %v1207_v5  ;;  %v2237_v45 = vunpack.c.l.b16 %v1974_v29  ;;  %v4935_v5 = vld [vmem:[%s5738_s24 + $0x64] sm:$0xf] }
  0xac   : > { %v2023_v16 = vshrl.u32 %v4935_v5, 16  ;;  %v2008_v24 = vsel %vm5750_vm3, %v2003_v25, %v2007_v10  ;;  %v1222_v32 = vrot.slane %v1220_v15, 4  ;;  %v5501_v10 = vld [vmem:[%s5738_s24 + $0x64] sm:$0xf] }
  0xad   : > { %v1320_v19 = vpack.c.b16 %v1294_v14, %v1293_v13  ;;  %v2264_v57 = vpack.c.b16 %v2238_v46, %v2237_v45  ;;  %v2013_v13 = vshll.u32 %v4934_v4, 16  ;;  %v2019_v14 = vshll.u32 %v4935_v5, 16 }
  0xae   : > { %v6035_v34 = vpop.f32.mrf.mxu1  ;;  %v2025_v42 = vrot.slane %v2023_v16, 4 }
  0xaf   : > { %v2015_v30 = vrot.slane %v2013_v13, 5  ;;  %v1126_v13 = vld [vmem:[%s5738_s24 + $0x60] sm:$0xe] }
  0xb0   : > { %v6037_v37 = vpop.f32.mrf.mxu2  ;;  %4965 = vmatmul.msk.bf16.gmra.mxu0 %vm756_vm4, %v2262_v31  ;;  %v1124_v31 = vld [vmem:[%s5738_s24 + $0x48] sm:$0xe] }
  0xb1   : > { %4755 = vmatmul.msk.bf16.gmra.mxu1 %vm756_vm4, %v5263_v33  ;;  %v1986_v33 = vshrl.u32 %v4931_v23, 16  ;;  %v4773_v47 = vrot.slane %v1124_v31, 9  ;;  %v2021_v31 = vrot.slane %v2019_v14, 5 }
  0xb3   : > { %v6043_v41 = vpop.f32.mrf.mxu0  ;;  %v1988_v50 = vrot.slane %v1986_v33, 4  ;;  %v5281_v33 = vld [vmem:[%s5738_s24 + $0x54] sm:$0xff]  ;;  %v2026_v27 = vor.u32 %v2025_v42, %v2021_v31 }
  0xb4   : > { %v6049_v49 = vpop.f32.mrf.mxu3 }
  0xb5   : > { %v1992_v59 = vor.u32 %v1991_v48, %v1988_v50  ;;  %v1224_v48 = vsel %vm5924_vm7, %v1222_v32, %v1223_v35  ;;  %v2027_v60 = vrot.slane %v2026_v27, 4 }
  0xb6   : > { %4788 = vmatmul.msk.bf16.gmra.mxu2 %vm756_vm4, %v1319_v44  ;;  %v1216_v44 = vrot.slane %v5827_v56, 5 }
  0xb8   : > { %v6055_v58 = vpop.f32.mrf.mxu1  ;;  %v6058_v63 = vpop.f32.mrf.mxu2  ;;  %v1217_v56 = vsel %vm5924_vm7, %v1215_v40, %v1216_v44  ;;  %v4936_v40 = vld [vmem:[%s5738_s24 + $0x68] sm:$0x1] }
  0xb9   : > { %v1296_v62 = vunpack.c.l.b16 %v1217_v56 }
  0xbb   : > { %4901 = vmatmul.msk.bf16.gmra.mxu3 %vm756_vm4, %v5279_v2  ;;  %v6066_v9 = vpop.f32.mrf.mxu0  ;;  %v1214_v2 = vsel %vm5924_vm7, %v4773_v47, %v1213_v26  ;;  %v2240_v47 = vunpack.c.l.b16 %v2008_v24 }
  0xbc   : > { %v6068_v0 = vpop.f32.mrf.mxu3  ;;  %v1295_v61 = vunpack.c.l.b16 %v1214_v2 }
  0xbe   : > { %v1321_v11 = vpack.c.b16 %v1296_v62, %v1295_v61  ;;  %v4937_v61 = vld [vmem:[%s5738_s24 + $0x6c] sm:$0xf]  ;;  %v4938_v62 = vld [vmem:[%s5738_s24 + $0x70] sm:$0xf] }
  0xbf   : > { %v2034_v14 = vshrl.u32 %v4937_v61, 16  ;;  %v2043_v16 = vshll.u32 %v4938_v62, 16 }
  0xc0   : > { %4966 = vmatmul.msk.bf16.gmra.mxu0 %vm756_vm4, %v2263_v8  ;;  %v6072_v28 = vpop.f32.mrf.mxu1  ;;  %v1993_v8 = vrot.slane %v1992_v59, 4 }
  0xc1   : > { %4756 = vmatmul.msk.bf16.gmra.mxu1 %vm756_vm4, %v5264_v12  ;;  %v2010_v12 = vshrl.u32 %v4934_v4, 16  ;;  %v2036_v35 = vrot.slane %v2034_v14, 4  ;;  %v4941_v14 = vld [vmem:[%s5738_s24 + $0x7c] sm:$0xf] }
  0xc2   : > { %v1998_v23 = vsel %vm5750_vm3, %v1993_v8, %v1997_v51  ;;  %v2029_v51 = vshll.u32 %v4936_v40, 16 }
  0xc3   : > { %v6075_v22 = vpop.f32.mrf.mxu2  ;;  %v2012_v29 = vrot.slane %v2010_v12, 4 }
  0xc4   : > { %v2031_v20 = vrot.slane %v2029_v51, 5 }
  0xc5   : > { %v2016_v46 = vor.u32 %v2015_v30, %v2012_v29  ;;  %v5282_v30 = vld [vmem:[%s5738_s24 + $0x60] sm:$0xff] }
  0xc6   : > { %4789 = vmatmul.msk.bf16.gmra.mxu2 %vm756_vm4, %v1320_v19  ;;  %v1125_v19 = vld [vmem:[%s5738_s24 + $0x54] sm:$0xe]  ;;  %v2032_v25 = vsel %vm5750_vm3, %v2027_v60, %v2031_v20 }
  0xc7   : > { %v6085_v38 = vpop.f32.mrf.mxu0  ;;  %v4774_v21 = vrot.slane %v1125_v19, 9  ;;  %v2017_v59 = vrot.slane %v2016_v46, 4  ;;  %v2047_v19 = vshrl.u32 %v4938_v62, 16  ;;  %v4939_v46 = vld [vmem:[%s5738_s24 + $0x74] sm:$0x1] }
  0xc8   : > { %v6089_v39 = vpop.f32.mrf.mxu3 }
  0xc9   : > { %v1221_v50 = vsel %vm5924_vm7, %v4774_v21, %v1220_v15  ;;  %v2022_v8 = vsel %vm5750_vm3, %v2017_v59, %v2021_v31  ;;  %v2037_v15 = vshll.u32 %v4937_v61, 16  ;;  %v4775_v21 = vrot.slane %v1126_v13, 9  ;;  %v4940_v13 = vld [vmem:[%s5738_s24 + $0x78] sm:$0xf] }
  0xca   : > { %v6092_v53 = vpop.f32.mrf.mxu1  ;;  %v1297_v56 = vunpack.c.l.b16 %v1221_v50  ;;  %v2241_v31 = vunpack.c.l.b16 %v2022_v8 }
  0xcb   : > { %4902 = vmatmul.msk.bf16.gmra.mxu3 %vm756_vm4, %v5280_v1  ;;  %v6096_v55 = vpop.f32.mrf.mxu2  ;;  %v2239_v1 = vunpack.c.l.b16 %v1998_v23  ;;  %v5502_v23 = vld [vmem:[%s5738_s24 + $0x68] sm:$0x1]  ;;  %v2039_v42 = vrot.slane %v2037_v15, 5  ;;  %v5503_v15 = vld [vmem:[%s5738_s24 + $0x70] sm:$0xf] }
  0xcc   : > { %v1230_v24 = vrot.slane %v5502_v23, 5  ;;  %v1127_v23 = vld [vmem:[%s5738_s24 + $0x6c] sm:$0xe] }
  0xcd   : > { %v2265_v52 = vpack.c.b16 %v2240_v47, %v2239_v1  ;;  %v2045_v1 = vrot.slane %v2043_v16, 5  ;;  %v2049_v47 = vrot.slane %v2047_v19, 4  ;;  %v2040_v51 = vor.u32 %v2039_v42, %v2036_v35  ;;  %v5504_v42 = vld [vmem:[%s5738_s24 + $0x74] sm:$0x1] }
  0xce   : > { %v1234_v16 = vrot.slane %v5503_v15, 5 }
  0xcf   : > { %v6103_v3 = vpop.f32.mrf.mxu0 }
  0xd0   : > { %4967 = vmatmul.msk.bf16.gmra.mxu0 %vm756_vm4, %v2264_v57  ;;  %v6108_v6 = vpop.f32.mrf.mxu3  ;;  %v1298_v57 = vunpack.c.l.b16 %v1224_v48 }
  0xd1   : > { %4757 = vmatmul.msk.bf16.gmra.mxu1 %vm756_vm4, %v5265_v43 }
  0xd2   : > { %v6112_v17 = vpop.f32.mrf.mxu1  ;;  %v1322_v4 = vpack.c.b16 %v1298_v57, %v1297_v56  ;;  %v5267_v57 = vld [vmem:[%s5738_s24 + $0x60] sm:$0xff] }
  0xd6   : > { %v6119_v26 = vpop.f32.mrf.mxu2  ;;  %4790 = vmatmul.msk.bf16.gmra.mxu2 %vm756_vm4, %v1321_v11  ;;  %v1227_v11 = vrot.slane %v5501_v10, 5 }
  0xd8   : > { %v1229_v32 = vrot.slane %v1227_v11, 4  ;;  %v1228_v50 = vsel %vm5924_vm7, %v4775_v21, %v1227_v11  ;;  %v2071_v21 = vshrl.u32 %v4941_v14, 16 }
  0xd9   : > { %v6125_v44 = vpop.f32.mrf.mxu0  ;;  %v1299_v20 = vunpack.c.l.b16 %v1228_v50  ;;  %v4776_v50 = vrot.slane %v1127_v23, 9 }
  0xda   : > { %v6127_v45 = vpop.f32.mrf.mxu3  ;;  %v1231_v48 = vsel %vm5924_vm7, %v1229_v32, %v1230_v24 }
  0xdb   : > { %4903 = vmatmul.msk.bf16.gmra.mxu3 %vm756_vm4, %v5281_v33  ;;  %v2242_v33 = vunpack.c.l.b16 %v2032_v25  ;;  %v1300_v61 = vunpack.c.l.b16 %v1231_v48  ;;  %v1236_v48 = vrot.slane %v1234_v16, 4 }
  0xdd   : > { %v2266_v27 = vpack.c.b16 %v2242_v33, %v2241_v31  ;;  %v1323_v11 = vpack.c.b16 %v1300_v61, %v1299_v20  ;;  %v2061_v31 = vshll.u32 %v4940_v13, 16  ;;  %v2067_v33 = vshll.u32 %v4941_v14, 16 }
  0xde   : > { %v6135_v2 = vpop.f32.mrf.mxu1  ;;  %v6137_v43 = vpop.f32.mrf.mxu2  ;;  %v2073_v20 = vrot.slane %v2071_v21, 4 }
  0xe0   : > { %4968 = vmatmul.msk.bf16.gmra.mxu0 %vm756_vm4, %v2265_v52  ;;  %v2050_v52 = vor.u32 %v2049_v47, %v2045_v1  ;;  %v1237_v47 = vrot.slane %v5504_v42, 5 }
  0xe1   : > { %4758 = vmatmul.msk.bf16.gmra.mxu1 %vm756_vm4, %v5266_v54  ;;  %v6143_v5 = vpop.f32.mrf.mxu0  ;;  %v2053_v54 = vshll.u32 %v4939_v46, 16  ;;  %v5283_v46 = vld [vmem:[%s5738_s24 + $0x6c] sm:$0xff] }
  0xe2   : > { %v6150_v12 = vpop.f32.mrf.mxu3  ;;  %v2051_v8 = vrot.slane %v2050_v52, 4 }
  0xe3   : > { %v2055_v25 = vrot.slane %v2053_v54, 5 }
  0xe6   : > { %4791 = vmatmul.msk.bf16.gmra.mxu2 %vm756_vm4, %v1322_v4  ;;  %v6155_v29 = vpop.f32.mrf.mxu1  ;;  %v2041_v4 = vrot.slane %v2040_v51, 4 }
  0xe8   : > { %v2046_v19 = vsel %vm5750_vm3, %v2041_v4, %v2045_v1  ;;  %v4942_v4 = vld [vmem:[%s5738_s24 + $0x80] sm:$0x1] }
  0xe9   : > { %v6158_v40 = vpop.f32.mrf.mxu2 }
  0xeb   : > { %4904 = vmatmul.msk.bf16.gmra.mxu3 %vm756_vm4, %v5282_v30  ;;  %v2058_v30 = vshrl.u32 %v4940_v13, 16  ;;  %v5268_v13 = vld [vmem:[%s5738_s24 + $0x6c] sm:$0xff] }
  0xed   : > { %v6166_v56 = vpop.f32.mrf.mxu0  ;;  %v2060_v54 = vrot.slane %v2058_v30, 4 }
  0xee   : > { %v6169_v59 = vpop.f32.mrf.mxu3  ;;  %v1038_v60 = vpop.f32.mrf.mxu1 }
  0xef   : > { %v1039_v62 = vadd.f32 %v1038_v60, %v6043_v41  ;;  %v2056_v41 = vsel %vm5750_vm3, %v2051_v8, %v2055_v25  ;;  %v2069_v60 = vrot.slane %v2067_v33, 5  ;;  %v1235_v8 = vsel %vm5924_vm7, %v4776_v50, %v1234_v16 }
  0xf0   : > { %4969 = vmatmul.msk.bf16.gmra.mxu0 %vm756_vm4, %v2266_v27  ;;  %v2243_v27 = vunpack.c.l.b16 %v2046_v19  ;;  %v2244_v51 = vunpack.c.l.b16 %v2056_v41  ;;  %v2077_v19 = vshll.u32 %v4942_v4, 16 }
  0xf1   : > { %v6173_v10 = vpop.f32.mrf.mxu2  ;;  %4759 = vmatmul.msk.bf16.gmra.mxu1 %vm756_vm4, %v5267_v57  ;;  %v2063_v57 = vrot.slane %v2061_v31, 5  ;;  %v2074_v15 = vor.u32 %v2073_v20, %v2069_v60 }
  0xf2   : > { %v2267_v25 = vpack.c.b16 %v2244_v51, %v2243_v27  ;;  %v2079_v42 = vrot.slane %v2077_v19, 5  ;;  %v4944_v27 = vld [vmem:[%s5738_s24 + $0x88] sm:$0xf]  ;;  %v5505_v51 = vld [vmem:[%s5738_s24 + $0x7c] sm:$0xf] }
  0xf3   : > { %v2064_v14 = vor.u32 %v2063_v57, %v2060_v54  ;;  %v1128_v54 = vld [vmem:[%s5738_s24 + $0x78] sm:$0xe] }
  0xf5   : > { %v6184_v24 = vpop.f32.mrf.mxu0  ;;  %v2065_v21 = vrot.slane %v2064_v14, 4 }
  0xf6   : > { %v6186_v32 = vpop.f32.mrf.mxu3  ;;  %4792 = vmatmul.msk.bf16.gmra.mxu2 %vm756_vm4, %v1323_v11  ;;  %v1040_v35 = vpop.f32.mrf.mxu1 }
  0xf7   : > { %v1041_v1 = vadd.f32 %v1040_v35, %v6066_v9  ;;  %v1238_v9 = vsel %vm5924_vm7, %v1236_v48, %v1237_v47  ;;  %v2075_v35 = vrot.slane %v2074_v15, 4  ;;  %v4943_v47 = vld [vmem:[%s5738_s24 + $0x84] sm:$0xf]  ;;  %v5284_v15 = vld [vmem:[%s5738_s24 + $0x78] sm:$0xff] }
  0xf8   : > { %v1302_v30 = vunpack.c.l.b16 %v1238_v9  ;;  %v2085_v57 = vshll.u32 %v4943_v47, 16  ;;  %v2095_v9 = vshrl.u32 %v4944_v27, 16 }
  0xf9   : > { %v1391_v52 = vpop.f32.mrf.mxu2  ;;  %v2080_v4 = vsel %vm5750_vm3, %v2075_v35, %v2079_v42 }
  0xfa   : > { %v1471_v61 = vadd.f32 %v1391_v52, %v1039_v62  ;;  %v1301_v62 = vunpack.c.l.b16 %v1235_v8  ;;  %v1241_v52 = vrot.slane %v5505_v51, 5  ;;  %v2091_v8 = vshll.u32 %v4944_v27, 16 }
  0xfb   : > { %4905 = vmatmul.msk.bf16.gmra.mxu3 %vm756_vm4, %v5283_v46  ;;  %v2097_v35 = vrot.slane %v2095_v9, 4 }
  0xfc   : > { %v1324_v48 = vpack.c.b16 %v1302_v30, %v1301_v62 }
  0xfd   : > { %v2335_v11 = vpop.f32.mrf.mxu0 }
  0xfe   : > { %v1681_v41 = vpop.f32.mrf.mxu3  ;;  %v1043_v23 = vpop.f32.mrf.mxu1 }
  0xff   : > { %v1761_v31 = vadd.f32 %v1681_v41, %v1471_v61  ;;  %v1044_v16 = vadd.f32 %v1043_v23, %v6085_v38  ;;  %v2082_v38 = vshrl.u32 %v4943_v47, 16  ;;  %v2070_v61 = vsel %vm5750_vm3, %v2065_v21, %v2069_v60 }
 0x100   : > { %4970 = vmatmul.msk.bf16.gmra.mxu0 %vm756_vm4, %v2267_v25  ;;  %v5506_v25 = vld [vmem:[%s5738_s24 + $0x80] sm:$0x1]  ;;  %v4777_v41 = vrot.slane %v1128_v54, 9  ;;  %v1243_v23 = vrot.slane %v1241_v52, 4  ;;  %v2245_v62 = vunpack.c.l.b16 %v2070_v61  ;;  %v2246_v60 = vunpack.c.l.b16 %v2080_v4 }
 0x101   : > { %v1393_v33 = vpop.f32.mrf.mxu2  ;;  %4760 = vmatmul.msk.bf16.gmra.mxu1 %vm756_vm4, %v5268_v13  ;;  %v6203_v46 = vadd.f32 %v2335_v11, %v1761_v31  ;;  %v1244_v11 = vrot.slane %v5506_v25, 5  ;;  %v2084_v30 = vrot.slane %v2082_v38, 4  ;;  %v2087_v31 = vrot.slane %v2085_v57, 5  ;;  %v5269_v38 = vld [vmem:[%s5738_s24 + $0x78] sm:$0xff] }
 0x102   : > { %v1472_v50 = vadd.f32 %v1393_v33, %v1041_v1  ;;  %v2093_v21 = vrot.slane %v2091_v8, 5  ;;  %v2268_v27 = vpack.c.b16 %v2246_v60, %v2245_v62  ;;  %v4947_v62 = vld [vmem:[%s5738_s24 + $0x94] sm:$0xf]  ;;  %v5507_v60 = vld [vmem:[%s5738_s24 + $0x88] sm:$0xf] }
 0x103   : > { %v2088_v51 = vor.u32 %v2087_v31, %v2084_v30  ;;  %v1248_v30 = vrot.slane %v5507_v60, 5  ;;  %v1129_v31 = vld [vmem:[%s5738_s24 + $0x84] sm:$0xe] }
 0x104   : > { %v2098_v57 = vor.u32 %v2097_v35, %v2093_v21 }
 0x105   : > { %v2337_v20 = vpop.f32.mrf.mxu0  ;;  %v2089_v25 = vrot.slane %v2088_v51, 4 }
 0x106   : > { %v1683_v1 = vpop.f32.mrf.mxu3  ;;  %4793 = vmatmul.msk.bf16.gmra.mxu2 %vm756_vm4, %v1324_v48  ;;  %v1045_v13 = vpop.f32.mrf.mxu1  ;;  %v4945_v48 = vld [vmem:[%s5738_s24 + $0x8c] sm:$0x1] }
 0x107   : > { %v1762_v14 = vadd.f32 %v1683_v1, %v1472_v50  ;;  %v1046_v19 = vadd.f32 %v1045_v13, %v6103_v3  ;;  %v1242_v50 = vsel %vm5924_vm7, %v4777_v41, %v1241_v52  ;;  %v1245_v3 = vsel %vm5924_vm7, %v1243_v23, %v1244_v11 }
 0x108   : > { %v2101_v61 = vshll.u32 %v4945_v48, 16  ;;  %v1304_v8 = vunpack.c.l.b16 %v1245_v3  ;;  %v2099_v1 = vrot.slane %v2098_v57, 4  ;;  %v2119_v3 = vshrl.u32 %v4947_v62, 16  ;;  %v5285_v57 = vld [vmem:[%s5738_s24 + $0x84] sm:$0xff] }
 0x109   : > { %v1396_v33 = vpop.f32.mrf.mxu2  ;;  %v6216_v42 = vadd.f32 %v2337_v20, %v1762_v14  ;;  %v4946_v14 = vld [vmem:[%s5738_s24 + $0x90] sm:$0xf] }
 0x10a   : > { %v1473_v47 = vadd.f32 %v1396_v33, %v1044_v16  ;;  %v1303_v16 = vunpack.c.l.b16 %v1242_v50  ;;  %v2103_v13 = vrot.slane %v2101_v61, 5  ;;  %v2106_v33 = vshrl.u32 %v4946_v14, 16 }
 0x10b   : > { %4906 = vmatmul.msk.bf16.gmra.mxu3 %vm756_vm4, %v5284_v15  ;;  %v2109_v48 = vshll.u32 %v4946_v14, 16  ;;  %v2115_v50 = vshll.u32 %v4947_v62, 16  ;;  %v4778_v61 = vrot.slane %v1129_v31, 9 }
 0x10c   : > { %v1325_v23 = vpack.c.b16 %v1304_v8, %v1303_v16  ;;  %v2108_v8 = vrot.slane %v2106_v33, 4 }
 0x10d   : > { %v2340_v54 = vpop.f32.mrf.mxu0 }
 0x10e   : > { %v1686_v4 = vpop.f32.mrf.mxu3  ;;  %v1048_v20 = vpop.f32.mrf.mxu1 }
 0x10f   : > { %v1763_v9 = vadd.f32 %v1686_v4, %v1473_v47  ;;  %v1049_v52 = vadd.f32 %v1048_v20, %v6125_v44  ;;  %v2094_v44 = vsel %vm5750_vm3, %v2089_v25, %v2093_v21  ;;  %v2104_v47 = vsel %vm5750_vm3, %v2099_v1, %v2103_v13 }
 0x110   : > { %4971 = vmatmul.msk.bf16.gmra.mxu0 %vm756_vm4, %v2268_v27  ;;  %v5508_v27 = vld [vmem:[%s5738_s24 + $0x8c] sm:$0x1]  ;;  %v1250_v4 = vrot.slane %v1248_v30, 4  ;;  %v2247_v20 = vunpack.c.l.b16 %v2094_v44  ;;  %v2248_v16 = vunpack.c.l.b16 %v2104_v47  ;;  %v2111_v25 = vrot.slane %v2109_v48, 5  ;;  %v5270_v44 = vld [vmem:[%s5738_s24 + $0x84] sm:$0xff] }
 0x111   : > { %v1398_v11 = vpop.f32.mrf.mxu2  ;;  %4761 = vmatmul.msk.bf16.gmra.mxu1 %vm756_vm4, %v5269_v38  ;;  %v6229_v15 = vadd.f32 %v2340_v54, %v1763_v9  ;;  %v1251_v51 = vrot.slane %v5508_v27, 5  ;;  %v2121_v1 = vrot.slane %v2119_v3, 4 }
 0x112   : > { %v1474_v41 = vadd.f32 %v1398_v11, %v1046_v19  ;;  %v2117_v11 = vrot.slane %v2115_v50, 5  ;;  %v2269_v62 = vpack.c.b16 %v2248_v16, %v2247_v20  ;;  %v2112_v31 = vor.u32 %v2111_v25, %v2108_v8  ;;  %v4950_v20 = vld [vmem:[%s5738_s24 + $0xa0] sm:$0xf]  ;;  %v1130_v25 = vld [vmem:[%s5738_s24 + $0x90] sm:$0xe] }
 0x114   : > { %v2122_v33 = vor.u32 %v2121_v1, %v2117_v11 }
 0x115   : > { %v2342_v35 = vpop.f32.mrf.mxu0 }
 0x116   : > { %v1688_v19 = vpop.f32.mrf.mxu3  ;;  %4794 = vmatmul.msk.bf16.gmra.mxu2 %vm756_vm4, %v1325_v23  ;;  %v1050_v54 = vpop.f32.mrf.mxu1  ;;  %v4948_v23 = vld [vmem:[%s5738_s24 + $0x98] sm:$0x1] }
 0x117   : > { %v1764_v38 = vadd.f32 %v1688_v19, %v1474_v41  ;;  %v1051_v21 = vadd.f32 %v1050_v54, %v6143_v5  ;;  %v1249_v5 = vsel %vm5924_vm7, %v4778_v61, %v1248_v30  ;;  %v1252_v41 = vsel %vm5924_vm7, %v1250_v4, %v1251_v51  ;;  %v4949_v30 = vld [vmem:[%s5738_s24 + $0x9c] sm:$0xf] }
 0x118   : > { %v2125_v47 = vshll.u32 %v4948_v23, 16  ;;  %v1306_v50 = vunpack.c.l.b16 %v1252_v41  ;;  %v2113_v19 = vrot.slane %v2112_v31, 4  ;;  %v2123_v54 = vrot.slane %v2122_v33, 4 }
 0x119   : > { %v1401_v9 = vpop.f32.mrf.mxu2  ;;  %v6242_v13 = vadd.f32 %v2342_v35, %v1764_v38  ;;  %v2130_v16 = vshrl.u32 %v4949_v30, 16  ;;  %v2133_v8 = vshll.u32 %v4949_v30, 16  ;;  %v2143_v41 = vshrl.u32 %v4950_v20, 16 }
 0x11a   : > { %v1475_v14 = vadd.f32 %v1401_v9, %v1049_v52  ;;  %v1305_v52 = vunpack.c.l.b16 %v1249_v5  ;;  %v2127_v38 = vrot.slane %v2125_v47, 5  ;;  %v5509_v9 = vld [vmem:[%s5738_s24 + $0x94] sm:$0xf]  ;;  %v2139_v5 = vshll.u32 %v4950_v20, 16 }
 0x11b   : > { %4907 = vmatmul.msk.bf16.gmra.mxu3 %vm756_vm4, %v5285_v57  ;;  %v2132_v31 = vrot.slane %v2130_v16, 4  ;;  %v2135_v33 = vrot.slane %v2133_v8, 5 }
 0x11c   : > { %v1326_v4 = vpack.c.b16 %v1306_v50, %v1305_v52  ;;  %v2128_v23 = vsel %vm5750_vm3, %v2123_v54, %v2127_v38  ;;  %v4779_v52 = vrot.slane %v1130_v25, 9 }
 0x11d   : > { %v2345_v60 = vpop.f32.mrf.mxu0  ;;  %v2136_v20 = vor.u32 %v2135_v33, %v2132_v31  ;;  %v4953_v31 = vld [vmem:[%s5738_s24 + $0xac] sm:$0xf] }
 0x11e   : > { %v1691_v48 = vpop.f32.mrf.mxu3  ;;  %v1053_v35 = vpop.f32.mrf.mxu1 }
 0x11f   : > { %v1765_v3 = vadd.f32 %v1691_v48, %v1475_v14  ;;  %v1054_v27 = vadd.f32 %v1053_v35, %v6166_v56  ;;  %v1255_v56 = vrot.slane %v5509_v9, 5  ;;  %v2118_v14 = vsel %vm5750_vm3, %v2113_v19, %v2117_v11  ;;  %v5286_v48 = vld [vmem:[%s5738_s24 + $0x90] sm:$0xff] }
 0x120   : > { %4972 = vmatmul.msk.bf16.gmra.mxu0 %vm756_vm4, %v2269_v62  ;;  %v5510_v62 = vld [vmem:[%s5738_s24 + $0x98] sm:$0x1]  ;;  %v2249_v50 = vunpack.c.l.b16 %v2118_v14  ;;  %v2145_v19 = vrot.slane %v2143_v41, 4  ;;  %v5271_v9 = vld [vmem:[%s5738_s24 + $0x90] sm:$0xff] }
 0x121   : > { %v1403_v51 = vpop.f32.mrf.mxu2  ;;  %4762 = vmatmul.msk.bf16.gmra.mxu1 %vm756_vm4, %v5270_v44  ;;  %v6255_v57 = vadd.f32 %v2345_v60, %v1765_v3  ;;  %v1258_v60 = vrot.slane %v5510_v62, 5  ;;  %v1257_v11 = vrot.slane %v1255_v56, 4  ;;  %v2250_v3 = vunpack.c.l.b16 %v2128_v23 }
 0x122   : > { %v1476_v61 = vadd.f32 %v1403_v51, %v1051_v21  ;;  %v2141_v51 = vrot.slane %v2139_v5, 5  ;;  %v2137_v62 = vrot.slane %v2136_v20, 4  ;;  %v5512_v20 = vld [vmem:[%s5738_s24 + $0xa4] sm:$0x1] }
 0x123   : > { %v2270_v16 = vpack.c.b16 %v2250_v3, %v2249_v50  ;;  %v5511_v50 = vld [vmem:[%s5738_s24 + $0xa0] sm:$0xf] }
 0x124   : > { %v2146_v25 = vor.u32 %v2145_v19, %v2141_v51  ;;  %v1262_v3 = vrot.slane %v5511_v50, 5  ;;  %v1131_v19 = vld [vmem:[%s5738_s24 + $0x9c] sm:$0xe] }
 0x125   : > { %v2347_v1 = vpop.f32.mrf.mxu0 }
 0x126   : > { %v1693_v21 = vpop.f32.mrf.mxu3  ;;  %4795 = vmatmul.msk.bf16.gmra.mxu2 %vm756_vm4, %v1326_v4  ;;  %v1055_v44 = vpop.f32.mrf.mxu1  ;;  %v4951_v4 = vld [vmem:[%s5738_s24 + $0xa4] sm:$0x1] }
 0x127   : > { %v1766_v47 = vadd.f32 %v1693_v21, %v1476_v61  ;;  %v1056_v35 = vadd.f32 %v1055_v44, %v6184_v24  ;;  %v1256_v61 = vsel %vm5924_vm7, %v4779_v52, %v1255_v56  ;;  %v1259_v24 = vsel %vm5924_vm7, %v1257_v11, %v1258_v60  ;;  %v4952_v21 = vld [vmem:[%s5738_s24 + $0xa8] sm:$0xf] }
 0x128   : > { %v2149_v14 = vshll.u32 %v4951_v4, 16  ;;  %v1308_v5 = vunpack.c.l.b16 %v1259_v24  ;;  %v2147_v60 = vrot.slane %v2146_v25, 4  ;;  %v2154_v52 = vshrl.u32 %v4952_v21, 16 }
 0x129   : > { %v1406_v30 = vpop.f32.mrf.mxu2  ;;  %v6268_v54 = vadd.f32 %v2347_v1, %v1766_v47  ;;  %v2142_v11 = vsel %vm5750_vm3, %v2137_v62, %v2141_v51  ;;  %v2167_v4 = vshrl.u32 %v4953_v31, 16 }
 0x12a   : > { %v1477_v38 = vadd.f32 %v1406_v30, %v1054_v27  ;;  %v1307_v27 = vunpack.c.l.b16 %v1256_v61  ;;  %v2151_v44 = vrot.slane %v2149_v14, 5  ;;  %v2157_v30 = vshll.u32 %v4952_v21, 16  ;;  %v5287_v14 = vld [vmem:[%s5738_s24 + $0x9c] sm:$0xff] }
 0x12b   : > { %4908 = vmatmul.msk.bf16.gmra.mxu3 %vm756_vm4, %v5286_v48  ;;  %v2156_v51 = vrot.slane %v2154_v52, 4 }
 0x12c   : > { %v1327_v48 = vpack.c.b16 %v1308_v5, %v1307_v27  ;;  %v2152_v24 = vsel %vm5750_vm3, %v2147_v60, %v2151_v44  ;;  %v1264_v27 = vrot.slane %v1262_v3, 4  ;;  %v2159_v5 = vrot.slane %v2157_v30, 5  ;;  %v4954_v44 = vld [vmem:[%s5738_s24 + $0xb0] sm:$0x1] }
 0x12d   : > { %v2350_v8 = vpop.f32.mrf.mxu0  ;;  %v2252_v62 = vunpack.c.l.b16 %v2152_v24 }
 0x12e   : > { %v1696_v1 = vpop.f32.mrf.mxu3  ;;  %v1058_v23 = vpop.f32.mrf.mxu1  ;;  %v2160_v52 = vor.u32 %v2159_v5, %v2156_v51 }
 0x12f   : > { %v1767_v41 = vadd.f32 %v1696_v1, %v1477_v38  ;;  %v2163_v38 = vshll.u32 %v4953_v31, 16  ;;  %v4780_v1 = vrot.slane %v1131_v19, 9  ;;  %v5272_v19 = vld [vmem:[%s5738_s24 + $0x9c] sm:$0xff] }
 0x130   : > { %4973 = vmatmul.msk.bf16.gmra.mxu0 %vm756_vm4, %v2270_v16  ;;  %v1265_v16 = vrot.slane %v5512_v20, 5 }
 0x131   : > { %v1408_v56 = vpop.f32.mrf.mxu2  ;;  %4763 = vmatmul.msk.bf16.gmra.mxu1 %vm756_vm4, %v5271_v9  ;;  %v6281_v33 = vadd.f32 %v2350_v8, %v1767_v41  ;;  %v2251_v8 = vunpack.c.l.b16 %v2142_v11  ;;  %v1059_v41 = vadd.f32 %v1058_v23, %v6019_v7  ;;  %v2165_v21 = vrot.slane %v2163_v38, 5 }
 0x132   : > { %v1478_v47 = vadd.f32 %v1408_v56, %v1056_v35  ;;  %v2169_v56 = vrot.slane %v2167_v4, 4  ;;  %v2173_v11 = vshll.u32 %v4954_v44, 16 }
 0x133   : > { %v2271_v7 = vpack.c.b16 %v2252_v62, %v2251_v8  ;;  %v4955_v8 = vld [vmem:[%s5738_s24 + $0xb4] sm:$0xf] }
 0x134   : > { %v2170_v23 = vor.u32 %v2169_v56, %v2165_v21  ;;  %v2175_v51 = vrot.slane %v2173_v11, 5  ;;  %v2181_v44 = vshll.u32 %v4955_v8, 16 }
 0x135   : > { %v2352_v61 = vpop.f32.mrf.mxu0 }
 0x136   : > { %v1698_v35 = vpop.f32.mrf.mxu3  ;;  %4796 = vmatmul.msk.bf16.gmra.mxu2 %vm756_vm4, %v1327_v48  ;;  %v1060_v9 = vpop.f32.mrf.mxu1  ;;  %v1266_v48 = vsel %vm5924_vm7, %v1264_v27, %v1265_v16  ;;  %v2171_v16 = vrot.slane %v2170_v23, 4 }
 0x137   : > { %v1768_v25 = vadd.f32 %v1698_v35, %v1478_v47  ;;  %v1263_v47 = vsel %vm5924_vm7, %v4780_v1, %v1262_v3  ;;  %v1310_v24 = vunpack.c.l.b16 %v1266_v48  ;;  %v2161_v35 = vrot.slane %v2160_v52, 4  ;;  %v5514_v52 = vld [vmem:[%s5738_s24 + $0xb0] sm:$0x1] }
 0x138   : > { %v1061_v3 = vadd.f32 %v1060_v9, %v6035_v34  ;;  %v2178_v34 = vshrl.u32 %v4955_v8, 16  ;;  %v2176_v9 = vsel %vm5750_vm3, %v2171_v16, %v2175_v51 }
 0x139   : > { %v1411_v60 = vpop.f32.mrf.mxu2  ;;  %v6294_v31 = vadd.f32 %v2352_v61, %v1768_v25  ;;  %v1309_v61 = vunpack.c.l.b16 %v1263_v47  ;;  %v2166_v56 = vsel %vm5750_vm3, %v2161_v35, %v2165_v21 }
 0x13a   : > { %v1479_v50 = vadd.f32 %v1411_v60, %v1059_v41  ;;  %v5513_v41 = vld [vmem:[%s5738_s24 + $0xac] sm:$0xf]  ;;  %v1132_v60 = vld [vmem:[%s5738_s24 + $0xa8] sm:$0xe] }
 0x13b   : > { %4909 = vmatmul.msk.bf16.gmra.mxu3 %vm756_vm4, %v5287_v14  ;;  %v4956_v14 = vld [vmem:[%s5738_s24 + $0xb8] sm:$0xf]  ;;  %v1328_v5 = vpack.c.b16 %v1310_v24, %v1309_v61  ;;  %v1269_v62 = vrot.slane %v5513_v41, 5  ;;  %v2253_v61 = vunpack.c.l.b16 %v2166_v56  ;;  %v2254_v24 = vunpack.c.l.b16 %v2176_v9  ;;  %v4957_v41 = vld [vmem:[%s5738_s24 + $0xbc] sm:$0x1] }
 0x13c   : > { %v2191_v47 = vshrl.u32 %v4956_v14, 16 }
 0x13d   : > { %v2355_v30 = vpop.f32.mrf.mxu0 }
 0x13e   : > { %v1701_v38 = vpop.f32.mrf.mxu3  ;;  %v1063_v4 = vpop.f32.mrf.mxu1  ;;  %v2193_v51 = vrot.slane %v2191_v47, 4 }
 0x13f   : > { %v1769_v20 = vadd.f32 %v1701_v38, %v1479_v50  ;;  %v2187_v50 = vshll.u32 %v4956_v14, 16  ;;  %v5288_v38 = vld [vmem:[%s5738_s24 + $0xa8] sm:$0xff]  ;;  %v1064_v35 = vadd.f32 %v1063_v4, %v6055_v58  ;;  %v2272_v58 = vpack.c.b16 %v2254_v24, %v2253_v61 }
 0x140   : > { %4974 = vmatmul.msk.bf16.gmra.mxu0 %vm756_vm4, %v2271_v7  ;;  %v1272_v7 = vrot.slane %v5514_v52, 5 }
 0x141   : > { %v1413_v25 = vpop.f32.mrf.mxu2  ;;  %4764 = vmatmul.msk.bf16.gmra.mxu1 %vm756_vm4, %v5272_v19  ;;  %v6307_v1 = vadd.f32 %v2355_v30, %v1769_v20  ;;  %v4781_v30 = vrot.slane %v1132_v60, 9  ;;  %v1271_v19 = vrot.slane %v1269_v62, 4  ;;  %v2180_v20 = vrot.slane %v2178_v34, 4  ;;  %v5273_v34 = vld [vmem:[%s5738_s24 + $0xa8] sm:$0xff] }
 0x142   : > { %v1480_v27 = vadd.f32 %v1413_v25, %v1061_v3  ;;  %v2183_v3 = vrot.slane %v2181_v44, 5  ;;  %v6319_v16 = vrot.slane %v2187_v50, 5  ;;  %v2197_v50 = vshll.u32 %v4957_v41, 16 }
 0x144   : > { %v2184_v4 = vor.u32 %v2183_v3, %v2180_v20  ;;  %v2194_v56 = vor.u32 %v2193_v51, %v6319_v16  ;;  %v2199_v20 = vrot.slane %v2197_v50, 5 }
 0x145   : > { %v2357_v48 = vpop.f32.mrf.mxu0 }
 0x146   : > { %v1703_v23 = vpop.f32.mrf.mxu3  ;;  %4797 = vmatmul.msk.bf16.gmra.mxu2 %vm756_vm4, %v1328_v5  ;;  %v1065_v11 = vpop.f32.mrf.mxu1  ;;  %v1270_v5 = vsel %vm5924_vm7, %v4781_v30, %v1269_v62  ;;  %v4958_v62 = vld [vmem:[%s5738_s24 + $0xc0] sm:$0xf]  ;;  %v5515_v30 = vld [vmem:[%s5738_s24 + $0x10] sm:$0xf] }
 0x147   : > { %v1770_v21 = vadd.f32 %v1703_v23, %v1480_v27  ;;  %v1273_v27 = vsel %vm5924_vm7, %v1271_v19, %v1272_v7  ;;  %v1311_v9 = vunpack.c.l.b16 %v1270_v5  ;;  %v4959_v23 = vld [vmem:[%s5738_s24 + $0xc4] sm:$0xf]  ;;  %v2513_v7 = vrot.slane %v5515_v30, 5 }
 0x148   : > { %v1312_v44 = vunpack.c.l.b16 %v1273_v27  ;;  %v1066_v19 = vadd.f32 %v1065_v11, %v6072_v28  ;;  %v2205_v3 = vshll.u32 %v4958_v62, 16  ;;  %v5516_v27 = vld [vmem:[%s5738_s24 + $0xb8] sm:$0xf]  ;;  %v1133_v11 = vld [vmem:[%s5738_s24 + $0xb4] sm:$0xe] }
 0x149   : > { %v1416_v8 = vpop.f32.mrf.mxu2  ;;  %v6321_v25 = vadd.f32 %v2357_v48, %v1770_v21  ;;  %v2185_v21 = vrot.slane %v2184_v4, 4  ;;  %v1276_v41 = vrot.slane %v5516_v27, 5  ;;  %v2515_v4 = vrot.slane %v2513_v7, 4  ;;  %v5289_v27 = vld [vmem:[%s5738_s24 + $0xb4] sm:$0xff] }
 0x14a   : > { %v1481_v14 = vadd.f32 %v1416_v8, %v1064_v35  ;;  %v1329_v24 = vpack.c.b16 %v1312_v44, %v1311_v9  ;;  %v2202_v35 = vshrl.u32 %v4958_v62, 16  ;;  %v2211_v8 = vshll.u32 %v4959_v23, 16 }
 0x14b   : > { %4910 = vmatmul.msk.bf16.gmra.mxu3 %vm756_vm4, %v5288_v38  ;;  %v2195_v38 = vrot.slane %v2194_v56, 4  ;;  %v5518_v56 = vld [vmem:[%s5738_s24 + $0x14] sm:$0x1]  ;;  %v2190_v9 = vsel %vm5750_vm3, %v2185_v21, %v6319_v16 }
 0x14c   : > { %v2204_v62 = vrot.slane %v2202_v35, 4  ;;  %v2255_v21 = vunpack.c.l.b16 %v2190_v9 }
 0x14d   : > { %v2360_v60 = vpop.f32.mrf.mxu0  ;;  %v2200_v44 = vsel %vm5750_vm3, %v2195_v38, %v2199_v20 }
 0x14e   : > { %v1706_v47 = vpop.f32.mrf.mxu3  ;;  %v1068_v48 = vpop.f32.mrf.mxu1  ;;  %v2256_v38 = vunpack.c.l.b16 %v2200_v44 }
 0x14f   : > { %v1771_v52 = vadd.f32 %v1706_v47, %v1481_v14  ;;  %v2215_v14 = vshrl.u32 %v4959_v23, 16  ;;  %v2516_v47 = vrot.slane %v5518_v56, 5  ;;  %v6349_v23 = vrot.slane %v2211_v8, 5 }
 0x150   : > { %4975 = vmatmul.msk.bf16.gmra.mxu0 %vm756_vm4, %v2272_v58  ;;  %v5517_v58 = vld [vmem:[%s5738_s24 + $0xbc] sm:$0x1]  ;;  %v1278_v56 = vrot.slane %v1276_v41, 4  ;;  %v1069_v16 = vadd.f32 %v1068_v48, %v6092_v53 }
 0x151   : > { %v1418_v61 = vpop.f32.mrf.mxu2  ;;  %4765 = vmatmul.msk.bf16.gmra.mxu1 %vm756_vm4, %v5273_v34  ;;  %v6337_v5 = vadd.f32 %v2360_v60, %v1771_v52  ;;  %v1279_v28 = vrot.slane %v5517_v58, 5  ;;  %v2207_v52 = vrot.slane %v2205_v3, 5  ;;  %v2217_v30 = vrot.slane %v2215_v14, 4 }
 0x152   : > { %v1482_v51 = vadd.f32 %v1418_v61, %v1066_v19  ;;  %v4978_v19 = vld [vmem:[%s5738_s24 + $0xc] sm:$0xe]  ;;  %v4782_v58 = vrot.slane %v1133_v11, 9  ;;  %v2517_v3 = vsel %vm5924_vm7, %v2515_v4, %v2516_v47  ;;  %v5140_v4 = vld [vmem:[%s5738_s24 + $0x18] sm:$0xf] }
 0x153   : > { %7262 = vst [vmem:[#allocation5_spill] sm:$0xff] %v6337_v5  ;;  %v4994_v5 = vrot.slane %v4978_v19, 9  ;;  %v2208_v8 = vor.u32 %v2207_v52, %v2204_v62  ;;  %v2626_v11 = vunpack.c.l.b16 %v2517_v3  ;;  %v1280_v48 = vsel %vm5924_vm7, %v1278_v56, %v1279_v28  ;;  %v5274_v62 = vld [vmem:[%s5738_s24 + $0xb4] sm:$0xff]  ;;  %v6372_v52 = vld [vmem:[%s5738_s24 + $0x1c] sm:$0xf] }
 0x154   : > { %v1277_v53 = vsel %vm5924_vm7, %v4782_v58, %v1276_v41  ;;  %v2218_v9 = vor.u32 %v2217_v30, %v6349_v23  ;;  %v1314_v41 = vunpack.c.l.b16 %v1280_v48  ;;  %v3184_v56 = vshrl.u32 %v5140_v4, 16 }
 0x155   : > { %v2362_v34 = vpop.f32.mrf.mxu0  ;;  %v2514_v35 = vsel %vm5924_vm7, %v4994_v5, %v2513_v7  ;;  %v2273_v7 = vpack.c.b16 %v2256_v38, %v2255_v21  ;;  %v2209_v58 = vrot.slane %v2208_v8, 4  ;;  %v3187_v30 = vshll.u32 %v5140_v4, 16 }
 0x156   : > { %v1708_v60 = vpop.f32.mrf.mxu3  ;;  %4798 = vmatmul.msk.bf16.gmra.mxu2 %vm756_vm4, %v1329_v24  ;;  %v1070_v50 = vpop.f32.mrf.mxu1  ;;  %v4960_v24 = vld [vmem:[%s5738_s24 + $0xc8] sm:$0x1]  ;;  %v2625_v14 = vunpack.c.l.b16 %v2514_v35  ;;  %v2219_v28 = vrot.slane %v2218_v9, 4  ;;  %v3197_v38 = vshrl.u32 %v6372_v52, 16  ;;  %v3186_v8 = vrot.slane %v3184_v56, 4 }
 0x157   : > { %v1772_v61 = vadd.f32 %v1708_v60, %v1482_v51  ;;  %v2221_v5 = vshll.u32 %v4960_v24, 16  ;;  %v1071_v21 = vadd.f32 %v1070_v50, %v6112_v17  ;;  %v2214_v17 = vsel %vm5750_vm3, %v2209_v58, %v6349_v23  ;;  %v5142_v9 = vld [vmem:[%s5738_s24 + $0x20] sm:$0x1]  ;;  %v5143_v56 = vld [vmem:[%s5738_s24 + $0x24] sm:$0xf] }
 0x158   : > { %v6365_v44 = vpack.c.b16 %v2626_v11, %v2625_v14  ;;  %v3189_v14 = vrot.slane %v3187_v30, 5  ;;  %v3203_v58 = vshll.u32 %v5142_v9, 16  ;;  %v6392_v30 = vld [vmem:[%s5738_s24 + $0x28] sm:$0xf] }
 0x159   : > { %v1421_v20 = vpop.f32.mrf.mxu2  ;;  %v6368_v47 = vadd.f32 %v2362_v34, %v1772_v61  ;;  %v2223_v34 = vrot.slane %v2221_v5, 5  ;;  %v3193_v61 = vshll.u32 %v6372_v52, 16 }
 0x15a   : > { %v1483_v51 = vadd.f32 %v1421_v20, %v1069_v16  ;;  %v1313_v16 = vunpack.c.l.b16 %v1277_v53  ;;  %v3199_v53 = vrot.slane %v3197_v38, 4  ;;  %v3205_v38 = vrot.slane %v3203_v58, 5 }
 0x15b   : > { %4911 = vmatmul.msk.bf16.gmra.mxu3 %vm756_vm4, %v5289_v27  ;;  %v2224_v50 = vsel %vm5750_vm3, %v2219_v28, %v2223_v34  ;;  %v3195_v11 = vrot.slane %v3193_v61, 5 }
 0x15c   : > { %v1330_v3 = vpack.c.b16 %v1314_v41, %v1313_v16  ;;  %v3190_v16 = vor.u32 %v3189_v14, %v3186_v8  ;;  %v3211_v8 = vshll.u32 %v5143_v56, 16  ;;  %v3217_v14 = vshll.u32 %v6392_v30, 16 }
 0x15d   : > { %v2365_v60 = vpop.f32.mrf.mxu0  ;;  %v3200_v41 = vor.u32 %v3199_v53, %v3195_v11 }
 0x15e   : > { %v1711_v19 = vpop.f32.mrf.mxu3  ;;  %v1073_v27 = vpop.f32.mrf.mxu1  ;;  %v3191_v34 = vrot.slane %v3190_v16, 4 }
 0x15f   : > { %v1773_v20 = vadd.f32 %v1711_v19, %v1483_v51  ;;  %v2258_v19 = vunpack.c.l.b16 %v2224_v50  ;;  %v1074_v23 = vadd.f32 %v1073_v27, %v6135_v2  ;;  %v3201_v61 = vrot.slane %v3200_v41, 4 }
 0x160   : > { %4976 = vmatmul.msk.bf16.gmra.mxu0 %vm756_vm4, %v2273_v7 }
 0x161   : > { %v1423_v24 = vpop.f32.mrf.mxu2  ;;  %4766 = vmatmul.msk.bf16.gmra.mxu1 %vm756_vm4, %v5274_v62  ;;  %v6379_v51 = vadd.f32 %v2365_v60, %v1773_v20  ;;  %v5290_v60 = vld [vmem:[%s5738_s24 + $0xc0] sm:$0xff]  ;;  %v2257_v62 = vunpack.c.l.b16 %v2214_v17  ;;  %v3221_v17 = vshrl.u32 %v6392_v30, 16  ;;  %v3206_v41 = vsel %vm5750_vm3, %v3201_v61, %v3205_v38  ;;  %v6418_v38 = vld [vmem:[%s5738_s24 + $0x2c] sm:$0x1] }
 0x162   : > { %v1484_v35 = vadd.f32 %v1423_v24, %v1071_v21  ;;  %v5205_v24 = vld [vmem:[%s5738_s24 + $0x18] sm:$0xe]  ;;  %v3570_v61 = vunpack.c.l.b16 %v3206_v41 }
 0x163   : > { %v2274_v21 = vpack.c.b16 %v2258_v19, %v2257_v62  ;;  %v5520_v62 = vld [vmem:[%s5738_s24 + $0x20] sm:$0x1] }
 0x164   : > { %v2523_v19 = vrot.slane %v5520_v62, 5 }
 0x165   : > { %v2367_v48 = vpop.f32.mrf.mxu0 }
 0x166   : > { %v1713_v7 = vpop.f32.mrf.mxu3  ;;  %4799 = vmatmul.msk.bf16.gmra.mxu2 %vm756_vm4, %v1330_v3  ;;  %v1075_v5 = vpop.f32.mrf.mxu1  ;;  %v3208_v3 = vshrl.u32 %v5143_v56, 16 }
 0x167   : > { %v1774_v4 = vadd.f32 %v1713_v7, %v1484_v35  ;;  %v3855_v35 = vrot.slane %v6372_v52, 5  ;;  %v5519_v7 = vld [vmem:[%s5738_s24 + $0x1c] sm:$0xf]  ;;  %v3196_v52 = vsel %vm5750_vm3, %v3191_v34, %v3195_v11  ;;  %v3223_v11 = vrot.slane %v3221_v17, 4 }
 0x169   : > { %v1426_v20 = vpop.f32.mrf.mxu2  ;;  %v6397_v2 = vadd.f32 %v2367_v48, %v1774_v4  ;;  %v5221_v48 = vrot.slane %v5205_v24, 9  ;;  %v4979_v4 = vld [vmem:[%s5738_s24 + $0x18] sm:$0xe]  ;;  %v3857_v58 = vrot.slane %v3855_v35, 4 }
 0x16a   : > { %v1485_v28 = vadd.f32 %v1426_v20, %v1074_v23  ;;  %v1076_v23 = vadd.f32 %v1075_v5, %v6155_v29  ;;  %v3858_v20 = vrot.slane %v5142_v9, 5  ;;  %v5291_v24 = vld [vmem:[%s5738_s24 + $0x18] sm:$0xff]  ;;  %v3569_v5 = vunpack.c.l.b16 %v3196_v52 }
 0x16b   : > { %4912 = vmatmul.msk.bf16.gmra.mxu3 %vm756_vm4, %v5290_v60  ;;  %7263 = vst [vmem:[#allocation6_spill] sm:$0xff] %v6397_v2  ;;  %v2520_v60 = vrot.slane %v5519_v7, 5  ;;  %v6412_v7 = vrot.slane %v3217_v14, 5  ;;  %v3856_v2 = vsel %vm5924_vm7, %v5221_v48, %v3855_v35  ;;  %v3227_v35 = vshll.u32 %v6418_v38, 16 }
 0x16c   : > { %v3601_v48 = vpack.c.b16 %v3570_v61, %v3569_v5  ;;  %v5521_v5 = vld [vmem:[%s5738_s24 + $0x28] sm:$0xf] }
 0x16d   : > { %v2370_v27 = vpop.f32.mrf.mxu0  ;;  %v2522_v62 = vrot.slane %v2520_v60, 4  ;;  %v2527_v61 = vrot.slane %v5521_v5, 5 }
 0x16e   : > { %v1716_v50 = vpop.f32.mrf.mxu3  ;;  %v1078_v53 = vpop.f32.mrf.mxu1 }
 0x16f   : > { %v1775_v16 = vadd.f32 %v1716_v50, %v1485_v28  ;;  %v3210_v28 = vrot.slane %v3208_v3, 4  ;;  %v3213_v50 = vrot.slane %v3211_v8, 5  ;;  %v2524_v17 = vsel %vm5924_vm7, %v2522_v62, %v2523_v19  ;;  %v6437_v62 = vld [vmem:[%s5738_s24 + $0x34] sm:$0xf] }
 0x170   : > { %4977 = vmatmul.msk.bf16.gmra.mxu0 %vm756_vm4, %v2274_v21  ;;  %v4995_v21 = vrot.slane %v4979_v4, 9  ;;  %v1079_v4 = vadd.f32 %v1078_v53, %v6037_v37 }
 0x171   : > { %v1428_v56 = vpop.f32.mrf.mxu2  ;;  %5011 = vmatmul.msk.bf16.vlgmr.msra.gmra.mxu1 %vm756_vm4, %v6365_v44  ;;  %v6415_v29 = vadd.f32 %v2370_v27, %v1775_v16  ;;  %v3859_v44 = vsel %vm5924_vm7, %v3857_v58, %v3858_v20  ;;  %v3214_v3 = vor.u32 %v3213_v50, %v3210_v28  ;;  %v3224_v16 = vor.u32 %v3223_v11, %v6412_v7  ;;  %v5206_v11 = vld [vmem:[%s5738_s24 + $0x24] sm:$0xe] }
 0x172   : > { %v1486_v34 = vadd.f32 %v1428_v56, %v1076_v23  ;;  %v2521_v27 = vsel %vm5924_vm7, %v4995_v21, %v2520_v60  ;;  %v3967_v23 = vunpack.c.l.b16 %v3856_v2  ;;  %v3968_v41 = vunpack.c.l.b16 %v3859_v44 }
 0x173   : > { %v2627_v20 = vunpack.c.l.b16 %v2521_v27  ;;  %v2628_v60 = vunpack.c.l.b16 %v2524_v17  ;;  %v3215_v28 = vrot.slane %v3214_v3, 4  ;;  %v3225_v19 = vrot.slane %v3224_v16, 4 }
 0x174   : > { %v3229_v50 = vrot.slane %v3227_v35, 5  ;;  %v3862_v21 = vrot.slane %v6392_v30, 5  ;;  %v5222_v17 = vrot.slane %v5206_v11, 9  ;;  %v4980_v30 = vld [vmem:[%s5738_s24 + $0x24] sm:$0xe] }
 0x175   : > { %v2372_v9 = vpop.f32.mrf.mxu0  ;;  %v2658_v53 = vpack.c.b16 %v2628_v60, %v2627_v20 }
 0x176   : > { %v1718_v8 = vpop.f32.mrf.mxu3  ;;  %5124 = vmatmul.msk.bf16.vlgmr.msra.gmra.mxu2 %vm756_vm4, %v5291_v24  ;;  %v1080_v14 = vpop.f32.mrf.mxu1  ;;  %v5146_v24 = vld [vmem:[%s5738_s24 + $0x30] sm:$0xf]  ;;  %v3230_v27 = vsel %vm5750_vm3, %v3225_v19, %v3229_v50  ;;  %v5292_v50 = vld [vmem:[%s5738_s24 + $0x24] sm:$0xff] }
 0x177   : > { %v1776_v52 = vadd.f32 %v1718_v8, %v1486_v34  ;;  %v3999_v34 = vpack.c.b16 %v3968_v41, %v3967_v23  ;;  %v3220_v8 = vsel %vm5750_vm3, %v3215_v28, %v6412_v7  ;;  %v3232_v16 = vshrl.u32 %v5146_v24, 16  ;;  %v5522_v41 = vld [vmem:[%s5738_s24 + $0x2c] sm:$0x1] }
 0x178   : > { %v3864_v23 = vrot.slane %v3862_v21, 4  ;;  %v3865_v7 = vrot.slane %v6418_v38, 5  ;;  %v3571_v60 = vunpack.c.l.b16 %v3220_v8  ;;  %v2529_v28 = vrot.slane %v2527_v61, 4 }
 0x179   : > { %v1431_v58 = vpop.f32.mrf.mxu2  ;;  %v6439_v37 = vadd.f32 %v2372_v9, %v1776_v52  ;;  %v3235_v9 = vshll.u32 %v5146_v24, 16  ;;  %v3241_v52 = vshll.u32 %v6437_v62, 16  ;;  %v3572_v11 = vunpack.c.l.b16 %v3230_v27 }
 0x17a   : > { %v1487_v56 = vadd.f32 %v1431_v58, %v1079_v4  ;;  %v1081_v4 = vadd.f32 %v1080_v14, %v6058_v63  ;;  %v2530_v58 = vrot.slane %v5522_v41, 5  ;;  %v3863_v24 = vsel %vm5924_vm7, %v5222_v17, %v3862_v21 }
 0x17b   : > { %5189 = vmatmul.msk.bf16.vlgmr.msra.gmra.mxu3 %vm756_vm4, %v3601_v48  ;;  %v3245_v48 = vshrl.u32 %v6437_v62, 16  ;;  %v3234_v63 = vrot.slane %v3232_v16, 4  ;;  %v3237_v14 = vrot.slane %v3235_v9, 5  ;;  %v6460_v38 = vrot.slane %v3241_v52, 5 }
 0x17c   : > { %v2531_v27 = vsel %vm5924_vm7, %v2529_v28, %v2530_v58  ;;  %v3969_v17 = vunpack.c.l.b16 %v3863_v24  ;;  %v5207_v24 = vld [vmem:[%s5738_s24 + $0x30] sm:$0xe] }
 0x17d   : > { %v2375_v2 = vpop.f32.mrf.mxu0  ;;  %v3247_v5 = vrot.slane %v3245_v48, 4  ;;  %v3238_v52 = vor.u32 %v3237_v14, %v3234_v63 }
 0x17e   : > { %v1721_v44 = vpop.f32.mrf.mxu3  ;;  %v1083_v3 = vpop.f32.mrf.mxu1 }
 0x17f   : > { %v1777_v35 = vadd.f32 %v1721_v44, %v1487_v56  ;;  %v4996_v56 = vrot.slane %v4980_v30, 9  ;;  %v6469_v30 = vld [vmem:[%s5738_s24 + $0x38] sm:$0x1]  ;;  %v3248_v48 = vor.u32 %v3247_v5, %v6460_v38  ;;  %v3239_v28 = vrot.slane %v3238_v52, 4 }
 0x180   : > { %5238 = vmatmul.msk.bf16.vlgmr.msra.gmra.mxu0 %vm756_vm4, %v3999_v34 }
 0x181   : > { %v1433_v20 = vpop.f32.mrf.mxu2  ;;  %5012 = vmatmul.msk.bf16.gmra.mxu1 %vm756_vm4, %v2658_v53  ;;  %v6458_v34 = vadd.f32 %v2375_v2, %v1777_v35  ;;  %v3866_v53 = vsel %vm5924_vm7, %v3864_v23, %v3865_v7  ;;  %v2528_v8 = vsel %vm5924_vm7, %v4996_v56, %v2527_v61  ;;  %v3602_v2 = vpack.c.b16 %v3572_v11, %v3571_v60  ;;  %v6477_v56 = vld [vmem:[%s5738_s24 + $0x40] sm:$0xf] }
 0x182   : > { %v1488_v19 = vadd.f32 %v1433_v20, %v1081_v4  ;;  %v3970_v9 = vunpack.c.l.b16 %v3866_v53  ;;  %v1084_v61 = vadd.f32 %v1083_v3, %v6075_v22  ;;  %v2629_v4 = vunpack.c.l.b16 %v2528_v8  ;;  %v5149_v20 = vld [vmem:[%s5738_s24 + $0x3c] sm:$0xf] }
 0x183   : > { %v2630_v23 = vunpack.c.l.b16 %v2531_v27  ;;  %v3251_v7 = vshll.u32 %v6469_v30, 16  ;;  %v3869_v22 = vrot.slane %v6437_v62, 5  ;;  %v3256_v14 = vshrl.u32 %v5149_v20, 16 }
 0x184   : > { %v4000_v60 = vpack.c.b16 %v3970_v9, %v3969_v17  ;;  %v3259_v5 = vshll.u32 %v5149_v20, 16  ;;  %v3265_v53 = vshll.u32 %v6477_v56, 16  ;;  %v3269_v8 = vshrl.u32 %v6477_v56, 16  ;;  %v5524_v9 = vld [vmem:[%s5738_s24 + $0x38] sm:$0x1] }
 0x185   : > { %v2377_v44 = vpop.f32.mrf.mxu0  ;;  %v3253_v11 = vrot.slane %v3251_v7, 5  ;;  %v2537_v52 = vrot.slane %v5524_v9, 5  ;;  %v3872_v62 = vrot.slane %v6469_v30, 5  ;;  %v3871_v7 = vrot.slane %v3869_v22, 4  ;;  %v6504_v9 = vld [vmem:[%s5738_s24 + $0x44] sm:$0x1] }
 0x186   : > { %v1723_v21 = vpop.f32.mrf.mxu3  ;;  %5125 = vmatmul.msk.bf16.gmra.mxu2 %vm756_vm4, %v5292_v50  ;;  %v1085_v16 = vpop.f32.mrf.mxu1  ;;  %v2659_v50 = vpack.c.b16 %v2630_v23, %v2629_v4  ;;  %v3244_v4 = vsel %vm5750_vm3, %v3239_v28, %v6460_v38  ;;  %v3261_v20 = vrot.slane %v3259_v5, 5  ;;  %v6498_v30 = vrot.slane %v3265_v53, 5 }
 0x187   : > { %v1778_v35 = vadd.f32 %v1723_v21, %v1488_v19  ;;  %v3249_v19 = vrot.slane %v3248_v48, 4  ;;  %v3573_v38 = vunpack.c.l.b16 %v3244_v4 }
 0x189   : > { %v1436_v41 = vpop.f32.mrf.mxu2  ;;  %v6482_v3 = vadd.f32 %v2377_v44, %v1778_v35  ;;  %v4981_v44 = vld [vmem:[%s5738_s24 + $0x30] sm:$0xe]  ;;  %v1086_v35 = vadd.f32 %v1085_v16, %v6096_v55  ;;  %v3254_v23 = vsel %vm5750_vm3, %v3249_v19, %v3253_v11 }
 0x18a   : > { %v1489_v58 = vadd.f32 %v1436_v41, %v1084_v61  ;;  %v5223_v61 = vrot.slane %v5207_v24, 9  ;;  %v3271_v24 = vrot.slane %v3269_v8, 4  ;;  %v4997_v55 = vrot.slane %v4981_v44, 9 }
 0x18b   : > { %5190 = vmatmul.msk.bf16.gmra.mxu3 %vm756_vm4, %v3602_v2  ;;  %v5523_v2 = vld [vmem:[%s5738_s24 + $0x34] sm:$0xf]  ;;  %v3574_v28 = vunpack.c.l.b16 %v3254_v23 }
 0x18c   : > { %v2534_v17 = vrot.slane %v5523_v2, 5  ;;  %v3870_v11 = vsel %vm5924_vm7, %v5223_v61, %v3869_v22  ;;  %v3275_v22 = vshll.u32 %v6504_v9, 16 }
 0x18d   : > { %v2380_v63 = vpop.f32.mrf.mxu0  ;;  %v3603_v44 = vpack.c.b16 %v3574_v28, %v3573_v38  ;;  %v5525_v28 = vld [vmem:[%s5738_s24 + $0x40] sm:$0xf] }
 0x18e   : > { %v1726_v27 = vpop.f32.mrf.mxu3  ;;  %v1088_v21 = vpop.f32.mrf.mxu1  ;;  %v2536_v16 = vrot.slane %v2534_v17, 4 }
 0x18f   : > { %v1779_v48 = vadd.f32 %v1726_v27, %v1489_v58  ;;  %v3258_v58 = vrot.slane %v3256_v14, 4  ;;  %v5293_v27 = vld [vmem:[%s5738_s24 + $0x30] sm:$0xff] }
 0x190   : > { %5239 = vmatmul.msk.bf16.gmra.mxu0 %vm756_vm4, %v4000_v60  ;;  %v2538_v8 = vsel %vm5924_vm7, %v2536_v16, %v2537_v52  ;;  %v6523_v16 = vld [vmem:[%s5738_s24 + $0x4c] sm:$0xf] }
 0x191   : > { %v1438_v41 = vpop.f32.mrf.mxu2  ;;  %5013 = vmatmul.msk.bf16.gmra.mxu1 %vm756_vm4, %v2659_v50  ;;  %v6501_v2 = vadd.f32 %v2380_v63, %v1779_v48  ;;  %v3873_v50 = vsel %vm5924_vm7, %v3871_v7, %v3872_v62  ;;  %v3262_v14 = vor.u32 %v3261_v20, %v3258_v58  ;;  %v2535_v63 = vsel %vm5924_vm7, %v4997_v55, %v2534_v17 }
 0x192   : > { %v1490_v60 = vadd.f32 %v1438_v41, %v1086_v35  ;;  %v3272_v48 = vor.u32 %v3271_v24, %v6498_v30  ;;  %v1089_v62 = vadd.f32 %v1088_v21, %v6119_v26  ;;  %v3971_v35 = vunpack.c.l.b16 %v3870_v11  ;;  %v5208_v24 = vld [vmem:[%s5738_s24 + $0x3c] sm:$0xe] }
 0x193   : > { %v3972_v4 = vunpack.c.l.b16 %v3873_v50  ;;  %v2631_v7 = vunpack.c.l.b16 %v2535_v63  ;;  %v2632_v17 = vunpack.c.l.b16 %v2538_v8  ;;  %v3263_v58 = vrot.slane %v3262_v14, 4 }
 0x194   : > { %v3273_v52 = vrot.slane %v3272_v48, 4  ;;  %v3277_v20 = vrot.slane %v3275_v22, 5  ;;  %v3876_v55 = vrot.slane %v6477_v56, 5  ;;  %v2541_v11 = vrot.slane %v5525_v28, 5  ;;  %v4982_v56 = vld [vmem:[%s5738_s24 + $0x3c] sm:$0xe] }
 0x195   : > { %v2382_v19 = vpop.f32.mrf.mxu0  ;;  %v2660_v38 = vpack.c.b16 %v2632_v17, %v2631_v7  ;;  %v5224_v8 = vrot.slane %v5208_v24, 9 }
 0x196   : > { %v1728_v5 = vpop.f32.mrf.mxu3  ;;  %5126 = vmatmul.msk.bf16.gmra.mxu2 %vm756_vm4, %v5293_v27  ;;  %v1090_v53 = vpop.f32.mrf.mxu1  ;;  %v5152_v27 = vld [vmem:[%s5738_s24 + $0x48] sm:$0xf]  ;;  %v3278_v63 = vsel %vm5750_vm3, %v3273_v52, %v3277_v20  ;;  %v5294_v20 = vld [vmem:[%s5738_s24 + $0x3c] sm:$0xff] }
 0x197   : > { %v1780_v61 = vadd.f32 %v1728_v5, %v1490_v60  ;;  %v4001_v60 = vpack.c.b16 %v3972_v4, %v3971_v35  ;;  %v3268_v5 = vsel %vm5750_vm3, %v3263_v58, %v6498_v30  ;;  %v3280_v48 = vshrl.u32 %v5152_v27, 16  ;;  %v5526_v4 = vld [vmem:[%s5738_s24 + $0x44] sm:$0x1] }
 0x198   : > { %v3878_v35 = vrot.slane %v3876_v55, 4  ;;  %v3879_v30 = vrot.slane %v6504_v9, 5  ;;  %v3575_v17 = vunpack.c.l.b16 %v3268_v5  ;;  %v2543_v58 = vrot.slane %v2541_v11, 4 }
 0x199   : > { %v1441_v23 = vpop.f32.mrf.mxu2  ;;  %v6525_v26 = vadd.f32 %v2382_v19, %v1780_v61  ;;  %v3283_v19 = vshll.u32 %v5152_v27, 16  ;;  %v3289_v61 = vshll.u32 %v6523_v16, 16  ;;  %v3576_v24 = vunpack.c.l.b16 %v3278_v63 }
 0x19a   : > { %v1491_v41 = vadd.f32 %v1441_v23, %v1089_v62  ;;  %v1091_v62 = vadd.f32 %v1090_v53, %v6137_v43  ;;  %v2544_v23 = vrot.slane %v5526_v4, 5  ;;  %v3877_v27 = vsel %vm5924_vm7, %v5224_v8, %v3876_v55 }
 0x19b   : > { %5191 = vmatmul.msk.bf16.gmra.mxu3 %vm756_vm4, %v3603_v44  ;;  %v3293_v44 = vshrl.u32 %v6523_v16, 16  ;;  %v3282_v43 = vrot.slane %v3280_v48, 4  ;;  %v3285_v53 = vrot.slane %v3283_v19, 5  ;;  %v6546_v9 = vrot.slane %v3289_v61, 5 }
 0x19c   : > { %v2545_v63 = vsel %vm5924_vm7, %v2543_v58, %v2544_v23  ;;  %v3973_v8 = vunpack.c.l.b16 %v3877_v27  ;;  %v5209_v27 = vld [vmem:[%s5738_s24 + $0x48] sm:$0xe] }
 0x19d   : > { %v2385_v21 = vpop.f32.mrf.mxu0  ;;  %v3295_v28 = vrot.slane %v3293_v44, 4  ;;  %v3286_v61 = vor.u32 %v3285_v53, %v3282_v43 }
 0x19e   : > { %v1731_v50 = vpop.f32.mrf.mxu3  ;;  %v1093_v14 = vpop.f32.mrf.mxu1 }
 0x19f   : > { %v1781_v22 = vadd.f32 %v1731_v50, %v1491_v41  ;;  %v4998_v41 = vrot.slane %v4982_v56, 9  ;;  %v6555_v56 = vld [vmem:[%s5738_s24 + $0x50] sm:$0x1]  ;;  %v3296_v44 = vor.u32 %v3295_v28, %v6546_v9  ;;  %v3287_v58 = vrot.slane %v3286_v61, 4 }
 0x1a0   : > { %5240 = vmatmul.msk.bf16.gmra.mxu0 %vm756_vm4, %v4001_v60 }
 0x1a1   : > { %v1443_v7 = vpop.f32.mrf.mxu2  ;;  %5014 = vmatmul.msk.bf16.gmra.mxu1 %vm756_vm4, %v2660_v38  ;;  %v6544_v60 = vadd.f32 %v2385_v21, %v1781_v22  ;;  %v3880_v38 = vsel %vm5924_vm7, %v3878_v35, %v3879_v30  ;;  %v2542_v5 = vsel %vm5924_vm7, %v4998_v41, %v2541_v11  ;;  %v3604_v21 = vpack.c.b16 %v3576_v24, %v3575_v17  ;;  %v6563_v41 = vld [vmem:[%s5738_s24 + $0x58] sm:$0xf] }
 0x1a2   : > { %v1492_v52 = vadd.f32 %v1443_v7, %v1091_v62  ;;  %v3974_v19 = vunpack.c.l.b16 %v3880_v38  ;;  %v1094_v11 = vadd.f32 %v1093_v14, %v6158_v40  ;;  %v2633_v62 = vunpack.c.l.b16 %v2542_v5  ;;  %v5155_v7 = vld [vmem:[%s5738_s24 + $0x54] sm:$0xf] }
 0x1a3   : > { %v2634_v35 = vunpack.c.l.b16 %v2545_v63  ;;  %v3299_v30 = vshll.u32 %v6555_v56, 16  ;;  %v3883_v40 = vrot.slane %v6523_v16, 5  ;;  %v3304_v53 = vshrl.u32 %v5155_v7, 16 }
 0x1a4   : > { %v4002_v17 = vpack.c.b16 %v3974_v19, %v3973_v8  ;;  %v3307_v28 = vshll.u32 %v5155_v7, 16  ;;  %v3313_v38 = vshll.u32 %v6563_v41, 16  ;;  %v3317_v5 = vshrl.u32 %v6563_v41, 16  ;;  %v5528_v19 = vld [vmem:[%s5738_s24 + $0x50] sm:$0x1] }
 0x1a5   : > { %v2387_v50 = vpop.f32.mrf.mxu0  ;;  %v3301_v24 = vrot.slane %v3299_v30, 5  ;;  %v2551_v61 = vrot.slane %v5528_v19, 5  ;;  %v3886_v16 = vrot.slane %v6555_v56, 5  ;;  %v3885_v30 = vrot.slane %v3883_v40, 4  ;;  %v6590_v19 = vld [vmem:[%s5738_s24 + $0x5c] sm:$0x1] }
 0x1a6   : > { %v1733_v55 = vpop.f32.mrf.mxu3  ;;  %5127 = vmatmul.msk.bf16.gmra.mxu2 %vm756_vm4, %v5294_v20  ;;  %v1095_v48 = vpop.f32.mrf.mxu1  ;;  %v2661_v20 = vpack.c.b16 %v2634_v35, %v2633_v62  ;;  %v3292_v62 = vsel %vm5750_vm3, %v3287_v58, %v6546_v9  ;;  %v3309_v7 = vrot.slane %v3307_v28, 5  ;;  %v6584_v56 = vrot.slane %v3313_v38, 5 }
 0x1a7   : > { %v1782_v22 = vadd.f32 %v1733_v55, %v1492_v52  ;;  %v3297_v52 = vrot.slane %v3296_v44, 4  ;;  %v3577_v9 = vunpack.c.l.b16 %v3292_v62 }
 0x1a9   : > { %v1446_v4 = vpop.f32.mrf.mxu2  ;;  %v6568_v14 = vadd.f32 %v2387_v50, %v1782_v22  ;;  %v4983_v50 = vld [vmem:[%s5738_s24 + $0x48] sm:$0xe]  ;;  %v1096_v22 = vadd.f32 %v1095_v48, %v6173_v10  ;;  %v3302_v35 = vsel %vm5750_vm3, %v3297_v52, %v3301_v24 }
 0x1aa   : > { %v1493_v23 = vadd.f32 %v1446_v4, %v1094_v11  ;;  %v5225_v11 = vrot.slane %v5209_v27, 9  ;;  %v3319_v27 = vrot.slane %v3317_v5, 4  ;;  %v4999_v10 = vrot.slane %v4983_v50, 9 }
 0x1ab   : > { %5192 = vmatmul.msk.bf16.gmra.mxu3 %vm756_vm4, %v3604_v21  ;;  %v5527_v21 = vld [vmem:[%s5738_s24 + $0x4c] sm:$0xf]  ;;  %v3578_v58 = vunpack.c.l.b16 %v3302_v35 }
 0x1ac   : > { %v2548_v8 = vrot.slane %v5527_v21, 5  ;;  %v3884_v24 = vsel %vm5924_vm7, %v5225_v11, %v3883_v40  ;;  %v3323_v40 = vshll.u32 %v6590_v19, 16 }
 0x1ad   : > { %v2390_v43 = vpop.f32.mrf.mxu0  ;;  %v3605_v50 = vpack.c.b16 %v3578_v58, %v3577_v9  ;;  %v5529_v58 = vld [vmem:[%s5738_s24 + $0x58] sm:$0xf] }
 0x1ae   : > { %v1736_v63 = vpop.f32.mrf.mxu3  ;;  %v1098_v55 = vpop.f32.mrf.mxu1  ;;  %v2550_v48 = vrot.slane %v2548_v8, 4 }
 0x1af   : > { %v1783_v44 = vadd.f32 %v1736_v63, %v1493_v23  ;;  %v3306_v23 = vrot.slane %v3304_v53, 4  ;;  %v5295_v63 = vld [vmem:[%s5738_s24 + $0x48] sm:$0xff] }
 0x1b0   : > { %5241 = vmatmul.msk.bf16.gmra.mxu0 %vm756_vm4, %v4002_v17  ;;  %v2552_v5 = vsel %vm5924_vm7, %v2550_v48, %v2551_v61  ;;  %v6609_v48 = vld [vmem:[%s5738_s24 + $0x64] sm:$0xf] }
 0x1b1   : > { %v1448_v4 = vpop.f32.mrf.mxu2  ;;  %5015 = vmatmul.msk.bf16.gmra.mxu1 %vm756_vm4, %v2661_v20  ;;  %v6587_v21 = vadd.f32 %v2390_v43, %v1783_v44  ;;  %v3887_v20 = vsel %vm5924_vm7, %v3885_v30, %v3886_v16  ;;  %v3310_v53 = vor.u32 %v3309_v7, %v3306_v23  ;;  %v2549_v43 = vsel %vm5924_vm7, %v4999_v10, %v2548_v8 }
 0x1b2   : > { %v1494_v17 = vadd.f32 %v1448_v4, %v1096_v22  ;;  %v3320_v44 = vor.u32 %v3319_v27, %v6584_v56  ;;  %v1099_v16 = vadd.f32 %v1098_v55, %v6049_v49  ;;  %v3975_v22 = vunpack.c.l.b16 %v3884_v24  ;;  %v5210_v27 = vld [vmem:[%s5738_s24 + $0x54] sm:$0xe] }
 0x1b3   : > { %v3976_v62 = vunpack.c.l.b16 %v3887_v20  ;;  %v2635_v30 = vunpack.c.l.b16 %v2549_v43  ;;  %v2636_v8 = vunpack.c.l.b16 %v2552_v5  ;;  %v3311_v23 = vrot.slane %v3310_v53, 4 }
 0x1b4   : > { %v3321_v61 = vrot.slane %v3320_v44, 4  ;;  %v3325_v7 = vrot.slane %v3323_v40, 5  ;;  %v3890_v10 = vrot.slane %v6563_v41, 5  ;;  %v2555_v24 = vrot.slane %v5529_v58, 5  ;;  %v4984_v41 = vld [vmem:[%s5738_s24 + $0x54] sm:$0xe] }
 0x1b5   : > { %v2392_v52 = vpop.f32.mrf.mxu0  ;;  %v2662_v9 = vpack.c.b16 %v2636_v8, %v2635_v30  ;;  %v5226_v5 = vrot.slane %v5210_v27, 9 }
 0x1b6   : > { %v1738_v28 = vpop.f32.mrf.mxu3  ;;  %5128 = vmatmul.msk.bf16.gmra.mxu2 %vm756_vm4, %v5295_v63  ;;  %v1100_v38 = vpop.f32.mrf.mxu1  ;;  %v5158_v63 = vld [vmem:[%s5738_s24 + $0x60] sm:$0xf]  ;;  %v3326_v43 = vsel %vm5750_vm3, %v3321_v61, %v3325_v7  ;;  %v5296_v7 = vld [vmem:[%s5738_s24 + $0x54] sm:$0xff] }
 0x1b7   : > { %v1784_v11 = vadd.f32 %v1738_v28, %v1494_v17  ;;  %v4003_v17 = vpack.c.b16 %v3976_v62, %v3975_v22  ;;  %v3316_v28 = vsel %vm5750_vm3, %v3311_v23, %v6584_v56  ;;  %v3328_v44 = vshrl.u32 %v5158_v63, 16  ;;  %v5530_v62 = vld [vmem:[%s5738_s24 + $0x5c] sm:$0x1] }
 0x1b8   : > { %v3892_v22 = vrot.slane %v3890_v10, 4  ;;  %v3893_v56 = vrot.slane %v6590_v19, 5  ;;  %v3579_v8 = vunpack.c.l.b16 %v3316_v28  ;;  %v2557_v23 = vrot.slane %v2555_v24, 4 }
 0x1b9   : > { %v1451_v35 = vpop.f32.mrf.mxu2  ;;  %v6611_v49 = vadd.f32 %v2392_v52, %v1784_v11  ;;  %v3331_v52 = vshll.u32 %v5158_v63, 16  ;;  %v3337_v11 = vshll.u32 %v6609_v48, 16  ;;  %v3580_v27 = vunpack.c.l.b16 %v3326_v43 }
 0x1ba   : > { %v1495_v4 = vadd.f32 %v1451_v35, %v1099_v16  ;;  %v1101_v16 = vadd.f32 %v1100_v38, %v6068_v0  ;;  %v2558_v35 = vrot.slane %v5530_v62, 5  ;;  %v3891_v63 = vsel %vm5924_vm7, %v5226_v5, %v3890_v10 }
 0x1bb   : > { %5193 = vmatmul.msk.bf16.gmra.mxu3 %vm756_vm4, %v3605_v50  ;;  %v3341_v50 = vshrl.u32 %v6609_v48, 16  ;;  %v3330_v0 = vrot.slane %v3328_v44, 4  ;;  %v3333_v38 = vrot.slane %v3331_v52, 5  ;;  %v6632_v19 = vrot.slane %v3337_v11, 5 }
 0x1bc   : > { %v2559_v43 = vsel %vm5924_vm7, %v2557_v23, %v2558_v35  ;;  %v3977_v5 = vunpack.c.l.b16 %v3891_v63  ;;  %v5211_v63 = vld [vmem:[%s5738_s24 + $0x60] sm:$0xe] }
 0x1bd   : > { %v2395_v55 = vpop.f32.mrf.mxu0  ;;  %v3343_v58 = vrot.slane %v3341_v50, 4  ;;  %v3334_v11 = vor.u32 %v3333_v38, %v3330_v0 }
 0x1be   : > { %v1741_v20 = vpop.f32.mrf.mxu3  ;;  %v1103_v53 = vpop.f32.mrf.mxu1 }
 0x1bf   : > { %v1785_v40 = vadd.f32 %v1741_v20, %v1495_v4  ;;  %v5000_v4 = vrot.slane %v4984_v41, 9  ;;  %v6641_v41 = vld [vmem:[%s5738_s24 + $0x68] sm:$0x1]  ;;  %v3344_v50 = vor.u32 %v3343_v58, %v6632_v19  ;;  %v3335_v23 = vrot.slane %v3334_v11, 4 }
 0x1c0   : > { %5242 = vmatmul.msk.bf16.gmra.mxu0 %vm756_vm4, %v4003_v17 }
 0x1c1   : > { %v1453_v30 = vpop.f32.mrf.mxu2  ;;  %5016 = vmatmul.msk.bf16.gmra.mxu1 %vm756_vm4, %v2662_v9  ;;  %v6630_v17 = vadd.f32 %v2395_v55, %v1785_v40  ;;  %v3894_v9 = vsel %vm5924_vm7, %v3892_v22, %v3893_v56  ;;  %v2556_v28 = vsel %vm5924_vm7, %v5000_v4, %v2555_v24  ;;  %v3606_v55 = vpack.c.b16 %v3580_v27, %v3579_v8  ;;  %v6649_v4 = vld [vmem:[%s5738_s24 + $0x70] sm:$0xf] }
 0x1c2   : > { %v1496_v61 = vadd.f32 %v1453_v30, %v1101_v16  ;;  %v3978_v52 = vunpack.c.l.b16 %v3894_v9  ;;  %v1104_v24 = vadd.f32 %v1103_v53, %v6089_v39  ;;  %v2637_v16 = vunpack.c.l.b16 %v2556_v28  ;;  %v5161_v30 = vld [vmem:[%s5738_s24 + $0x6c] sm:$0xf] }
 0x1c3   : > { %v2638_v22 = vunpack.c.l.b16 %v2559_v43  ;;  %v3347_v56 = vshll.u32 %v6641_v41, 16  ;;  %v3897_v39 = vrot.slane %v6609_v48, 5  ;;  %v3352_v38 = vshrl.u32 %v5161_v30, 16 }
 0x1c4   : > { %v4004_v8 = vpack.c.b16 %v3978_v52, %v3977_v5  ;;  %v3355_v58 = vshll.u32 %v5161_v30, 16  ;;  %v3361_v9 = vshll.u32 %v6649_v4, 16  ;;  %v3365_v28 = vshrl.u32 %v6649_v4, 16  ;;  %v5532_v52 = vld [vmem:[%s5738_s24 + $0x68] sm:$0x1] }
 0x1c5   : > { %v2397_v20 = vpop.f32.mrf.mxu0  ;;  %v3349_v27 = vrot.slane %v3347_v56, 5  ;;  %v2565_v11 = vrot.slane %v5532_v52, 5  ;;  %v3900_v48 = vrot.slane %v6641_v41, 5  ;;  %v3899_v56 = vrot.slane %v3897_v39, 4 }
 0x1c6   : > { %v1743_v10 = vpop.f32.mrf.mxu3  ;;  %5129 = vmatmul.msk.bf16.gmra.mxu2 %vm756_vm4, %v5296_v7  ;;  %v1105_v44 = vpop.f32.mrf.mxu1  ;;  %v2663_v7 = vpack.c.b16 %v2638_v22, %v2637_v16  ;;  %v3340_v16 = vsel %vm5750_vm3, %v3335_v23, %v6632_v19  ;;  %v3357_v30 = vrot.slane %v3355_v58, 5  ;;  %v3363_v41 = vrot.slane %v3361_v9, 5  ;;  %v5163_v23 = vld [vmem:[%s5738_s24 + $0x74] sm:$0x1] }
 0x1c7   : > { %v1786_v40 = vadd.f32 %v1743_v10, %v1496_v61  ;;  %v3345_v61 = vrot.slane %v3344_v50, 4  ;;  %v3581_v52 = vunpack.c.l.b16 %v3340_v16 }
 0x1c9   : > { %v1456_v62 = vpop.f32.mrf.mxu2  ;;  %v6654_v53 = vadd.f32 %v2397_v20, %v1786_v40  ;;  %v4985_v20 = vld [vmem:[%s5738_s24 + $0x60] sm:$0xe]  ;;  %v1106_v40 = vadd.f32 %v1105_v44, %v6108_v6  ;;  %v3350_v22 = vsel %vm5750_vm3, %v3345_v61, %v3349_v27 }
 0x1ca   : > { %v1497_v35 = vadd.f32 %v1456_v62, %v1104_v24  ;;  %v5227_v24 = vrot.slane %v5211_v63, 9  ;;  %v3367_v63 = vrot.slane %v3365_v28, 4  ;;  %v3582_v19 = vunpack.c.l.b16 %v3350_v22 }
 0x1cb   : > { %5194 = vmatmul.msk.bf16.gmra.mxu3 %vm756_vm4, %v3606_v55  ;;  %7264 = vst [vmem:[#allocation7_spill] sm:$0xff] %v6654_v53  ;;  %v5531_v55 = vld [vmem:[%s5738_s24 + $0x64] sm:$0xf] }
 0x1cc   : > { %v2562_v5 = vrot.slane %v5531_v55, 5  ;;  %v5001_v55 = vrot.slane %v4985_v20, 9  ;;  %v3898_v61 = vsel %vm5924_vm7, %v5227_v24, %v3897_v39  ;;  %v3368_v28 = vor.u32 %v3367_v63, %v3363_v41  ;;  %v5164_v63 = vld [vmem:[%s5738_s24 + $0x78] sm:$0xf] }
 0x1cd   : > { %v2400_v0 = vpop.f32.mrf.mxu0  ;;  %v3607_v39 = vpack.c.b16 %v3582_v19, %v3581_v52 }
 0x1ce   : > { %v1746_v43 = vpop.f32.mrf.mxu3  ;;  %v1108_v10 = vpop.f32.mrf.mxu1  ;;  %v2564_v6 = vrot.slane %v2562_v5, 4 }
 0x1cf   : > { %v1787_v50 = vadd.f32 %v1746_v43, %v1497_v35  ;;  %v3354_v35 = vrot.slane %v3352_v38, 4  ;;  %v1109_v24 = vadd.f32 %v1108_v10, %v6127_v45  ;;  %v6689_v10 = vld [vmem:[%s5738_s24 + $0x7c] sm:$0xf] }
 0x1d0   : > { %5243 = vmatmul.msk.bf16.gmra.mxu0 %vm756_vm4, %v4004_v8  ;;  %v5297_v8 = vld [vmem:[%s5738_s24 + $0x60] sm:$0xff]  ;;  %v2566_v9 = vsel %vm5924_vm7, %v2564_v6, %v2565_v11 }
 0x1d1   : > { %v1458_v62 = vpop.f32.mrf.mxu2  ;;  %5017 = vmatmul.msk.bf16.gmra.mxu1 %vm756_vm4, %v2663_v7  ;;  %v6671_v44 = vadd.f32 %v2400_v0, %v1787_v50  ;;  %v3901_v7 = vsel %vm5924_vm7, %v3899_v56, %v3900_v48  ;;  %v3358_v27 = vor.u32 %v3357_v30, %v3354_v35  ;;  %v2563_v0 = vsel %vm5924_vm7, %v5001_v55, %v2562_v5  ;;  %v5212_v35 = vld [vmem:[%s5738_s24 + $0x6c] sm:$0xe] }
 0x1d2   : > { %v1498_v43 = vadd.f32 %v1458_v62, %v1106_v40  ;;  %v3371_v50 = vshll.u32 %v5163_v23, 16  ;;  %v3979_v48 = vunpack.c.l.b16 %v3898_v61  ;;  %v3980_v40 = vunpack.c.l.b16 %v3901_v7 }
 0x1d3   : > { %v2639_v22 = vunpack.c.l.b16 %v2563_v0  ;;  %v2640_v56 = vunpack.c.l.b16 %v2566_v9  ;;  %v3359_v62 = vrot.slane %v3358_v27, 4  ;;  %v3904_v5 = vrot.slane %v6649_v4, 5  ;;  %v4986_v0 = vld [vmem:[%s5738_s24 + $0x6c] sm:$0xe]  ;;  %v5533_v9 = vld [vmem:[%s5738_s24 + $0x70] sm:$0xf] }
 0x1d4   : > { %v3373_v11 = vrot.slane %v3371_v50, 5  ;;  %v5228_v45 = vrot.slane %v5212_v35, 9  ;;  %v3907_v61 = vrot.slane %v5163_v23, 5  ;;  %v3376_v50 = vshrl.u32 %v5164_v63, 16  ;;  %v5298_v35 = vld [vmem:[%s5738_s24 + $0x6c] sm:$0xff] }
 0x1d5   : > { %v2402_v53 = vpop.f32.mrf.mxu0  ;;  %v2664_v52 = vpack.c.b16 %v2640_v56, %v2639_v22  ;;  %v3364_v19 = vsel %vm5750_vm3, %v3359_v62, %v3363_v41  ;;  %v3906_v4 = vrot.slane %v3904_v5, 4  ;;  %v5002_v56 = vrot.slane %v4986_v0, 9 }
 0x1d6   : > { %v1748_v38 = vpop.f32.mrf.mxu3  ;;  %5130 = vmatmul.msk.bf16.gmra.mxu2 %vm756_vm4, %v5297_v8  ;;  %v1110_v58 = vpop.f32.mrf.mxu1  ;;  %v3369_v8 = vrot.slane %v3368_v28, 4  ;;  %v2569_v28 = vrot.slane %v5533_v9, 5  ;;  %v3583_v23 = vunpack.c.l.b16 %v3364_v19  ;;  %v5166_v19 = vld [vmem:[%s5738_s24 + $0x80] sm:$0x1] }
 0x1d7   : > { %v1788_v20 = vadd.f32 %v1748_v38, %v1498_v43  ;;  %v4005_v43 = vpack.c.b16 %v3980_v40, %v3979_v48  ;;  %v1111_v41 = vadd.f32 %v1110_v58, %v6150_v12  ;;  %v3908_v22 = vsel %vm5924_vm7, %v3906_v4, %v3907_v61 }
 0x1d8   : > { %v3374_v38 = vsel %vm5750_vm3, %v3369_v8, %v3373_v11  ;;  %v5534_v8 = vld [vmem:[%s5738_s24 + $0x74] sm:$0x1]  ;;  %v3378_v12 = vrot.slane %v3376_v50, 4  ;;  %v3982_v61 = vunpack.c.l.b16 %v3908_v22 }
 0x1d9   : > { %v1461_v16 = vpop.f32.mrf.mxu2  ;;  %v6691_v55 = vadd.f32 %v2402_v53, %v1788_v20  ;;  %v3379_v53 = vshll.u32 %v5164_v63, 16  ;;  %v3385_v20 = vshll.u32 %v6689_v10, 16  ;;  %v3584_v40 = vunpack.c.l.b16 %v3374_v38 }
 0x1da   : > { %v1499_v30 = vadd.f32 %v1461_v16, %v1109_v24  ;;  %v3389_v24 = vshrl.u32 %v6689_v10, 16  ;;  %v3905_v16 = vsel %vm5924_vm7, %v5228_v45, %v3904_v5  ;;  %v2572_v11 = vrot.slane %v5534_v8, 5 }
 0x1db   : > { %5195 = vmatmul.msk.bf16.gmra.mxu3 %vm756_vm4, %v3607_v39  ;;  %v3381_v58 = vrot.slane %v3379_v53, 5  ;;  %v3981_v5 = vunpack.c.l.b16 %v3905_v16  ;;  %v3608_v4 = vpack.c.b16 %v3584_v40, %v3583_v23  ;;  %v3395_v53 = vshll.u32 %v5166_v19, 16  ;;  %v5167_v16 = vld [vmem:[%s5738_s24 + $0x84] sm:$0xf] }
 0x1dd   : > { %v2405_v6 = vpop.f32.mrf.mxu0  ;;  %v3382_v50 = vor.u32 %v3381_v58, %v3378_v12  ;;  %v4006_v22 = vpack.c.b16 %v3982_v61, %v3981_v5 }
 0x1de   : > { %v1751_v7 = vpop.f32.mrf.mxu3  ;;  %v1113_v27 = vpop.f32.mrf.mxu1 }
 0x1df   : > { %v1789_v39 = vadd.f32 %v1751_v7, %v1499_v30  ;;  %v2571_v30 = vrot.slane %v2569_v28, 4 }
 0x1e0   : > { %5244 = vmatmul.msk.bf16.gmra.mxu0 %vm756_vm4, %v4005_v43  ;;  %v6712_v43 = vrot.slane %v3385_v20, 5  ;;  %v1114_v20 = vadd.f32 %v1113_v27, %v6169_v59  ;;  %v3914_v27 = vrot.slane %v5166_v19, 5 }
 0x1e1   : > { %v1463_v48 = vpop.f32.mrf.mxu2  ;;  %5018 = vmatmul.msk.bf16.gmra.mxu1 %vm756_vm4, %v2664_v52  ;;  %v6710_v63 = vadd.f32 %v2405_v6, %v1789_v39  ;;  %v3391_v52 = vrot.slane %v3389_v24, 4  ;;  %v2570_v6 = vsel %vm5924_vm7, %v5002_v56, %v2569_v28  ;;  %v2573_v0 = vsel %vm5924_vm7, %v2571_v30, %v2572_v11  ;;  %v5213_v24 = vld [vmem:[%s5738_s24 + $0x78] sm:$0xe]  ;;  %v6726_v28 = vld [vmem:[%s5738_s24 + $0x88] sm:$0xf] }
 0x1e2   : > { %v1500_v62 = vadd.f32 %v1463_v48, %v1111_v41  ;;  %v3911_v41 = vrot.slane %v6689_v10, 5  ;;  %v2641_v48 = vunpack.c.l.b16 %v2570_v6  ;;  %v2642_v40 = vunpack.c.l.b16 %v2573_v0  ;;  %v4987_v6 = vld [vmem:[%s5738_s24 + $0x78] sm:$0xe]  ;;  %v5535_v0 = vld [vmem:[%s5738_s24 + $0x7c] sm:$0xf] }
 0x1e3   : > { %v3392_v39 = vor.u32 %v3391_v52, %v6712_v43  ;;  %v3383_v56 = vrot.slane %v3382_v50, 4  ;;  %v3397_v30 = vrot.slane %v3395_v53, 5  ;;  %v5229_v8 = vrot.slane %v5213_v24, 9 }
 0x1e4   : > { %v3913_v59 = vrot.slane %v3911_v41, 4  ;;  %v3400_v11 = vshrl.u32 %v5167_v16, 16  ;;  %v2665_v58 = vpack.c.b16 %v2642_v40, %v2641_v48  ;;  %v3403_v52 = vshll.u32 %v5167_v16, 16 }
 0x1e5   : > { %v2407_v7 = vpop.f32.mrf.mxu0  ;;  %v3409_v5 = vshll.u32 %v6726_v28, 16  ;;  %v2576_v50 = vrot.slane %v5535_v0, 5  ;;  %v3388_v19 = vsel %vm5750_vm3, %v3383_v56, %v6712_v43  ;;  %v3912_v53 = vsel %vm5924_vm7, %v5229_v8, %v3911_v41  ;;  %v6754_v8 = vld [vmem:[%s5738_s24 + $0x8c] sm:$0x1] }
 0x1e6   : > { %v1753_v45 = vpop.f32.mrf.mxu3  ;;  %5131 = vmatmul.msk.bf16.gmra.mxu2 %vm756_vm4, %v5298_v35  ;;  %v1115_v38 = vpop.f32.mrf.mxu1  ;;  %v3402_v24 = vrot.slane %v3400_v11, 4  ;;  %v5003_v43 = vrot.slane %v4987_v6, 9  ;;  %v3405_v48 = vrot.slane %v3403_v52, 5  ;;  %v3585_v41 = vunpack.c.l.b16 %v3388_v19  ;;  %v5170_v19 = vld [vmem:[%s5738_s24 + $0x90] sm:$0xf] }
 0x1e7   : > { %v1790_v9 = vadd.f32 %v1753_v45, %v1500_v62  ;;  %v3393_v62 = vrot.slane %v3392_v39, 4  ;;  %v3413_v45 = vshrl.u32 %v6726_v28, 16  ;;  %v6747_v40 = vrot.slane %v3409_v5, 5 }
 0x1e8   : > { %v2578_v56 = vrot.slane %v2576_v50, 4  ;;  %v2577_v5 = vsel %vm5924_vm7, %v5003_v43, %v2576_v50 }
 0x1e9   : > { %v1466_v23 = vpop.f32.mrf.mxu2  ;;  %v6729_v10 = vadd.f32 %v2407_v7, %v1790_v9  ;;  %v3398_v7 = vsel %vm5750_vm3, %v3393_v62, %v3397_v30  ;;  %v1116_v9 = vadd.f32 %v1115_v38, %v6186_v32  ;;  %v3415_v16 = vrot.slane %v3413_v45, 4  ;;  %v5536_v32 = vld [vmem:[%s5738_s24 + $0x80] sm:$0x1] }
 0x1ea   : > { %v1501_v35 = vadd.f32 %v1466_v23, %v1114_v20  ;;  %v3915_v20 = vsel %vm5924_vm7, %v3913_v59, %v3914_v27  ;;  %v2579_v38 = vrot.slane %v5536_v32, 5  ;;  %v3586_v30 = vunpack.c.l.b16 %v3398_v7 }
 0x1eb   : > { %5196 = vmatmul.msk.bf16.gmra.mxu3 %vm756_vm4, %v3608_v4  ;;  %7265 = vst [vmem:[#allocation8_spill] sm:$0xff] %v6729_v10  ;;  %v3983_v27 = vunpack.c.l.b16 %v3912_v53  ;;  %v3984_v11 = vunpack.c.l.b16 %v3915_v20  ;;  %v3406_v45 = vor.u32 %v3405_v48, %v3402_v24  ;;  %v2643_v53 = vunpack.c.l.b16 %v2577_v5 }
 0x1ec   : > { %v3609_v0 = vpack.c.b16 %v3586_v30, %v3585_v41  ;;  %v3918_v32 = vrot.slane %v6726_v28, 5  ;;  %v6783_v28 = vld [vmem:[%s7253_s2] ss:$0 sm:$0xff] }
 0x1ed   : > { %v2410_v12 = vpop.f32.mrf.mxu0  ;;  %v4007_v50 = vpack.c.b16 %v3984_v11, %v3983_v27  ;;  %v3407_v43 = vrot.slane %v3406_v45, 4  ;;  %v5537_v45 = vld [vmem:[%s5738_s24 + $0x88] sm:$0xf] }
 0x1ee   : > { %v1756_v61 = vpop.f32.mrf.mxu3  ;;  %v2733_v4 = vpop.f32.mrf.mxu1 }
 0x1ef   : > { %v1791_v39 = vadd.f32 %v1756_v61, %v1501_v35  ;;  %v3416_v61 = vor.u32 %v3415_v16, %v6747_v40  ;;  %v2813_v7 = vadd.f32 %v2733_v4, %v6203_v46  ;;  %v5214_v16 = vld [vmem:[%s5738_s24 + $0x84] sm:$0xe] }
 0x1f0   : > { %5245 = vmatmul.msk.bf16.gmra.mxu0 %vm756_vm4, %v4006_v22  ;;  %v5299_v22 = vld [vmem:[%s5738_s24 + $0x78] sm:$0xff]  ;;  %v5230_v5 = vrot.slane %v5214_v16, 9 }
 0x1f1   : > { %v1468_v23 = vpop.f32.mrf.mxu2  ;;  %5019 = vmatmul.msk.bf16.gmra.mxu1 %vm756_vm4, %v2665_v58  ;;  %v6751_v62 = vadd.f32 %v2410_v12, %v1791_v39  ;;  %v2580_v12 = vsel %vm5924_vm7, %v2578_v56, %v2579_v38  ;;  %v3419_v39 = vshll.u32 %v6754_v8, 16  ;;  %v3427_v56 = vshll.u32 %v5170_v19, 16 }
 0x1f2   : > { %v1502_v35 = vadd.f32 %v1468_v23, %v1116_v9  ;;  %v2644_v20 = vunpack.c.l.b16 %v2580_v12  ;;  %v6766_v23 = vld [vmem:[%s5738_s24 + $0x94] sm:$0xf]  ;;  %v4988_v12 = vld [vmem:[%s5738_s24 + $0x84] sm:$0xe]  ;;  %v3919_v16 = vsel %vm5924_vm7, %v5230_v5, %v3918_v32  ;;  %v5173_v5 = vld [vmem:[%s5738_s24 + $0x9c] sm:$0xf] }
 0x1f3   : > { %7266 = vst [vmem:[#allocation9_spill] sm:$0xff] %v6751_v62  ;;  %v3421_v48 = vrot.slane %v3419_v39, 5  ;;  %v3433_v46 = vshll.u32 %v6766_v23, 16  ;;  %v3437_v4 = vshrl.u32 %v6766_v23, 16  ;;  %v3429_v39 = vrot.slane %v3427_v56, 5 }
 0x1f4   : > { %v2666_v30 = vpack.c.b16 %v2644_v20, %v2643_v53  ;;  %v6794_v20 = vld [vmem:[%s7254_s3] ss:$0 sm:$0xff]  ;;  %v5538_v56 = vld [vmem:[%s5738_s24 + $0x8c] sm:$0x1] }
 0x1f5   : > { %v2412_v59 = vpop.f32.mrf.mxu0 }
 0x1f6   : > { %v1758_v58 = vpop.f32.mrf.mxu3  ;;  %5132 = vmatmul.msk.bf16.gmra.mxu2 %vm756_vm4, %v5299_v22  ;;  %v2735_v52 = vpop.f32.mrf.mxu1  ;;  %v3417_v22 = vrot.slane %v3416_v61, 4  ;;  %v2583_v61 = vrot.slane %v5537_v45, 5 }
 0x1f7   : > { %v1792_v6 = vadd.f32 %v1758_v58, %v1502_v35  ;;  %v3424_v35 = vshrl.u32 %v5170_v19, 16  ;;  %v3412_v58 = vsel %vm5750_vm3, %v3407_v43, %v6747_v40  ;;  %v3920_v40 = vrot.slane %v3918_v32, 4 }
 0x1f8   : > { %v3921_v19 = vrot.slane %v6754_v8, 5  ;;  %v2814_v43 = vadd.f32 %v2735_v52, %v6216_v42 }
 0x1f9   : > { %v3023_v9 = vpop.f32.mrf.mxu2  ;;  %v6773_v38 = vadd.f32 %v2412_v59, %v1792_v6  ;;  %v3422_v59 = vsel %vm5750_vm3, %v3417_v22, %v3421_v48  ;;  %v3426_v6 = vrot.slane %v3424_v35, 4  ;;  %v5300_v48 = vld [vmem:[%s5738_s24 + $0x84] sm:$0xff]  ;;  %v2585_v35 = vrot.slane %v2583_v61, 4 }
 0x1fa   : > { %v3103_v24 = vadd.f32 %v3023_v9, %v2813_v7  ;;  %v6789_v7 = vrot.slane %v3433_v46, 5  ;;  %v3439_v9 = vrot.slane %v3437_v4, 4  ;;  %v3588_v8 = vunpack.c.l.b16 %v3422_v59 }
 0x1fb   : > { %5197 = vmatmul.msk.bf16.gmra.mxu3 %vm756_vm4, %v3609_v0  ;;  %7267 = vst [vmem:[#allocation10_spill] sm:$0xff] %v6773_v38  ;;  %v2586_v46 = vrot.slane %v5538_v56, 5  ;;  %v3430_v45 = vor.u32 %v3429_v39, %v3426_v6  ;;  %v3922_v42 = vsel %vm5924_vm7, %v3920_v40, %v3921_v19  ;;  %v3925_v19 = vrot.slane %v6766_v23, 5  ;;  %v6820_v56 = vld [vmem:[%s5738_s24 + $0xa0] sm:$0xf] }
 0x1fc   : > { %v3440_v52 = vor.u32 %v3439_v9, %v6789_v7 }
 0x1fd   : > { %v4075_v41 = vpop.f32.mrf.mxu0  ;;  %v2587_v39 = vsel %vm5924_vm7, %v2585_v35, %v2586_v46  ;;  %v3927_v10 = vrot.slane %v3925_v19, 4 }
 0x1fe   : > { %v3677_v27 = vpop.f32.mrf.mxu3  ;;  %v2738_v11 = vpop.f32.mrf.mxu1  ;;  %v2646_v46 = vunpack.c.l.b16 %v2587_v39 }
 0x1ff   : > { %v3757_v0 = vadd.f32 %v3677_v27, %v3103_v24  ;;  %v5004_v24 = vrot.slane %v4988_v12, 9  ;;  %v5172_v27 = vld [vmem:[%s5738_s24 + $0x98] sm:$0x1]  ;;  %v3985_v12 = vunpack.c.l.b16 %v3919_v16  ;;  %v5215_v16 = vld [vmem:[%s5738_s24 + $0x90] sm:$0xe]  ;;  %v2815_v38 = vadd.f32 %v2738_v11, %v6229_v15 }
 0x200   : > { %5246 = vmatmul.msk.bf16.gmra.mxu0 %vm756_vm4, %v4007_v50  ;;  %v3587_v50 = vunpack.c.l.b16 %v3412_v58  ;;  %v3443_v40 = vshll.u32 %v5172_v27, 16  ;;  %v5231_v23 = vrot.slane %v5215_v16, 9  ;;  %v3461_v15 = vshrl.u32 %v6820_v56, 16 }
 0x201   : > { %v4155_v53 = vadd.f32 %v4075_v41, %v3757_v0  ;;  %v3025_v22 = vpop.f32.mrf.mxu2  ;;  %5020 = vmatmul.msk.bf16.gmra.mxu1 %vm756_vm4, %v2666_v30  ;;  %v2584_v32 = vsel %vm5924_vm7, %v5004_v24, %v2583_v61  ;;  %v3441_v24 = vrot.slane %v3440_v52, 4 }
 0x202   : > { %v3104_v41 = vadd.f32 %v3025_v22, %v2814_v43  ;;  %v3610_v59 = vpack.c.b16 %v3588_v8, %v3587_v50  ;;  %v3986_v43 = vunpack.c.l.b16 %v3922_v42  ;;  %v3431_v22 = vrot.slane %v3430_v45, 4 }
 0x203   : > { %v4191_v4 = vmul.f32 %v6783_v28, %v4155_v53  ;;  %v2645_v61 = vunpack.c.l.b16 %v2584_v32  ;;  %v3445_v62 = vrot.slane %v3443_v40, 5  ;;  %v3457_v32 = vshll.u32 %v6820_v56, 16 }
 0x205   : > { %v6808_v30 = vadd.f32 %v6794_v20, %v4191_v4  ;;  %v4077_v58 = vpop.f32.mrf.mxu0  ;;  %v3448_v4 = vshrl.u32 %v5173_v5, 16  ;;  %v2667_v40 = vpack.c.b16 %v2646_v46, %v2645_v61 }
 0x206   : > { %v3679_v0 = vpop.f32.mrf.mxu3  ;;  %5133 = vmatmul.msk.bf16.gmra.mxu2 %vm756_vm4, %v5300_v48  ;;  %v2740_v6 = vpop.f32.mrf.mxu1  ;;  %v3451_v48 = vshll.u32 %v5173_v5, 16  ;;  %v4008_v5 = vpack.c.b16 %v3986_v43, %v3985_v12  ;;  %v3446_v12 = vsel %vm5750_vm3, %v3441_v24, %v3445_v62  ;;  %v3463_v24 = vrot.slane %v3461_v15, 4 }
 0x207   : > { %v4259_v9 = vsub.f32 0.0, %v6808_v30  ;;  %v3758_v53 = vadd.f32 %v3679_v0, %v3104_v41  ;;  %v3928_v41 = vrot.slane %v5172_v27, 5  ;;  %v4989_v27 = vld [vmem:[%s5738_s24 + $0x90] sm:$0xe] }
 0x208   : > { %v3453_v0 = vrot.slane %v3451_v48, 5  ;;  %v6842_v48 = vrot.slane %v3457_v32, 5 }
 0x209   : > { %v4291_v50 = vmin.f32 %v4259_v9, 30.0  ;;  %v4156_v8 = vadd.f32 %v4077_v58, %v3758_v53  ;;  %v3028_v35 = vpop.f32.mrf.mxu2  ;;  %v3450_v58 = vrot.slane %v3448_v4, 4  ;;  %v5539_v9 = vld [vmem:[%s5738_s24 + $0x94] sm:$0xf]  ;;  %v3929_v4 = vsel %vm5924_vm7, %v3927_v10, %v3928_v41 }
 0x20a   : > { %v3105_v52 = vadd.f32 %v3028_v35, %v2815_v38  ;;  %v2590_v53 = vrot.slane %v5539_v9, 5  ;;  %v3436_v38 = vsel %vm5750_vm3, %v3431_v22, %v6789_v7  ;;  %v2816_v7 = vadd.f32 %v2740_v6, %v6242_v13  ;;  %v5301_v10 = vld [vmem:[%s5738_s24 + $0x90] sm:$0xff] }
 0x20b   : > { %v4323_v45 = vmul.f32 1.442695, %v4291_v50  ;;  %v4192_v42 = vmul.f32 %v6783_v28, %v4156_v8  ;;  %5198 = vmatmul.msk.bf16.gmra.mxu3 %vm756_vm4, %v3610_v59  ;;  %v3926_v59 = vsel %vm5924_vm7, %v5231_v23, %v3925_v19  ;;  %v5005_v22 = vrot.slane %v4989_v27, 9  ;;  %v5540_v23 = vld [vmem:[%s5738_s24 + $0x98] sm:$0x1] }
 0x20c   : > { %v3454_v62 = vor.u32 %v3453_v0, %v3450_v58  ;;  %v2592_v46 = vrot.slane %v2590_v53, 4  ;;  %v3589_v41 = vunpack.c.l.b16 %v3436_v38  ;;  %v3987_v32 = vunpack.c.l.b16 %v3926_v59 }
 0x20d   : > { %5371 = vpow2.f32 %v4323_v45  ;;  %v6828_v11 = vadd.f32 %v6794_v20, %v4192_v42  ;;  %v4080_v39 = vpop.f32.mrf.mxu0  ;;  %v2593_v45 = vrot.slane %v5540_v23, 5  ;;  %v6849_v42 = vld [vmem:[%s5738_s24 + $0xa4] sm:$0x1]  ;;  %v3988_v0 = vunpack.c.l.b16 %v3929_v4 }
 0x20e   : > { %v3682_v16 = vpop.f32.mrf.mxu3  ;;  %v2743_v50 = vpop.f32.mrf.mxu1  ;;  %v3467_v27 = vshll.u32 %v6849_v42, 16  ;;  %v2591_v38 = vsel %vm5924_vm7, %v5005_v22, %v2590_v53  ;;  %v5176_v53 = vld [vmem:[%s5738_s24 + $0xa8] sm:$0xf] }
 0x20f   : > { %v4260_v43 = vsub.f32 0.0, %v6828_v11  ;;  %v3759_v61 = vadd.f32 %v3682_v16, %v3105_v52  ;;  %v3590_v52 = vunpack.c.l.b16 %v3446_v12  ;;  %v2594_v12 = vsel %vm5924_vm7, %v2592_v46, %v2593_v45 }
 0x210   : > { %5247 = vmatmul.msk.bf16.gmra.mxu0 %vm756_vm4, %v4008_v5  ;;  %v2647_v22 = vunpack.c.l.b16 %v2591_v38  ;;  %v3469_v46 = vrot.slane %v3467_v27, 5 }
 0x211   : > { %v4292_v8 = vmin.f32 %v4260_v43, 30.0  ;;  %v4157_v35 = vadd.f32 %v4080_v39, %v3759_v61  ;;  %v3030_v19 = vpop.f32.mrf.mxu2  ;;  %5021 = vmatmul.msk.bf16.gmra.mxu1 %vm756_vm4, %v2667_v40  ;;  %v6853_v39 = vrot.slane %v3454_v62, 4  ;;  %v3464_v40 = vor.u32 %v3463_v24, %v6842_v48 }
 0x212   : > { %v3106_v58 = vadd.f32 %v3030_v19, %v2816_v7  ;;  %v3932_v61 = vrot.slane %v6820_v56, 5  ;;  %v3611_v62 = vpack.c.b16 %v3590_v52, %v3589_v41  ;;  %v4009_v24 = vpack.c.b16 %v3988_v0, %v3987_v32  ;;  %v6880_v52 = vld [vmem:[%s5738_s24 + $0xac] sm:$0xf] }
 0x213   : > { %v5372_v5 = vpop.eup %5371  ;;  %v4325_v13 = vmul.f32 1.442695, %v4292_v8  ;;  %v4193_v6 = vmul.f32 %v6783_v28, %v4157_v35  ;;  %v5216_v8 = vld [vmem:[%s5738_s24 + $0x9c] sm:$0xe]  ;;  %v2648_v35 = vunpack.c.l.b16 %v2594_v12  ;;  %v3465_v19 = vrot.slane %v3464_v40, 4 }
 0x214   : > { %v4387_v15 = vadd.f32 1.0, %v5372_v5  ;;  %v3460_v41 = vsel %vm5750_vm3, %v6853_v39, %v6842_v48  ;;  %v5232_v32 = vrot.slane %v5216_v8, 9  ;;  %v3934_v5 = vrot.slane %v3932_v61, 4  ;;  %v5541_v48 = vld [vmem:[%s5738_s24 + $0xa0] sm:$0xf] }
 0x215   : > { %5373 = vpow2.f32 %v4325_v13  ;;  %v6858_v9 = vadd.f32 %v6794_v20, %v4193_v6  ;;  %v4082_v16 = vpop.f32.mrf.mxu0  ;;  %v3935_v13 = vrot.slane %v6849_v42, 5  ;;  %v3472_v6 = vshrl.u32 %v5176_v53, 16 }
 0x216   : > { %5375 = vrcp.f32 %v4387_v15  ;;  %v3684_v59 = vpop.f32.mrf.mxu3  ;;  %5134 = vmatmul.msk.bf16.gmra.mxu2 %vm756_vm4, %v5301_v10  ;;  %v2745_v43 = vpop.f32.mrf.mxu1  ;;  %v2817_v10 = vadd.f32 %v2743_v50, %v6255_v57  ;;  %v3475_v50 = vshll.u32 %v5176_v53, 16  ;;  %v2597_v39 = vrot.slane %v5541_v48, 5 }
 0x217   : > { %v4261_v4 = vsub.f32 0.0, %v6858_v9  ;;  %v3760_v7 = vadd.f32 %v3684_v59, %v3106_v58  ;;  %v3481_v38 = vshll.u32 %v6880_v52, 16  ;;  %v3470_v53 = vsel %vm5750_vm3, %v3465_v19, %v3469_v46  ;;  %v5542_v46 = vld [vmem:[%s5738_s24 + $0xa4] sm:$0x1] }
 0x218   : > { %v2599_v19 = vrot.slane %v2597_v39, 4 }
 0x219   : > { %v4293_v23 = vmin.f32 %v4261_v4, 30.0  ;;  %v4158_v45 = vadd.f32 %v4082_v16, %v3760_v7  ;;  %v3033_v56 = vpop.f32.mrf.mxu2  ;;  %v2668_v16 = vpack.c.b16 %v2648_v35, %v2647_v22  ;;  %v4990_v4 = vld [vmem:[%s5738_s24 + $0x9c] sm:$0xe]  ;;  %v3485_v7 = vshrl.u32 %v6880_v52, 16 }
 0x21a   : > { %v3107_v57 = vadd.f32 %v3033_v56, %v2817_v10  ;;  %v3933_v22 = vsel %vm5924_vm7, %v5232_v32, %v3932_v61  ;;  %v3477_v10 = vrot.slane %v3475_v50, 5  ;;  %v5006_v56 = vrot.slane %v4990_v4, 9  ;;  %v6913_v4 = vld [vmem:[%s5738_s24 + $0xb0] sm:$0x1] }
 0x21b   : > { %v5374_v58 = vpop.eup %5373  ;;  %v4327_v0 = vmul.f32 1.442695, %v4293_v23  ;;  %v4194_v15 = vmul.f32 %v6783_v28, %v4158_v45  ;;  %5199 = vmatmul.msk.bf16.gmra.mxu3 %vm756_vm4, %v3611_v62  ;;  %v3474_v45 = vrot.slane %v3472_v6, 4  ;;  %v6906_v61 = vrot.slane %v3481_v38, 5 }
 0x21c   : > { %v5376_v40 = vpop.eup %5375  ;;  %v4388_v27 = vadd.f32 1.0, %v5374_v58  ;;  %v2600_v58 = vrot.slane %v5542_v46, 5  ;;  %v3591_v6 = vunpack.c.l.b16 %v3460_v41  ;;  %v3592_v50 = vunpack.c.l.b16 %v3470_v53  ;;  %v5179_v46 = vld [vmem:[%s5738_s24 + $0xb4] sm:$0xf] }
 0x21d   : > { %v4451_v42 = vmul.f32 %v5376_v40, %v6808_v30  ;;  %5377 = vpow2.f32 %v4327_v0  ;;  %v6889_v12 = vadd.f32 %v6794_v20, %v4194_v15  ;;  %v4085_v59 = vpop.f32.mrf.mxu0  ;;  %v3936_v30 = vsel %vm5924_vm7, %v3934_v5, %v3935_v13 }
 0x21e   : > { %5379 = vrcp.f32 %v4388_v27  ;;  %v3687_v62 = vpop.f32.mrf.mxu3  ;;  %v2748_v8 = vpop.f32.mrf.mxu1  ;;  %v2818_v13 = vadd.f32 %v2745_v43, %v6268_v54  ;;  %v3487_v15 = vrot.slane %v3485_v7, 4  ;;  %v3989_v40 = vunpack.c.l.b16 %v3933_v22 }
 0x21f   : > { %4483 = vst [vmem:[%s6900_s22] sm:$0xff] %v4451_v42  ;;  %v4262_v35 = vsub.f32 0.0, %v6889_v12  ;;  %v3761_v23 = vadd.f32 %v3687_v62, %v3107_v57  ;;  %v5302_v57 = vld [vmem:[%s5738_s24 + $0x9c] sm:$0xff]  ;;  %v3990_v38 = vunpack.c.l.b16 %v3936_v30  ;;  %v2598_v54 = vsel %vm5924_vm7, %v5006_v56, %v2597_v39 }
 0x220   : > { %5248 = vmatmul.msk.bf16.gmra.mxu0 %vm756_vm4, %v4009_v24  ;;  %v2601_v43 = vsel %vm5924_vm7, %v2599_v19, %v2600_v58  ;;  %v3478_v41 = vor.u32 %v3477_v10, %v3474_v45  ;;  %v3488_v22 = vor.u32 %v3487_v15, %v6906_v61  ;;  %v3612_v39 = vpack.c.b16 %v3592_v50, %v3591_v6  ;;  %v5217_v19 = vld [vmem:[%s5738_s24 + $0xa8] sm:$0xe]  ;;  %v6933_v50 = vld [vmem:[%s5738_s24 + $0xb8] sm:$0xf] }
 0x221   : > { %v4294_v32 = vmin.f32 %v4262_v35, 30.0  ;;  %v4159_v5 = vadd.f32 %v4085_v59, %v3761_v23  ;;  %v3035_v0 = vpop.f32.mrf.mxu2  ;;  %5022 = vmatmul.msk.bf16.gmra.mxu1 %vm756_vm4, %v2668_v16  ;;  %v3491_v23 = vshll.u32 %v6913_v4, 16  ;;  %v2649_v10 = vunpack.c.l.b16 %v2598_v54 }
 0x222   : > { %v3108_v42 = vadd.f32 %v3035_v0, %v2818_v13  ;;  %v2650_v56 = vunpack.c.l.b16 %v2601_v43  ;;  %v4010_v58 = vpack.c.b16 %v3990_v38, %v3989_v40  ;;  %v2819_v15 = vadd.f32 %v2748_v8, %v6281_v33 }
 0x223   : > { %v5378_v24 = vpop.eup %5377  ;;  %v4329_v27 = vmul.f32 1.442695, %v4294_v32  ;;  %v4195_v48 = vmul.f32 %v6783_v28, %v4159_v5  ;;  %v3479_v32 = vrot.slane %v3478_v41, 4  ;;  %v3939_v5 = vrot.slane %v6880_v52, 5 }
 0x224   : > { %v5380_v62 = vpop.eup %5379  ;;  %v4389_v59 = vadd.f32 1.0, %v5378_v24  ;;  %v3489_v6 = vrot.slane %v3488_v22, 4  ;;  %v3493_v24 = vrot.slane %v3491_v23, 5  ;;  %v2669_v38 = vpack.c.b16 %v2650_v56, %v2649_v10  ;;  %v5543_v23 = vld [vmem:[%s5738_s24 + $0xac] sm:$0xf] }
 0x225   : > { %v4452_v16 = vmul.f32 %v5380_v62, %v6828_v11  ;;  %5381 = vpow2.f32 %v4329_v27  ;;  %v6921_v7 = vadd.f32 %v6794_v20, %v4195_v48  ;;  %v4087_v53 = vpop.f32.mrf.mxu0  ;;  %v5233_v27 = vrot.slane %v5217_v19, 9 }
 0x226   : > { %5383 = vrcp.f32 %v4389_v59  ;;  %v3689_v30 = vpop.f32.mrf.mxu3  ;;  %5135 = vmatmul.msk.bf16.gmra.mxu2 %vm756_vm4, %v5302_v57  ;;  %v2750_v35 = vpop.f32.mrf.mxu1  ;;  %v3496_v48 = vshrl.u32 %v5179_v46, 16  ;;  %v3941_v8 = vrot.slane %v3939_v5, 4  ;;  %v3942_v43 = vrot.slane %v6913_v4, 5 }
 0x227   : > { %4484 = vst [vmem:[%s6900_s22 + $0x8] sm:$0xff] %v4452_v16  ;;  %v4263_v11 = vsub.f32 0.0, %v6921_v7  ;;  %v3762_v45 = vadd.f32 %v3689_v30, %v3108_v42  ;;  %v3499_v42 = vshll.u32 %v5179_v46, 16  ;;  %v3505_v41 = vshll.u32 %v6933_v50, 16  ;;  %v4991_v30 = vld [vmem:[%s5738_s24 + $0xa8] sm:$0xe] }
 0x228   : > { %v3498_v10 = vrot.slane %v3496_v48, 4  ;;  %v3509_v19 = vshrl.u32 %v6933_v50, 16  ;;  %v3484_v46 = vsel %vm5750_vm3, %v3479_v32, %v6906_v61  ;;  %v5007_v48 = vrot.slane %v4991_v30, 9  ;;  %v5544_v32 = vld [vmem:[%s5738_s24 + $0xb0] sm:$0x1] }
 0x229   : > { %v4295_v13 = vmin.f32 %v4263_v11, 30.0  ;;  %v4160_v0 = vadd.f32 %v4087_v53, %v3762_v45  ;;  %v3038_v57 = vpop.f32.mrf.mxu2  ;;  %v3501_v56 = vrot.slane %v3499_v42, 5 }
 0x22a   : > { %v3109_v52 = vadd.f32 %v3038_v57, %v2819_v15  ;;  %v3940_v15 = vsel %vm5924_vm7, %v5233_v27, %v3939_v5  ;;  %v3943_v57 = vsel %vm5924_vm7, %v3941_v8, %v3942_v43  ;;  %v6966_v8 = vld [vmem:[%s5738_s24 + $0xbc] sm:$0x1] }
 0x22b   : > { %v5382_v62 = vpop.eup %5381  ;;  %v4331_v59 = vmul.f32 1.442695, %v4295_v13  ;;  %v4196_v40 = vmul.f32 %v6783_v28, %v4160_v0  ;;  %5200 = vmatmul.msk.bf16.gmra.mxu3 %vm756_vm4, %v3612_v39  ;;  %v2604_v39 = vrot.slane %v5543_v23, 5  ;;  %v3494_v13 = vsel %vm5750_vm3, %v3489_v6, %v3493_v24  ;;  %v5303_v24 = vld [vmem:[%s5738_s24 + $0xa8] sm:$0xff] }
 0x22c   : > { %v5384_v54 = vpop.eup %5383  ;;  %v4390_v33 = vadd.f32 1.0, %v5382_v62  ;;  %v2820_v0 = vadd.f32 %v2750_v35, %v6294_v31  ;;  %v2607_v6 = vrot.slane %v5544_v32, 5  ;;  %v6962_v31 = vrot.slane %v3505_v41, 5 }
 0x22d   : > { %v4453_v16 = vmul.f32 %v5384_v54, %v6858_v9  ;;  %5385 = vpow2.f32 %v4331_v59  ;;  %v6941_v53 = vadd.f32 %v6794_v20, %v4196_v40  ;;  %v4090_v22 = vpop.f32.mrf.mxu0  ;;  %v2606_v61 = vrot.slane %v2604_v39, 4 }
 0x22e   : > { %5387 = vrcp.f32 %v4390_v33  ;;  %v3692_v11 = vpop.f32.mrf.mxu3  ;;  %v2753_v45 = vpop.f32.mrf.mxu1  ;;  %v3502_v40 = vor.u32 %v3501_v56, %v3498_v10  ;;  %v3511_v35 = vrot.slane %v3509_v19, 4  ;;  %v3594_v33 = vunpack.c.l.b16 %v3494_v13  ;;  %v5182_v56 = vld [vmem:[%s5738_s24 + $0xc0] sm:$0xf] }
 0x22f   : > { %4485 = vst [vmem:[%s6900_s22 + $0x10] sm:$0xff] %v4453_v16  ;;  %v4264_v4 = vsub.f32 0.0, %v6941_v53  ;;  %v3763_v9 = vadd.f32 %v3692_v11, %v3109_v52  ;;  %v3991_v16 = vunpack.c.l.b16 %v3940_v15  ;;  %v2605_v30 = vsel %vm5924_vm7, %v5007_v48, %v2604_v39  ;;  %v5218_v48 = vld [vmem:[%s5738_s24 + $0xb4] sm:$0xe] }
 0x230   : > { %5249 = vmatmul.msk.bf16.gmra.mxu0 %vm756_vm4, %v4010_v58  ;;  %v3593_v58 = vunpack.c.l.b16 %v3484_v46  ;;  %v2608_v10 = vsel %vm5924_vm7, %v2606_v61, %v2607_v6  ;;  %v3512_v39 = vor.u32 %v3511_v35, %v6962_v31  ;;  %v2651_v15 = vunpack.c.l.b16 %v2605_v30 }
 0x231   : > { %v4296_v42 = vmin.f32 %v4264_v4, 30.0  ;;  %v4161_v62 = vadd.f32 %v4090_v22, %v3763_v9  ;;  %v3040_v59 = vpop.f32.mrf.mxu2  ;;  %5023 = vmatmul.msk.bf16.gmra.mxu1 %vm756_vm4, %v2669_v38  ;;  %v3992_v22 = vunpack.c.l.b16 %v3943_v57  ;;  %v3503_v9 = vrot.slane %v3502_v40, 4 }
 0x232   : > { %v3110_v54 = vadd.f32 %v3040_v59, %v2820_v0  ;;  %v3613_v0 = vpack.c.b16 %v3594_v33, %v3593_v58  ;;  %v2652_v57 = vunpack.c.l.b16 %v2608_v10  ;;  %v2821_v32 = vadd.f32 %v2753_v45, %v6307_v1  ;;  %v6991_v45 = vld [vmem:[%s5738_s24 + $0xc4] sm:$0xf]  ;;  %v5545_v10 = vld [vmem:[%s5738_s24 + $0xb8] sm:$0xf] }
 0x233   : > { %v5386_v5 = vpop.eup %5385  ;;  %v4333_v27 = vmul.f32 1.442695, %v4296_v42  ;;  %v4197_v52 = vmul.f32 %v6783_v28, %v4161_v62  ;;  %v3520_v42 = vshrl.u32 %v5182_v56, 16  ;;  %v3523_v62 = vshll.u32 %v5182_v56, 16 }
 0x234   : > { %v5388_v43 = vpop.eup %5387  ;;  %v4391_v38 = vadd.f32 1.0, %v5386_v5  ;;  %v4011_v6 = vpack.c.b16 %v3992_v22, %v3991_v16  ;;  %v3508_v40 = vsel %vm5750_vm3, %v3503_v9, %v6962_v31  ;;  %v3513_v35 = vrot.slane %v3512_v39, 4 }
 0x235   : > { %v4454_v41 = vmul.f32 %v5388_v43, %v6889_v12  ;;  %5389 = vpow2.f32 %v4333_v27  ;;  %v6972_v23 = vadd.f32 %v6794_v20, %v4197_v52  ;;  %v4092_v11 = vpop.f32.mrf.mxu0  ;;  %v3515_v12 = vshll.u32 %v6966_v8, 16 }
 0x236   : > { %5391 = vrcp.f32 %v4391_v38  ;;  %v3694_v19 = vpop.f32.mrf.mxu3  ;;  %5136 = vmatmul.msk.bf16.gmra.mxu2 %vm756_vm4, %v5303_v24  ;;  %v2755_v4 = vpop.f32.mrf.mxu1  ;;  %v3946_v58 = vrot.slane %v6933_v50, 5  ;;  %v5234_v1 = vrot.slane %v5218_v48, 9  ;;  %v2670_v16 = vpack.c.b16 %v2652_v57, %v2651_v15 }
 0x237   : > { %4486 = vst [vmem:[%s6900_s22 + $0x18] sm:$0xff] %v4454_v41  ;;  %v4265_v46 = vsub.f32 0.0, %v6972_v23  ;;  %v3764_v13 = vadd.f32 %v3694_v19, %v3110_v54  ;;  %v3517_v5 = vrot.slane %v3515_v12, 5  ;;  %v3522_v31 = vrot.slane %v3520_v42, 4 }
 0x238   : > { %v3525_v22 = vrot.slane %v3523_v62, 5  ;;  %v2611_v56 = vrot.slane %v5545_v10, 5  ;;  %v3948_v39 = vrot.slane %v3946_v58, 4  ;;  %v3949_v12 = vrot.slane %v6966_v8, 5 }
 0x239   : > { %v4297_v59 = vmin.f32 %v4265_v46, 30.0  ;;  %v4162_v61 = vadd.f32 %v4092_v11, %v3764_v13  ;;  %v3043_v24 = vpop.f32.mrf.mxu2  ;;  %v4992_v11 = vld [vmem:[%s5738_s24 + $0xb4] sm:$0xe]  ;;  %v3529_v46 = vshll.u32 %v6991_v45, 16  ;;  %v3533_v15 = vshrl.u32 %v6991_v45, 16 }
 0x23a   : > { %v3111_v33 = vadd.f32 %v3043_v24, %v2821_v32  ;;  %v2822_v57 = vadd.f32 %v2755_v4, %v6321_v25  ;;  %v3595_v48 = vunpack.c.l.b16 %v3508_v40  ;;  %v5008_v42 = vrot.slane %v4992_v11, 9  ;;  %v5546_v24 = vld [vmem:[%s5738_s24 + $0xbc] sm:$0x1] }
 0x23b   : > { %v5390_v27 = vpop.eup %5389  ;;  %v4335_v52 = vmul.f32 1.442695, %v4297_v59  ;;  %v4198_v54 = vmul.f32 %v6783_v28, %v4162_v61  ;;  %5201 = vmatmul.msk.bf16.gmra.mxu3 %vm756_vm4, %v3613_v0  ;;  %v3518_v0 = vsel %vm5750_vm3, %v3513_v35, %v3517_v5  ;;  %v3526_v8 = vor.u32 %v3525_v22, %v3522_v31 }
 0x23c   : > { %v5392_v43 = vpop.eup %5391  ;;  %v4392_v38 = vadd.f32 1.0, %v5390_v27  ;;  %v2613_v32 = vrot.slane %v2611_v56, 4  ;;  %v2614_v27 = vrot.slane %v5546_v24, 5  ;;  %v3596_v35 = vunpack.c.l.b16 %v3518_v0 }
 0x23d   : > { %v4455_v50 = vmul.f32 %v5392_v43, %v6921_v7  ;;  %5393 = vpow2.f32 %v4335_v52  ;;  %v6995_v30 = vadd.f32 %v6794_v20, %v4198_v54  ;;  %v4095_v41 = vpop.f32.mrf.mxu0  ;;  %v5304_v52 = vld [vmem:[%s5738_s24 + $0xb4] sm:$0xff]  ;;  %v3947_v5 = vsel %vm5924_vm7, %v5234_v1, %v3946_v58  ;;  %v7017_v43 = vld [vmem:[%s5738_s24 + $0xc8] sm:$0x1] }
 0x23e   : > { %5395 = vrcp.f32 %v4392_v38  ;;  %v3697_v19 = vpop.f32.mrf.mxu3  ;;  %v2758_v9 = vpop.f32.mrf.mxu1  ;;  %v3950_v25 = vsel %vm5924_vm7, %v3948_v39, %v3949_v12  ;;  %v3531_v4 = vrot.slane %v3529_v46, 5  ;;  %v3535_v38 = vrot.slane %v3533_v15, 4 }
 0x23f   : > { %4487 = vst [vmem:[%s6900_s22 + $0x20] sm:$0xff] %v4455_v50  ;;  %v4266_v7 = vsub.f32 0.0, %v6995_v30  ;;  %v3765_v13 = vadd.f32 %v3697_v19, %v3111_v33  ;;  %v2612_v22 = vsel %vm5924_vm7, %v5008_v42, %v2611_v56  ;;  %v3527_v50 = vrot.slane %v3526_v8, 4  ;;  %v7268_v8 = vld [vmem:[#allocation5_spill] sm:$0xff] }
 0x240   : > { %5250 = vmatmul.msk.bf16.gmra.mxu0 %vm756_vm4, %v4011_v6  ;;  %v2615_v11 = vsel %vm5924_vm7, %v2613_v32, %v2614_v27  ;;  %v3993_v19 = vunpack.c.l.b16 %v3947_v5  ;;  %v3994_v39 = vunpack.c.l.b16 %v3950_v25  ;;  %v3539_v56 = vshll.u32 %v7017_v43, 16  ;;  %v5219_v32 = vld [vmem:[%s5738_s24 + $0xc0] sm:$0xe] }
 0x241   : > { %v4298_v62 = vmin.f32 %v4266_v7, 30.0  ;;  %v4163_v59 = vadd.f32 %v4095_v41, %v3765_v13  ;;  %v3045_v61 = vpop.f32.mrf.mxu2  ;;  %5024 = vmatmul.msk.bf16.gmra.mxu1 %vm756_vm4, %v2670_v16  ;;  %v3614_v7 = vpack.c.b16 %v3596_v35, %v3595_v48  ;;  %v3536_v13 = vor.u32 %v3535_v38, %v3531_v4 }
 0x242   : > { %v3112_v33 = vadd.f32 %v3045_v61, %v2822_v57  ;;  %v2653_v0 = vunpack.c.l.b16 %v2612_v22  ;;  %v2654_v15 = vunpack.c.l.b16 %v2615_v11  ;;  %v3532_v61 = vsel %vm5750_vm3, %v3527_v50, %v3531_v4  ;;  %v4993_v22 = vld [vmem:[%s5738_s24 + $0xc0] sm:$0xe]  ;;  %v5547_v50 = vld [vmem:[%s5738_s24 + $0xc4] sm:$0xf] }
 0x243   : > { %v5394_v6 = vpop.eup %5393  ;;  %v4337_v40 = vmul.f32 1.442695, %v4298_v62  ;;  %v4199_v54 = vmul.f32 %v6783_v28, %v4163_v59  ;;  %v2823_v62 = vadd.f32 %v2758_v9, %v7268_v8  ;;  %v4012_v24 = vpack.c.b16 %v3994_v39, %v3993_v19 }
 0x244   : > { %v5396_v16 = vpop.eup %5395  ;;  %v4393_v31 = vadd.f32 1.0, %v5394_v6  ;;  %v3541_v27 = vrot.slane %v3539_v56, 5  ;;  %v3537_v9 = vrot.slane %v3536_v13, 4  ;;  %v5185_v6 = vld [vmem:[%s5738_s24 + $0xcc] sm:$0xf]  ;;  %v2671_v4 = vpack.c.b16 %v2654_v15, %v2653_v0 }
 0x245   : > { %v4456_v58 = vmul.f32 %v5396_v16, %v6941_v53  ;;  %5397 = vpow2.f32 %v4337_v40  ;;  %v7023_v1 = vadd.f32 %v6794_v20, %v4199_v54  ;;  %v4097_v41 = vpop.f32.mrf.mxu0  ;;  %v5235_v38 = vrot.slane %v5219_v32, 9  ;;  %v5305_v32 = vld [vmem:[%s5738_s24 + $0xc0] sm:$0xff] }
 0x246   : > { %5399 = vrcp.f32 %v4393_v31  ;;  %v3699_v10 = vpop.f32.mrf.mxu3  ;;  %5137 = vmatmul.msk.bf16.gmra.mxu2 %vm756_vm4, %v5304_v52  ;;  %v2760_v12 = vpop.f32.mrf.mxu1  ;;  %v3953_v52 = vrot.slane %v6991_v45, 5  ;;  %v3956_v39 = vrot.slane %v7017_v43, 5  ;;  %v3544_v56 = vshrl.u32 %v5185_v6, 16 }
 0x247   : > { %4488 = vst [vmem:[%s6900_s22 + $0x28] sm:$0xff] %v4456_v58  ;;  %v4267_v53 = vsub.f32 0.0, %v7023_v1  ;;  %v3766_v46 = vadd.f32 %v3699_v10, %v3112_v33  ;;  %v7039_v33 = vunpack.c.l.b16 %v3532_v61  ;;  %v2618_v58 = vrot.slane %v5547_v50, 5  ;;  %v7078_v50 = vld [vmem:[%s5738_s24 + $0xd4] sm:$0x1] }
 0x248   : > { %v3955_v19 = vrot.slane %v3953_v52, 4  ;;  %v2824_v13 = vadd.f32 %v2760_v12, %v6368_v47  ;;  %v5009_v0 = vrot.slane %v4993_v22, 9  ;;  %v3546_v12 = vrot.slane %v3544_v56, 4 }
 0x249   : > { %v4299_v57 = vmin.f32 %v4267_v53, 30.0  ;;  %v4164_v42 = vadd.f32 %v4097_v41, %v3766_v46  ;;  %v3048_v59 = vpop.f32.mrf.mxu2  ;;  %v7048_v41 = vld [vmem:[%s5738_s24 + $0xd0] sm:$0xf]  ;;  %v3542_v46 = vsel %vm5750_vm3, %v3537_v9, %v3541_v27 }
 0x24a   : > { %v3113_v25 = vadd.f32 %v3048_v59, %v2823_v62  ;;  %v3553_v15 = vshll.u32 %v7048_v41, 16  ;;  %v3557_v43 = vshrl.u32 %v7048_v41, 16  ;;  %v2620_v62 = vrot.slane %v2618_v58, 4  ;;  %v5548_v59 = vld [vmem:[%s5738_s24 + $0xc8] sm:$0x1] }
 0x24b   : > { %v5398_v5 = vpop.eup %5397  ;;  %v4339_v48 = vmul.f32 1.442695, %v4299_v57  ;;  %v4200_v35 = vmul.f32 %v6783_v28, %v4164_v42  ;;  %5202 = vmatmul.msk.bf16.gmra.mxu3 %vm756_vm4, %v3614_v7  ;;  %v3547_v7 = vshll.u32 %v5185_v6, 16  ;;  %v2621_v61 = vrot.slane %v5548_v59, 5 }
 0x24c   : > { %v5400_v40 = vpop.eup %5399  ;;  %v4394_v54 = vadd.f32 1.0, %v5398_v5  ;;  %v3598_v27 = vunpack.c.l.b16 %v3542_v46  ;;  %v3957_v47 = vsel %vm5924_vm7, %v3955_v19, %v3956_v39 }
 0x24d   : > { %v4457_v45 = vmul.f32 %v5400_v40, %v6972_v23  ;;  %5401 = vpow2.f32 %v4339_v48  ;;  %v7043_v16 = vadd.f32 %v6794_v20, %v4200_v35  ;;  %v4100_v31 = vpop.f32.mrf.mxu0  ;;  %v3549_v9 = vrot.slane %v3547_v7, 5 }
 0x24e   : > { %5403 = vrcp.f32 %v4394_v54  ;;  %v3702_v11 = vpop.f32.mrf.mxu3  ;;  %v2763_v10 = vpop.f32.mrf.mxu1  ;;  %v2619_v54 = vsel %vm5924_vm7, %v5009_v0, %v2618_v58  ;;  %v2622_v22 = vsel %vm5924_vm7, %v2620_v62, %v2621_v61  ;;  %v3996_v19 = vunpack.c.l.b16 %v3957_v47 }
 0x24f   : > { %4489 = vst [vmem:[%s6900_s22 + $0x30] sm:$0xff] %v4457_v45  ;;  %v4268_v23 = vsub.f32 0.0, %v7043_v16  ;;  %v3767_v53 = vadd.f32 %v3702_v11, %v3113_v25  ;;  %v2655_v46 = vunpack.c.l.b16 %v2619_v54  ;;  %v2656_v7 = vunpack.c.l.b16 %v2622_v22 }
 0x250   : > { %5251 = vmatmul.msk.bf16.gmra.mxu0 %vm756_vm4, %v4012_v24  ;;  %v3954_v24 = vsel %vm5924_vm7, %v5235_v38, %v3953_v52  ;;  %v3559_v52 = vrot.slane %v3557_v43, 4  ;;  %v3563_v0 = vshll.u32 %v7078_v50, 16 }
 0x251   : > { %v4300_v57 = vmin.f32 %v4268_v23, 30.0  ;;  %v4165_v42 = vadd.f32 %v4100_v31, %v3767_v53  ;;  %v3050_v8 = vpop.f32.mrf.mxu2  ;;  %5025 = vmatmul.msk.bf16.gmra.mxu1 %vm756_vm4, %v2671_v4  ;;  %v7069_v4 = vrot.slane %v3553_v15, 5  ;;  %v3995_v58 = vunpack.c.l.b16 %v3954_v24 }
 0x252   : > { %v3114_v25 = vadd.f32 %v3050_v8, %v2824_v13  ;;  %v3615_v23 = vpack.c.b16 %v3598_v27, %v7039_v33  ;;  %v3550_v53 = vor.u32 %v3549_v9, %v3546_v12  ;;  %v2672_v47 = vpack.c.b16 %v2656_v7, %v2655_v46 }
 0x253   : > { %v5402_v5 = vpop.eup %5401  ;;  %v4341_v48 = vmul.f32 1.442695, %v4300_v57  ;;  %v4201_v35 = vmul.f32 %v6783_v28, %v4165_v42  ;;  %v3560_v13 = vor.u32 %v3559_v52, %v7069_v4  ;;  %v2825_v57 = vadd.f32 %v2763_v10, %v6379_v51 }
 0x254   : > { %v5404_v6 = vpop.eup %5403  ;;  %v4395_v40 = vadd.f32 1.0, %v5402_v5  ;;  %v4013_v8 = vpack.c.b16 %v3996_v19, %v3995_v58  ;;  %v3565_v5 = vrot.slane %v3563_v0, 5  ;;  %v5306_v19 = vld [vmem:[%s5738_s24 + $0xcc] sm:$0xff]  ;;  %v7119_v0 = vld [vmem:[%s7254_s3] ss:$0 sm:$0xff] }
 0x255   : > { %v4458_v38 = vmul.f32 %v5404_v6, %v6995_v30  ;;  %5405 = vpow2.f32 %v4341_v48  ;;  %v7073_v45 = vadd.f32 %v6794_v20, %v4201_v35  ;;  %v4102_v31 = vpop.f32.mrf.mxu0  ;;  %v3561_v12 = vrot.slane %v3560_v13, 4  ;;  %v5220_v35 = vld [vmem:[%s5738_s24 + $0xcc] sm:$0xe] }
 0x256   : > { %5407 = vrcp.f32 %v4395_v40  ;;  %v3704_v11 = vpop.f32.mrf.mxu3  ;;  %5138 = vmatmul.msk.bf16.gmra.mxu2 %vm756_vm4, %v5305_v32  ;;  %v2765_v39 = vpop.f32.mrf.mxu1  ;;  %v3551_v32 = vrot.slane %v3550_v53, 4  ;;  %v5236_v54 = vrot.slane %v5220_v35, 9 }
 0x257   : > { %4490 = vst [vmem:[%s6900_s22 + $0x38] sm:$0xff] %v4458_v38  ;;  %v4269_v30 = vsub.f32 0.0, %v7073_v45  ;;  %v3768_v56 = vadd.f32 %v3704_v11, %v3114_v25 }
 0x259   : > { %v4301_v15 = vmin.f32 %v4269_v30, 30.0  ;;  %v4166_v43 = vadd.f32 %v4102_v31, %v3768_v56  ;;  %v3053_v42 = vpop.f32.mrf.mxu2  ;;  %v7269_v31 = vld [vmem:[#allocation6_spill] sm:$0xff] }
 0x25a   : > { %v3115_v33 = vadd.f32 %v3053_v42, %v2825_v57  ;;  %v2826_v22 = vadd.f32 %v2765_v39, %v7269_v31 }
 0x25b   : > { %v5406_v62 = vpop.eup %5405  ;;  %v4343_v59 = vmul.f32 1.442695, %v4301_v15  ;;  %v4202_v61 = vmul.f32 %v6783_v28, %v4166_v43  ;;  %5203 = vmatmul.msk.bf16.gmra.mxu3 %vm756_vm4, %v3615_v23  ;;  %v3960_v28 = vrot.slane %v7048_v41, 5  ;;  %v3963_v41 = vrot.slane %v7078_v50, 5 }
 0x25c   : > { %v5408_v27 = vpop.eup %5407  ;;  %v4396_v24 = vadd.f32 1.0, %v5406_v62 }
 0x25d   : > { %v4459_v48 = vmul.f32 %v5408_v27, %v7023_v1  ;;  %5409 = vpow2.f32 %v4343_v59  ;;  %v7091_v51 = vadd.f32 %v6794_v20, %v4202_v61  ;;  %v4105_v10 = vpop.f32.mrf.mxu0  ;;  %v3556_v1 = vsel %vm5750_vm3, %v3551_v32, %v7069_v4 }
 0x25e   : > { %5411 = vrcp.f32 %v4396_v24  ;;  %v3707_v25 = vpop.f32.mrf.mxu3  ;;  %v2768_v9 = vpop.f32.mrf.mxu1  ;;  %v3566_v20 = vsel %vm5750_vm3, %v3561_v12, %v3565_v5  ;;  %v3962_v58 = vrot.slane %v3960_v28, 4  ;;  %v3599_v30 = vunpack.c.l.b16 %v3556_v1 }
 0x25f   : > { %4491 = vst [vmem:[%s6900_s22 + $0x40] sm:$0xff] %v4459_v48  ;;  %v4270_v6 = vsub.f32 0.0, %v7091_v51  ;;  %v3769_v40 = vadd.f32 %v3707_v25, %v3115_v33  ;;  %v3600_v53 = vunpack.c.l.b16 %v3566_v20  ;;  %v3961_v7 = vsel %vm5924_vm7, %v5236_v54, %v3960_v28 }
 0x260   : > { %5252 = vmatmul.msk.bf16.gmra.mxu0 %vm756_vm4, %v4013_v8  ;;  %v3964_v57 = vsel %vm5924_vm7, %v3962_v58, %v3963_v41  ;;  %v3997_v61 = vunpack.c.l.b16 %v3961_v7  ;;  %v2827_v24 = vadd.f32 %v2768_v9, %v6415_v29 }
 0x261   : > { %v4302_v52 = vmin.f32 %v4270_v6, 30.0  ;;  %v4167_v38 = vadd.f32 %v4105_v10, %v3769_v40  ;;  %v3055_v11 = vpop.f32.mrf.mxu2  ;;  %5026 = vmatmul.msk.bf16.gmra.mxu1 %vm756_vm4, %v2672_v47  ;;  %v3616_v59 = vpack.c.b16 %v3600_v53, %v3599_v30  ;;  %v3998_v33 = vunpack.c.l.b16 %v3964_v57 }
 0x262   : > { %v3116_v50 = vadd.f32 %v3055_v11, %v2826_v22 }
 0x263   : > { %v5410_v56 = vpop.eup %5409  ;;  %v4345_v4 = vmul.f32 1.442695, %v4302_v52  ;;  %v4203_v23 = vmul.f32 %v7110_v36, %v4167_v38  ;;  %v4014_v28 = vpack.c.b16 %v3998_v33, %v3997_v61 }
 0x264   : > { %v5412_v46 = vpop.eup %5411  ;;  %v4397_v39 = vadd.f32 1.0, %v5410_v56 }
 0x265   : > { %v4460_v13 = vmul.f32 %v5412_v46, %v7043_v16  ;;  %5413 = vpow2.f32 %v4345_v4  ;;  %v7122_v15 = vadd.f32 %v7119_v0, %v4203_v23  ;;  %v4107_v43 = vpop.f32.mrf.mxu0 }
 0x266   : > { %5415 = vrcp.f32 %v4397_v39  ;;  %v3709_v42 = vpop.f32.mrf.mxu3  ;;  %5139 = vmatmul.msk.bf16.gmra.mxu2 %vm756_vm4, %v5306_v19  ;;  %v2770_v8 = vpop.f32.mrf.mxu1 }
 0x267   : > { %4492 = vst [vmem:[%s6900_s22 + $0x48] sm:$0xff] %v4460_v13  ;;  %v4271_v16 = vsub.f32 0.0, %v7122_v15  ;;  %v3770_v62 = vadd.f32 %v3709_v42, %v3116_v50  ;;  %v2828_v52 = vadd.f32 %v2770_v8, %v6439_v37 }
 0x269   : > { %v4303_v32 = vmin.f32 %v4271_v16, 30.0  ;;  %v4168_v27 = vadd.f32 %v4107_v43, %v3770_v62  ;;  %v3058_v47 = vpop.f32.mrf.mxu2 }
 0x26a   : > { %v3117_v48 = vadd.f32 %v3058_v47, %v2827_v24 }
 0x26b   : > { %v5414_v18 = vpop.eup %5413  ;;  %v4347_v12 = vmul.f32 1.442695, %v4303_v32  ;;  %v4204_v5 = vmul.f32 %v7110_v36, %v4168_v27  ;;  %5204 = vmatmul.msk.bf16.gmra.mxu3 %vm756_vm4, %v3616_v59 }
 0x26c   : > { %v5416_v10 = vpop.eup %5415  ;;  %v4398_v35 = vadd.f32 1.0, %v5414_v18 }
 0x26d   : > { %v4461_v25 = vmul.f32 %v5416_v10, %v7073_v45  ;;  %5417 = vpow2.f32 %v4347_v12  ;;  %v4240_v6 = vadd.f32 %v7119_v0, %v4204_v5  ;;  %v4110_v40 = vpop.f32.mrf.mxu0 }
 0x26e   : > { %5419 = vrcp.f32 %v4398_v35  ;;  %v3712_v29 = vpop.f32.mrf.mxu3  ;;  %v2773_v9 = vpop.f32.mrf.mxu1 }
 0x26f   : > { %4493 = vst [vmem:[%s6900_s22 + $0x50] sm:$0xff] %v4461_v25  ;;  %v4272_v1 = vsub.f32 0.0, %v4240_v6  ;;  %v3771_v20 = vadd.f32 %v3712_v29, %v3117_v48  ;;  %v2829_v7 = vadd.f32 %v2773_v9, %v6458_v34 }
 0x270   : > { %5253 = vmatmul.msk.bf16.gmra.mxu0 %vm756_vm4, %v4014_v28 }
 0x271   : > { %v4304_v54 = vmin.f32 %v4272_v1, 30.0  ;;  %v4169_v41 = vadd.f32 %v4110_v40, %v3771_v20  ;;  %v3060_v38 = vpop.f32.mrf.mxu2 }
 0x272   : > { %v3118_v11 = vadd.f32 %v3060_v38, %v2828_v52 }
 0x273   : > { %v5418_v31 = vpop.eup %5417  ;;  %v4349_v45 = vmul.f32 1.442695, %v4304_v54  ;;  %v4205_v22 = vmul.f32 %v7110_v36, %v4169_v41 }
 0x274   : > { %v5420_v58 = vpop.eup %5419  ;;  %v4399_v19 = vadd.f32 1.0, %v5418_v31 }
 0x275   : > { %v4462_v30 = vmul.f32 %v5420_v58, %v7091_v51  ;;  %5421 = vpow2.f32 %v4349_v45  ;;  %v4241_v56 = vadd.f32 %v7119_v0, %v4205_v22  ;;  %v4112_v4 = vpop.f32.mrf.mxu0 }
 0x276   : > { %5423 = vrcp.f32 %v4399_v19  ;;  %v3714_v23 = vpop.f32.mrf.mxu3  ;;  %v2775_v50 = vpop.f32.mrf.mxu1 }
 0x277   : > { %4494 = vst [vmem:[%s6900_s22 + $0x58] sm:$0xff] %v4462_v30  ;;  %v4273_v53 = vsub.f32 0.0, %v4241_v56  ;;  %v3772_v37 = vadd.f32 %v3714_v23, %v3118_v11  ;;  %v2830_v18 = vadd.f32 %v2775_v50, %v6482_v3 }
 0x279   : > { %v4305_v46 = vmin.f32 %v4273_v53, 30.0  ;;  %v4170_v39 = vadd.f32 %v4112_v4, %v3772_v37  ;;  %v3063_v13 = vpop.f32.mrf.mxu2 }
 0x27a   : > { %v3119_v42 = vadd.f32 %v3063_v13, %v2829_v7 }
 0x27b   : > { %v5422_v43 = vpop.eup %5421  ;;  %v4351_v57 = vmul.f32 1.442695, %v4305_v46  ;;  %v4206_v51 = vmul.f32 %v7110_v36, %v4170_v39 }
 0x27c   : > { %v5424_v8 = vpop.eup %5423  ;;  %v4400_v16 = vadd.f32 1.0, %v5422_v43 }
 0x27d   : > { %v4463_v62 = vmul.f32 %v5424_v8, %v7122_v15  ;;  %5425 = vpow2.f32 %v4351_v57  ;;  %v4242_v59 = vadd.f32 %v7119_v0, %v4206_v51  ;;  %v4115_v61 = vpop.f32.mrf.mxu0 }
 0x27e   : > { %5427 = vrcp.f32 %v4400_v16  ;;  %v3717_v33 = vpop.f32.mrf.mxu3  ;;  %v2778_v32 = vpop.f32.mrf.mxu1 }
 0x27f   : > { %4495 = vst [vmem:[%s6900_s22 + $0x60] sm:$0xff] %v4463_v62  ;;  %v4274_v27 = vsub.f32 0.0, %v4242_v59  ;;  %v3773_v34 = vadd.f32 %v3717_v33, %v3119_v42  ;;  %v2831_v52 = vadd.f32 %v2778_v32, %v6501_v2 }
 0x281   : > { %v4306_v24 = vmin.f32 %v4274_v27, 30.0  ;;  %v4171_v47 = vadd.f32 %v4115_v61, %v3773_v34  ;;  %v3065_v12 = vpop.f32.mrf.mxu2 }
 0x282   : > { %v3120_v10 = vadd.f32 %v3065_v12, %v2830_v18 }
 0x283   : > { %v5426_v5 = vpop.eup %5425  ;;  %v4353_v48 = vmul.f32 1.442695, %v4306_v24  ;;  %v4207_v15 = vmul.f32 %v7110_v36, %v4171_v47 }
 0x284   : > { %v5428_v35 = vpop.eup %5427  ;;  %v4401_v28 = vadd.f32 1.0, %v5426_v5 }
 0x285   : > { %v4464_v25 = vmul.f32 %v5428_v35, %v4240_v6  ;;  %5429 = vpow2.f32 %v4353_v48  ;;  %v4243_v40 = vadd.f32 %v7119_v0, %v4207_v15  ;;  %v4117_v29 = vpop.f32.mrf.mxu0 }
 0x286   : > { %5431 = vrcp.f32 %v4401_v28  ;;  %v3719_v9 = vpop.f32.mrf.mxu3  ;;  %v2780_v1 = vpop.f32.mrf.mxu1 }
 0x287   : > { %4496 = vst [vmem:[%s6900_s22 + $0x68] sm:$0xff] %v4464_v25  ;;  %v4275_v20 = vsub.f32 0.0, %v4243_v40  ;;  %v3774_v54 = vadd.f32 %v3719_v9, %v3120_v10  ;;  %v2832_v39 = vadd.f32 %v2780_v1, %v6525_v26 }
 0x289   : > { %v4307_v3 = vmin.f32 %v4275_v20, 30.0  ;;  %v4172_v41 = vadd.f32 %v4117_v29, %v3774_v54  ;;  %v3068_v38 = vpop.f32.mrf.mxu2 }
 0x28a   : > { %v3121_v22 = vadd.f32 %v3068_v38, %v2831_v52 }
 0x28b   : > { %v5430_v31 = vpop.eup %5429  ;;  %v4355_v45 = vmul.f32 1.442695, %v4307_v3  ;;  %v4208_v6 = vmul.f32 %v7110_v36, %v4172_v41 }
 0x28c   : > { %v5432_v11 = vpop.eup %5431  ;;  %v4402_v58 = vadd.f32 1.0, %v5430_v31 }
 0x28d   : > { %v4465_v19 = vmul.f32 %v5432_v11, %v4241_v56  ;;  %5433 = vpow2.f32 %v4355_v45  ;;  %v4244_v30 = vadd.f32 %v7119_v0, %v4208_v6  ;;  %v4120_v4 = vpop.f32.mrf.mxu0 }
 0x28e   : > { %5435 = vrcp.f32 %v4402_v58  ;;  %v3722_v23 = vpop.f32.mrf.mxu3  ;;  %v2783_v50 = vpop.f32.mrf.mxu1 }
 0x28f   : > { %4497 = vst [vmem:[%s6900_s22 + $0x70] sm:$0xff] %v4465_v19  ;;  %v4276_v53 = vsub.f32 0.0, %v4244_v30  ;;  %v3775_v37 = vadd.f32 %v3722_v23, %v3121_v22  ;;  %v2833_v24 = vadd.f32 %v2783_v50, %v6544_v60 }
 0x291   : > { %v4308_v2 = vmin.f32 %v4276_v53, 30.0  ;;  %v4173_v46 = vadd.f32 %v4120_v4, %v3775_v37  ;;  %v3070_v7 = vpop.f32.mrf.mxu2 }
 0x292   : > { %v3122_v57 = vadd.f32 %v3070_v7, %v2832_v39 }
 0x293   : > { %v5434_v13 = vpop.eup %5433  ;;  %v4357_v43 = vmul.f32 1.442695, %v4308_v2  ;;  %v4209_v56 = vmul.f32 %v7110_v36, %v4173_v46 }
 0x294   : > { %v5436_v51 = vpop.eup %5435  ;;  %v4403_v42 = vadd.f32 1.0, %v5434_v13 }
 0x295   : > { %v4466_v8 = vmul.f32 %v5436_v51, %v4242_v59  ;;  %5437 = vpow2.f32 %v4357_v43  ;;  %v4245_v16 = vadd.f32 %v7119_v0, %v4209_v56  ;;  %v4122_v62 = vpop.f32.mrf.mxu0 }
 0x296   : > { %5439 = vrcp.f32 %v4403_v42  ;;  %v3724_v61 = vpop.f32.mrf.mxu3  ;;  %v2785_v33 = vpop.f32.mrf.mxu1 }
 0x297   : > { %4498 = vst [vmem:[%s6900_s22 + $0x78] sm:$0xff] %v4466_v8  ;;  %v4277_v32 = vsub.f32 0.0, %v4245_v16  ;;  %v3776_v27 = vadd.f32 %v3724_v61, %v3122_v57  ;;  %v2834_v54 = vadd.f32 %v2785_v33, %v6568_v14 }
 0x299   : > { %v4309_v26 = vmin.f32 %v4277_v32, 30.0  ;;  %v4174_v34 = vadd.f32 %v4122_v62, %v3776_v27  ;;  %v3073_v47 = vpop.f32.mrf.mxu2 }
 0x29a   : > { %v3123_v5 = vadd.f32 %v3073_v47, %v2833_v24 }
 0x29b   : > { %v5438_v18 = vpop.eup %5437  ;;  %v4359_v12 = vmul.f32 1.442695, %v4309_v26  ;;  %v4210_v59 = vmul.f32 %v7110_v36, %v4174_v34 }
 0x29c   : > { %v5440_v48 = vpop.eup %5439  ;;  %v4404_v15 = vadd.f32 1.0, %v5438_v18 }
 0x29d   : > { %v4467_v10 = vmul.f32 %v5440_v48, %v4243_v40  ;;  %5441 = vpow2.f32 %v4359_v12  ;;  %v4246_v35 = vadd.f32 %v7119_v0, %v4210_v59  ;;  %v4125_v28 = vpop.f32.mrf.mxu0 }
 0x29e   : > { %5443 = vrcp.f32 %v4404_v15  ;;  %v3727_v25 = vpop.f32.mrf.mxu3  ;;  %v2788_v29 = vpop.f32.mrf.mxu1 }
 0x29f   : > { %4499 = vst [vmem:[%s6900_s22 + $0x80] sm:$0xff] %v4467_v10  ;;  %v4278_v9 = vsub.f32 0.0, %v4246_v35  ;;  %v3777_v1 = vadd.f32 %v3727_v25, %v3123_v5  ;;  %v2835_v53 = vadd.f32 %v2788_v29, %v6587_v21 }
 0x2a1   : > { %v4310_v60 = vmin.f32 %v4278_v9, 30.0  ;;  %v4175_v20 = vadd.f32 %v4125_v28, %v3777_v1  ;;  %v3075_v3 = vpop.f32.mrf.mxu2 }
 0x2a2   : > { %v3124_v38 = vadd.f32 %v3075_v3, %v2834_v54 }
 0x2a3   : > { %v5442_v41 = vpop.eup %5441  ;;  %v4361_v52 = vmul.f32 1.442695, %v4310_v60  ;;  %v4211_v40 = vmul.f32 %v7110_v36, %v4175_v20 }
 0x2a4   : > { %v5444_v31 = vpop.eup %5443  ;;  %v4405_v45 = vadd.f32 1.0, %v5442_v41 }
 0x2a5   : > { %v4468_v6 = vmul.f32 %v5444_v31, %v4244_v30  ;;  %5445 = vpow2.f32 %v4361_v52  ;;  %v4247_v22 = vadd.f32 %v7119_v0, %v4211_v40  ;;  %v4127_v11 = vpop.f32.mrf.mxu0 }
 0x2a6   : > { %5447 = vrcp.f32 %v4405_v45  ;;  %v3729_v58 = vpop.f32.mrf.mxu3  ;;  %v2790_v19 = vpop.f32.mrf.mxu1 }
 0x2a7   : > { %4500 = vst [vmem:[%s6900_s22 + $0x88] sm:$0xff] %v4468_v6  ;;  %v4279_v4 = vsub.f32 0.0, %v4247_v22  ;;  %v3778_v23 = vadd.f32 %v3729_v58, %v3124_v38  ;;  %v2836_v33 = vadd.f32 %v2790_v19, %v6611_v49 }
 0x2a9   : > { %v4311_v14 = vmin.f32 %v4279_v4, 30.0  ;;  %v4176_v50 = vadd.f32 %v4127_v11, %v3778_v23  ;;  %v3078_v37 = vpop.f32.mrf.mxu2  ;;  %v7270_v11 = vld [vmem:[#allocation7_spill] sm:$0xff] }
 0x2aa   : > { %v3125_v39 = vadd.f32 %v3078_v37, %v2835_v53 }
 0x2ab   : > { %v5446_v2 = vpop.eup %5445  ;;  %v4363_v46 = vmul.f32 1.442695, %v4311_v14  ;;  %v4212_v30 = vmul.f32 %v7110_v36, %v4176_v50 }
 0x2ac   : > { %v5448_v7 = vpop.eup %5447  ;;  %v4406_v13 = vadd.f32 1.0, %v5446_v2 }
 0x2ad   : > { %v4469_v43 = vmul.f32 %v5448_v7, %v4245_v16  ;;  %5449 = vpow2.f32 %v4363_v46  ;;  %v4248_v56 = vadd.f32 %v7119_v0, %v4212_v30  ;;  %v4130_v57 = vpop.f32.mrf.mxu0 }
 0x2ae   : > { %5451 = vrcp.f32 %v4406_v13  ;;  %v3732_v51 = vpop.f32.mrf.mxu3  ;;  %v2793_v42 = vpop.f32.mrf.mxu1 }
 0x2af   : > { %4501 = vst [vmem:[%s6900_s22 + $0x90] sm:$0xff] %v4469_v43  ;;  %v4280_v8 = vsub.f32 0.0, %v4248_v56  ;;  %v3779_v62 = vadd.f32 %v3732_v51, %v3125_v39  ;;  %v2837_v25 = vadd.f32 %v2793_v42, %v6630_v17 }
 0x2b1   : > { %v4312_v21 = vmin.f32 %v4280_v8, 30.0  ;;  %v4177_v61 = vadd.f32 %v4130_v57, %v3779_v62  ;;  %v3080_v32 = vpop.f32.mrf.mxu2 }
 0x2b2   : > { %v3126_v34 = vadd.f32 %v3080_v32, %v2836_v33 }
 0x2b3   : > { %v5450_v27 = vpop.eup %5449  ;;  %v4365_v26 = vmul.f32 1.442695, %v4312_v21  ;;  %v4213_v16 = vmul.f32 %v7110_v36, %v4177_v61 }
 0x2b4   : > { %v5452_v24 = vpop.eup %5451  ;;  %v4407_v47 = vadd.f32 1.0, %v5450_v27 }
 0x2b5   : > { %v4470_v18 = vmul.f32 %v5452_v24, %v4246_v35  ;;  %5453 = vpow2.f32 %v4365_v26  ;;  %v4249_v12 = vadd.f32 %v7119_v0, %v4213_v16  ;;  %v4132_v59 = vpop.f32.mrf.mxu0 }
 0x2b6   : > { %5455 = vrcp.f32 %v4407_v47  ;;  %v3734_v5 = vpop.f32.mrf.mxu3  ;;  %v2795_v48 = vpop.f32.mrf.mxu1 }
 0x2b7   : > { %4502 = vst [vmem:[%s6900_s22 + $0x98] sm:$0xff] %v4470_v18  ;;  %v4281_v15 = vsub.f32 0.0, %v4249_v12  ;;  %v3780_v10 = vadd.f32 %v3734_v5, %v3126_v34  ;;  %v2838_v58 = vadd.f32 %v2795_v48, %v7270_v11 }
 0x2b9   : > { %v4313_v49 = vmin.f32 %v4281_v15, 30.0  ;;  %v4178_v28 = vadd.f32 %v4132_v59, %v3780_v10  ;;  %v3083_v29 = vpop.f32.mrf.mxu2 }
 0x2ba   : > { %v3127_v60 = vadd.f32 %v3083_v29, %v2837_v25 }
 0x2bb   : > { %v5454_v9 = vpop.eup %5453  ;;  %v4367_v1 = vmul.f32 1.442695, %v4313_v49  ;;  %v4214_v35 = vmul.f32 %v7110_v36, %v4178_v28 }
 0x2bc   : > { %v5456_v20 = vpop.eup %5455  ;;  %v4408_v54 = vadd.f32 1.0, %v5454_v9 }
 0x2bd   : > { %v4471_v3 = vmul.f32 %v5456_v20, %v4247_v22  ;;  %5457 = vpow2.f32 %v4367_v1  ;;  %v4250_v41 = vadd.f32 %v7119_v0, %v4214_v35  ;;  %v4135_v52 = vpop.f32.mrf.mxu0 }
 0x2be   : > { %5459 = vrcp.f32 %v4408_v54  ;;  %v3737_v40 = vpop.f32.mrf.mxu3  ;;  %v2798_v38 = vpop.f32.mrf.mxu1 }
 0x2bf   : > { %4503 = vst [vmem:[%s6900_s22 + $0xa0] sm:$0xff] %v4471_v3  ;;  %v4282_v31 = vsub.f32 0.0, %v4250_v41  ;;  %v3781_v45 = vadd.f32 %v3737_v40, %v3127_v60  ;;  %v2839_v51 = vadd.f32 %v2798_v38, %v6671_v44 }
 0x2c1   : > { %v4314_v17 = vmin.f32 %v4282_v31, 30.0  ;;  %v4179_v6 = vadd.f32 %v4135_v52, %v3781_v45  ;;  %v3085_v19 = vpop.f32.mrf.mxu2 }
 0x2c2   : > { %v3128_v14 = vadd.f32 %v3085_v19, %v2838_v58 }
 0x2c3   : > { %v5458_v4 = vpop.eup %5457  ;;  %v4369_v23 = vmul.f32 1.442695, %v4314_v17  ;;  %v4215_v22 = vmul.f32 %v7110_v36, %v4179_v6 }
 0x2c4   : > { %v5460_v50 = vpop.eup %5459  ;;  %v4409_v53 = vadd.f32 1.0, %v5458_v4 }
 0x2c5   : > { %v4472_v37 = vmul.f32 %v5460_v50, %v4248_v56  ;;  %5461 = vpow2.f32 %v4369_v23  ;;  %v4251_v2 = vadd.f32 %v7119_v0, %v4215_v22  ;;  %v4137_v46 = vpop.f32.mrf.mxu0 }
 0x2c6   : > { %5463 = vrcp.f32 %v4409_v53  ;;  %v3739_v30 = vpop.f32.mrf.mxu3  ;;  %v2800_v39 = vpop.f32.mrf.mxu1 }
 0x2c7   : > { %4504 = vst [vmem:[%s6900_s22 + $0xa8] sm:$0xff] %v4472_v37  ;;  %v4283_v7 = vsub.f32 0.0, %v4251_v2  ;;  %v3782_v13 = vadd.f32 %v3739_v30, %v3128_v14  ;;  %v2840_v59 = vadd.f32 %v2800_v39, %v6691_v55  ;;  %v7271_v14 = vld [vmem:[#allocation8_spill] sm:$0xff] }
 0x2c9   : > { %v4315_v43 = vmin.f32 %v4283_v7, 30.0  ;;  %v4180_v57 = vadd.f32 %v4137_v46, %v3782_v13  ;;  %v3088_v42 = vpop.f32.mrf.mxu2 }
 0x2ca   : > { %v3129_v21 = vadd.f32 %v3088_v42, %v2839_v51 }
 0x2cb   : > { %v5462_v8 = vpop.eup %5461  ;;  %v4371_v62 = vmul.f32 1.442695, %v4315_v43  ;;  %v4216_v56 = vmul.f32 %v7110_v36, %v4180_v57 }
 0x2cc   : > { %v5464_v61 = vpop.eup %5463  ;;  %v4410_v33 = vadd.f32 1.0, %v5462_v8 }
 0x2cd   : > { %v4473_v32 = vmul.f32 %v5464_v61, %v4249_v12  ;;  %5465 = vpow2.f32 %v4371_v62  ;;  %v4252_v27 = vadd.f32 %v7119_v0, %v4216_v56  ;;  %v4140_v26 = vpop.f32.mrf.mxu0  ;;  %v7272_v61 = vld [vmem:[#allocation9_spill] sm:$0xff] }
 0x2ce   : > { %5467 = vrcp.f32 %v4410_v33  ;;  %v3742_v16 = vpop.f32.mrf.mxu3  ;;  %v2803_v47 = vpop.f32.mrf.mxu1 }
 0x2cf   : > { %4505 = vst [vmem:[%s6900_s22 + $0xb0] sm:$0xff] %v4473_v32  ;;  %v4284_v34 = vsub.f32 0.0, %v4252_v27  ;;  %v3783_v24 = vadd.f32 %v3742_v16, %v3129_v21  ;;  %v2841_v54 = vadd.f32 %v2803_v47, %v6710_v63 }
 0x2d1   : > { %v4316_v44 = vmin.f32 %v4284_v34, 30.0  ;;  %v4181_v18 = vadd.f32 %v4140_v26, %v3783_v24  ;;  %v3090_v5 = vpop.f32.mrf.mxu2 }
 0x2d2   : > { %v3130_v10 = vadd.f32 %v3090_v5, %v2840_v59 }
 0x2d3   : > { %v5466_v48 = vpop.eup %5465  ;;  %v4373_v15 = vmul.f32 1.442695, %v4316_v44  ;;  %v4217_v12 = vmul.f32 %v7110_v36, %v4181_v18 }
 0x2d4   : > { %v5468_v49 = vpop.eup %5467  ;;  %v4411_v28 = vadd.f32 1.0, %v5466_v48 }
 0x2d5   : > { %v4474_v25 = vmul.f32 %v5468_v49, %v4250_v41  ;;  %5469 = vpow2.f32 %v4373_v15  ;;  %v4253_v29 = vadd.f32 %v7119_v0, %v4217_v12  ;;  %v4142_v9 = vpop.f32.mrf.mxu0 }
 0x2d6   : > { %5471 = vrcp.f32 %v4411_v28  ;;  %v3744_v1 = vpop.f32.mrf.mxu3  ;;  %v2805_v52 = vpop.f32.mrf.mxu1  ;;  %v7273_v28 = vld [vmem:[#allocation10_spill] sm:$0xff] }
 0x2d7   : > { %4506 = vst [vmem:[%s6900_s22 + $0xb8] sm:$0xff] %v4474_v25  ;;  %v4285_v35 = vsub.f32 0.0, %v4253_v29  ;;  %v3784_v60 = vadd.f32 %v3744_v1, %v3130_v10  ;;  %v2842_v50 = vadd.f32 %v2805_v52, %v7271_v14 }
 0x2d9   : > { %v4317_v20 = vmin.f32 %v4285_v35, 30.0  ;;  %v4182_v55 = vadd.f32 %v4142_v9, %v3784_v60  ;;  %v3093_v3 = vpop.f32.mrf.mxu2 }
 0x2da   : > { %v3131_v31 = vadd.f32 %v3093_v3, %v2841_v54 }
 0x2db   : > { %v5470_v40 = vpop.eup %5469  ;;  %v4375_v38 = vmul.f32 1.442695, %v4317_v20  ;;  %v4218_v41 = vmul.f32 %v7110_v36, %v4182_v55 }
 0x2dc   : > { %v5472_v45 = vpop.eup %5471  ;;  %v4412_v17 = vadd.f32 1.0, %v5470_v40 }
 0x2dd   : > { %v4475_v6 = vmul.f32 %v5472_v45, %v4251_v2  ;;  %5473 = vpow2.f32 %v4375_v38  ;;  %v4254_v11 = vadd.f32 %v7119_v0, %v4218_v41  ;;  %v4145_v58 = vpop.f32.mrf.mxu0 }
 0x2de   : > { %5475 = vrcp.f32 %v4412_v17  ;;  %v3747_v19 = vpop.f32.mrf.mxu3  ;;  %v2808_v39 = vpop.f32.mrf.mxu1 }
 0x2df   : > { %4507 = vst [vmem:[%s6900_s22 + $0xc0] sm:$0xff] %v4475_v6  ;;  %v4286_v4 = vsub.f32 0.0, %v4254_v11  ;;  %v3785_v23 = vadd.f32 %v3747_v19, %v3131_v31  ;;  %v2843_v33 = vadd.f32 %v2808_v39, %v7272_v61 }
 0x2e1   : > { %v4318_v63 = vmin.f32 %v4286_v4, 30.0  ;;  %v4183_v22 = vadd.f32 %v4145_v58, %v3785_v23  ;;  %v3095_v53 = vpop.f32.mrf.mxu2 }
 0x2e2   : > { %v3132_v2 = vadd.f32 %v3095_v53, %v2842_v50 }
 0x2e3   : > { %v5474_v37 = vpop.eup %5473  ;;  %v4377_v46 = vmul.f32 1.442695, %v4318_v63  ;;  %v4219_v30 = vmul.f32 %v7110_v36, %v4183_v22 }
 0x2e4   : > { %v5476_v7 = vpop.eup %5475  ;;  %v4413_v13 = vadd.f32 1.0, %v5474_v37 }
 0x2e5   : > { %v4476_v43 = vmul.f32 %v5476_v7, %v4252_v27  ;;  %5477 = vpow2.f32 %v4377_v46  ;;  %v4255_v57 = vadd.f32 %v7119_v0, %v4219_v30  ;;  %v4147_v51 = vpop.f32.mrf.mxu0 }
 0x2e6   : > { %5479 = vrcp.f32 %v4413_v13  ;;  %v3749_v42 = vpop.f32.mrf.mxu3  ;;  %v2810_v59 = vpop.f32.mrf.mxu1 }
 0x2e7   : > { %4508 = vst [vmem:[%s6900_s22 + $0xc8] sm:$0xff] %v4476_v43  ;;  %v4287_v8 = vsub.f32 0.0, %v4255_v57  ;;  %v3786_v62 = vadd.f32 %v3749_v42, %v3132_v2  ;;  %v2844_v25 = vadd.f32 %v2810_v59, %v7273_v28 }
 0x2e9   : > { %v4319_v56 = vmin.f32 %v4287_v8, 30.0  ;;  %v4184_v21 = vadd.f32 %v4147_v51, %v3786_v62  ;;  %v3098_v32 = vpop.f32.mrf.mxu2 }
 0x2ea   : > { %v3133_v27 = vadd.f32 %v3098_v32, %v2843_v33 }
 0x2eb   : > { %v5478_v26 = vpop.eup %5477  ;;  %v4379_v16 = vmul.f32 1.442695, %v4319_v56  ;;  %v4220_v34 = vmul.f32 %v7110_v36, %v4184_v21 }
 0x2ec   : > { %v5480_v24 = vpop.eup %5479  ;;  %v4414_v47 = vadd.f32 1.0, %v5478_v26 }
 0x2ed   : > { %v4477_v44 = vmul.f32 %v5480_v24, %v4253_v29  ;;  %5481 = vpow2.f32 %v4379_v16  ;;  %v4256_v18 = vadd.f32 %v7119_v0, %v4220_v34  ;;  %v4150_v5 = vpop.f32.mrf.mxu0 }
 0x2ee   : > { %5483 = vrcp.f32 %v4414_v47  ;;  %v3752_v48 = vpop.f32.mrf.mxu3 }
 0x2ef   : > { %4509 = vst [vmem:[%s6900_s22 + $0xd0] sm:$0xff] %v4477_v44  ;;  %v4288_v15 = vsub.f32 0.0, %v4256_v18  ;;  %v3787_v12 = vadd.f32 %v3752_v48, %v3133_v27 }
 0x2f1   : > { %v4320_v10 = vmin.f32 %v4288_v15, 30.0  ;;  %v4185_v49 = vadd.f32 %v4150_v5, %v3787_v12  ;;  %v3100_v9 = vpop.f32.mrf.mxu2 }
 0x2f2   : > { %v3134_v60 = vadd.f32 %v3100_v9, %v2844_v25 }
 0x2f3   : > { %v5482_v1 = vpop.eup %5481  ;;  %v4381_v35 = vmul.f32 1.442695, %v4320_v10  ;;  %v4221_v29 = vmul.f32 %v7110_v36, %v4185_v49 }
 0x2f4   : > { %v5484_v20 = vpop.eup %5483  ;;  %v4415_v55 = vadd.f32 1.0, %v5482_v1 }
 0x2f5   : > { %v4478_v54 = vmul.f32 %v5484_v20, %v4254_v11  ;;  %5485 = vpow2.f32 %v4381_v35  ;;  %v4257_v3 = vadd.f32 %v7119_v0, %v4221_v29  ;;  %v4152_v41 = vpop.f32.mrf.mxu0 }
 0x2f6   : > { %5487 = vrcp.f32 %v4415_v55  ;;  %v3754_v52 = vpop.f32.mrf.mxu3 }
 0x2f7   : > { %4510 = vst [vmem:[%s6900_s22 + $0xd8] sm:$0xff] %v4478_v54  ;;  %v4289_v40 = vsub.f32 0.0, %v4257_v3  ;;  %v3788_v38 = vadd.f32 %v3754_v52, %v3134_v60 }
 0x2f9   : > { %v4321_v31 = vmin.f32 %v4289_v40, 30.0  ;;  %v4186_v45 = vadd.f32 %v4152_v41, %v3788_v38 }
 0x2fb   : > { %v5486_v17 = vpop.eup %5485  ;;  %v4383_v6 = vmul.f32 1.442695, %v4321_v31  ;;  %v4222_v58 = vmul.f32 %v7110_v36, %v4186_v45 }
 0x2fc   : > { %v5488_v19 = vpop.eup %5487  ;;  %v4416_v4 = vadd.f32 1.0, %v5486_v17 }
 0x2fd   : > { %v4479_v11 = vmul.f32 %v5488_v19, %v4255_v57  ;;  %5489 = vpow2.f32 %v4383_v6  ;;  %v4258_v23 = vadd.f32 %v7119_v0, %v4222_v58 }
 0x2fe   : > { %5491 = vrcp.f32 %v4416_v4 }
 0x2ff   : > { %4511 = vst [vmem:[%s6900_s22 + $0xe0] sm:$0xff] %v4479_v11  ;;  %v4290_v63 = vsub.f32 0.0, %v4258_v23 }
 0x301   : > { %v4322_v22 = vmin.f32 %v4290_v63, 30.0 }
 0x303   : > { %v5490_v14 = vpop.eup %5489  ;;  %v4385_v50 = vmul.f32 1.442695, %v4322_v22 }
 0x304   : > { %v5492_v53 = vpop.eup %5491  ;;  %v4417_v37 = vadd.f32 1.0, %v5490_v14 }
 0x305   : > { %v4480_v46 = vmul.f32 %v5492_v53, %v4256_v18  ;;  %5493 = vpow2.f32 %v4385_v50 }
 0x306   : > { %5495 = vrcp.f32 %v4417_v37 }
 0x307   : > { %4512 = vst [vmem:[%s6900_s22 + $0xe8] sm:$0xff] %v4480_v46 }
 0x30b   : > { %v5494_v36 = vpop.eup %5493 }
 0x30c   : > { %v5496_v30 = vpop.eup %5495  ;;  %v4418_v0 = vadd.f32 1.0, %v5494_v36 }
 0x30d   : > { %v4481_v2 = vmul.f32 %v5496_v30, %v4257_v3 }
 0x30e   : > { %5497 = vrcp.f32 %v4418_v0 }
 0x30f   : > { %4513 = vst [vmem:[%s6900_s22 + $0xf0] sm:$0xff] %v4481_v2 }
 0x314   : > { %v5498_v39 = vpop.eup %5497 }
 0x315   : > { %v4482_v7 = vmul.f32 %v5498_v39, %v4258_v23 }
 0x317   : > { %4514 = vst [vmem:[%s6900_s22 + $0xf8] sm:$0xff] %v4482_v7 }
 0x318   : > { %5578 = shalt.err (!%p5575_p5)
}
 0x319   : > { %s5631_s14 = smov 128   ;;  %s5632_s22 = smov 8  }
 0x31a   : > { %5312 = dma.vmem_to_hbm [thread:$0]  (%p5698_p4), %s4532_s9, 4096, %s4534_s10, %s4516_s11, %s5631_s14, %s5631_s14, %s5632_s22  }
 0x31b PF: > { %p5318_p6 = scmp.ge.s32.totalorder %s5629_s20, 2  ;;  %s4548_s30 = sand.u32 1, %s5609_s15  }
 0x31c   : > { %s4549_s5 = scalar_lea.sflag [#allocation3], %s4548_s30 }
 0x31d   : > { %p5315_p7 = pnand %p5318_p6, %p5705_p8 }
 0x31f   : > { %p5316_p9 = pneg %p5315_p7 }
 0x321   : > { %5604 = dma.done.wait (%p5316_p9), %s4549_s5, 4096  }
 0x322   : > { %5606 = vsyncadd (%p5316_p9), %s4549_s5, 4294963200  ;;  %s17_s20 = sadd.s32 1, %s5629_s20   ;;  %s7274_s15 = smov %s5613_s16 }
 0x323   : > { %p14_p10 = scmp.ge.s32.totalorder %s17_s20, 4   ;;  %s7275_s16 = smov %s5617_s17 }
 0x324   : > { %s7276_s17 = smov %s5711_s28  ;;  %s7277_s18 = smov %s5625_s19 }
 0x325   : > { %s7278_s19 = smov %s7280_s23  ;;  %16 = sbr.rel (!%p14_p10) target bundleno = 4 (0x4), region = 91 }
 0x32a   :  { %4555 = vsyncpa [#allocation3], 1 }
 0x32b   :  { %4557 = vsyncpa [#allocation3 + $0x1], 1 }

</bundles_post_ra>
